<compile_context>
chip_gen: v7x
topology: tpu7x:2x2x1
jax: 0.10.0
libtpu: 0.0.40
codegen_flags: <defaults>
</compile_context>

<pallas_src>
import numpy as np
import jax
import jax.numpy as jnp
from jax.experimental import pallas as pl
from jax.experimental.pallas import tpu as pltpu


# ------------------------------- kernel --------------------------------------

def _fused_seg_kernel(x_ref, w1_ref, b1_ref, B_ref, w2_ref, sh_ref, w3_ref,
                      b3_ref, o_ref):
    # x_ref:  (1, C, hw)   current batch item, channel-first pixels (f32)
    # B_ref:  (hw, tp)     bilinear-resize matrix tile (bf16)
    # w2_ref: (E, E)       BN-folded 1x1-conv weight (bf16)
    # o_ref:  (1, K, tp)   lane-dense NCHW output tile (f32)
    x = x_ref[0]                                                       # (C, hw)

    # linear_c4: per-pixel Linear C -> E (channel-first).  Tiny matmul, f32.
    proj = jnp.dot(w1_ref[...], x,
                   preferred_element_type=jnp.float32) + b1_ref[...]  # (E, hw)

    # Bilinear resize (align_corners=False) as one dense MXU matmul with the
    # Kronecker matrix B = kron(Rh, Rw)^T.  bf16 operands, f32 accumulation.
    y = jnp.dot(proj.astype(jnp.bfloat16), B_ref[...],
                preferred_element_type=jnp.float32)                   # (E, tp)

    # linear_fuse: 1x1 conv with BatchNorm (eval) folded into weight + shift, ReLU.
    z = jnp.dot(w2_ref[...], y.astype(jnp.bfloat16),
                preferred_element_type=jnp.float32) + sh_ref[...]     # (E, tp)
    z = jnp.maximum(z, 0.0)

    # Dropout2d(0.1): identity in eval mode.
    # TODO(synk): training-mode channel dropout is not implemented.

    # linear_pred: 1x1 conv E -> K with bias (K output rows are tiny; f32).
    o = jnp.dot(w3_ref[...], z,
                preferred_element_type=jnp.float32) + b3_ref[...]     # (K, tp)
    o_ref[0] = o.astype(o_ref.dtype)


# --------------------------- pallas_call wrapper ------------------------------

def _vmem_bytes_estimate(C, E, K, hw, tp):
    """Rough per-call VMEM footprint: double-buffered blocks + live temporaries."""
    blocks = 2 * (C * hw * 4            # x block (f32)
                  + hw * tp * 2         # B block (bf16)
                  + K * tp * 4)         # output block (f32)
    weights = 2 * ((E * C + E + E + K * E + K) * 4 + E * E * 2)
    temps = (E * hw) * 4 + 2 * (E * tp) * 4 + 2 * (E * tp) * 2  # proj, y, z, bf16 copies
    return blocks + weights + temps


def fused_seg_head(x, w1, b1c, B, w2f, shift, w3, b3c, *,
                   vmem_budget=22 * 1024 * 1024):
    """x: (n, C, hw) f32 -> (n, K, P) f32, with P = B.shape[1]."""
    n, C, hw = x.shape
    E = w1.shape[0]
    K = w3.shape[0]
    P = B.shape[1]

    # Pick the largest pixel tile that divides P and fits the VMEM budget
    # (explicit clamp instead of the old silent `tp = P` fallback).
    tp = P
    while (_vmem_bytes_estimate(C, E, K, hw, tp) > vmem_budget
           and tp % 2 == 0 and tp > 128):
        tp //= 2
    num_tiles = P // tp

    if num_tiles == 1:
        # Main path: one pixel tile per batch item.  B's block index is constant
        # across the (parallel, leading) batch axis -> B streamed from HBM once.
        grid = (n,)
        semantics = ("parallel",)
        x_map = lambda b: (b, 0, 0)
        w_map = lambda b: (0, 0)
        B_map = lambda b: (0, 0)
        o_map = lambda b: (b, 0, 0)
    else:
        # Fallback for large hw*P: tile the pixel axis but keep it OUTERMOST so
        # each B tile stays resident across the inner batch loop (B streamed once
        # total).  x / proj are tiny, so re-fetch / recompute per tile is cheap.
        grid = (num_tiles, n)
        semantics = ("parallel", "arbitrary")
        x_map = lambda i, b: (b, 0, 0)
        w_map = lambda i, b: (0, 0)
        B_map = lambda i, b: (0, i)
        o_map = lambda i, b: (b, 0, i)

    flops = 2 * n * (E * C * hw + E * hw * P + E * E * P + K * E * P)
    # B is streamed exactly once under both grid orders above.
    bytes_accessed = (x.size * 4 + B.size * 2 + w2f.size * 2
                      + 4 * (w1.size + b1c.size + shift.size + w3.size + b3c.size)
                      + 4 * n * K * P)

    return pl.pallas_call(
        _fused_seg_kernel,
        out_shape=jax.ShapeDtypeStruct((n, K, P), jnp.float32),
        grid_spec=pltpu.PrefetchScalarGridSpec(
            num_scalar_prefetch=0,
            grid=grid,
            in_specs=[
                pl.BlockSpec((1, C, hw), x_map),    # x  (per batch item)
                pl.BlockSpec((E, C), w_map),        # W1
                pl.BlockSpec((E, 1), w_map),        # b1 (column)
                pl.BlockSpec((hw, tp), B_map),      # resize matrix tile (bf16)
                pl.BlockSpec((E, E), w_map),        # W2 (BN-folded, bf16)
                pl.BlockSpec((E, 1), w_map),        # BN shift (column)
                pl.BlockSpec((K, E), w_map),        # W3
                pl.BlockSpec((K, 1), w_map),        # b3 (column)
            ],
            out_specs=pl.BlockSpec((1, K, tp), o_map),
        ),
        compiler_params=pltpu.CompilerParams(
            dimension_semantics=semantics,
            vmem_limit_bytes=32 * 1024 * 1024,
        ),
        cost_estimate=pl.CostEstimate(flops=flops, transcendentals=0,
                                      bytes_accessed=bytes_accessed),
    )(x, w1, b1c, B, w2f, shift, w3, b3c)


# ----------------------------- glue / params ---------------------------------

def bilinear_matrix(in_size, out_size):
    """Matrix reproducing F.interpolate bilinear, align_corners=False (one axis)."""
    R = np.zeros((out_size, in_size), np.float32)
    scale = in_size / out_size
    for o in range(out_size):
        src = (o + 0.5) * scale - 0.5
        if src < 0.0:
            src = 0.0
        i0 = int(np.floor(src))
        i1 = min(i0 + 1, in_size - 1)
        frac = src - i0
        R[o, i0] += (1.0 - frac)
        R[o, i1] += frac
    return R


def init_params(key, c4_in, embed_dim, num_classes, h, w, out_hw=64):
    ks = jax.random.split(key, 9)
    rh = bilinear_matrix(h, out_hw)                     # (64, h)
    rw = bilinear_matrix(w, out_hw)                     # (64, w)
    # Kronecker resize matrix: B[(hi,wi), (ho,wo)] = Rh[ho,hi] * Rw[wo,wi]
    B = np.kron(rh, rw).T.astype(np.float32)            # (h*w, 64*64)
    params = {
        # linear_c4 (MLP proj): PyTorch Linear weight layout (E, C)
        "w1": jax.random.normal(ks[0], (embed_dim, c4_in), jnp.float32) * 0.05,
        "b1": jax.random.normal(ks[1], (embed_dim,), jnp.float32) * 0.05,
        # linear_fuse conv (1x1, bias=False because norm_cfg is set): (E_out, E_in)
        "w2": jax.random.normal(ks[2], (embed_dim, embed_dim), jnp.float32) * 0.05,
        # BatchNorm2d (eval-mode running stats + affine)
        "gamma": 1.0 + 0.1 * jax.random.normal(ks[3], (embed_dim,), jnp.float32),
        "beta": 0.1 * jax.random.normal(ks[4], (embed_dim,), jnp.float32),
        "run_mean": 0.1 * jax.random.normal(ks[5], (embed_dim,), jnp.float32),
        "run_var": 1.0 + 0.1 * jnp.abs(jax.random.normal(ks[6], (embed_dim,), jnp.float32)),
        # linear_pred conv (1x1, with bias): (K, E)
        "w3": jax.random.normal(ks[7], (num_classes, embed_dim), jnp.float32) * 0.05,
        "b3": jax.random.normal(ks[8], (num_classes,), jnp.float32) * 0.05,
        # bilinear resize matrix (constant of the forward pass) — stored bf16:
        # halves the only large HBM stream / VMEM tile.
        "resize": jnp.asarray(B, dtype=jnp.bfloat16),
    }
    return params


def _fold_bn(params, eps=1e-5):
    s = params["gamma"] / jnp.sqrt(params["run_var"] + eps)          # (E,)
    w2f = (params["w2"] * s[:, None]).astype(jnp.bfloat16)           # (E_out, E_in) bf16
    shift = (params["beta"] - params["run_mean"] * s)                # (E,) f32
    return w2f, shift


def simple_seg_forward(c4_nchw, params, out_hw=64):
    n, C, h, w = c4_nchw.shape
    K = params["w3"].shape[0]

    # NCHW -> (n, C, h*w): contiguous merge of trailing dims, no transpose.
    x = c4_nchw.reshape(n, C, h * w)

    w2f, shift = _fold_bn(params)
    b1c = params["b1"][:, None]                                      # (E, 1)
    b3c = params["b3"][:, None]                                      # (K, 1)

    out = fused_seg_head(x, params["w1"], b1c, params["resize"], w2f,
                         shift[:, None], params["w3"], b3c)          # (n, K, 64*64)

    out = out.reshape(n, K, out_hw, out_hw)                          # NCHW, free reshape
    if K == 1:                                                       # torch.squeeze(x, 1)
        out = out[:, 0]
    return out


def reference_forward(c4_nchw, params, out_hw=64):
    """Pure-JAX mirror of the kernel math (same bf16 operand casts) for validation."""
    n, C, h, w = c4_nchw.shape
    x = c4_nchw.reshape(n, C, h * w)
    w2f, shift = _fold_bn(params)

    proj = jnp.einsum("ec,ncp->nep", params["w1"], x,
                      preferred_element_type=jnp.float32) + params["b1"][None, :, None]
    y = jnp.einsum("nep,pq->neq", proj.astype(jnp.bfloat16), params["resize"],
                   preferred_element_type=jnp.float32)
    z = jnp.einsum("oe,neq->noq", w2f, y.astype(jnp.bfloat16),
                   preferred_element_type=jnp.float32) + shift[None, :, None]
    z = jnp.maximum(z, 0.0)
    out = jnp.einsum("ke,neq->nkq", params["w3"], z,
                     preferred_element_type=jnp.float32) + params["b3"][None, :, None]
    out = out.reshape(n, -1, out_hw, out_hw)
    if out.shape[1] == 1:
        out = out[:, 0]
    return out


# --------------------------------- main ---------------------------------------

if __name__ == "__main__":
    # small config consistent with SimpleSeg(__init__)
    feature_strides = [4]
    in_channels = [32]
    embedding_dim = 64
    num_classes = 2
    n, h, w = 2, 16, 16
    c4_in = in_channels[-1]

    key = jax.random.PRNGKey(0)
    kx, kp = jax.random.split(key)
    c4 = jax.random.normal(kx, (n, c4_in, h, w), jnp.float32)
    params = init_params(kp, c4_in, embedding_dim, num_classes, h, w)

    out = simple_seg_forward(c4, params)
    out = jax.block_until_ready(out)

    assert out.shape == (n, num_classes, 64, 64), out.shape
    assert bool(jnp.all(jnp.isfinite(out)))

    ref = jax.block_until_ready(reference_forward(c4, params))
    max_err = float(jnp.max(jnp.abs(out - ref)))
    assert max_err < 2e-2, f"max abs err vs jnp reference: {max_err}"

    print("KERNEL_OK")
</pallas_src>

<mosaic_0001>
module attributes {stable_mosaic.version = 11 : i64} {
  func.func @_fused_seg_kernel(%arg0: i32, %arg1: memref<1x32x256xf32, #tpu.memory_space<vmem>>, %arg2: memref<64x32xf32, #tpu.memory_space<vmem>>, %arg3: memref<64x1xf32, #tpu.memory_space<vmem>>, %arg4: memref<256x4096xbf16, #tpu.memory_space<vmem>>, %arg5: memref<64x64xbf16, #tpu.memory_space<vmem>>, %arg6: memref<64x1xf32, #tpu.memory_space<vmem>>, %arg7: memref<2x64xf32, #tpu.memory_space<vmem>>, %arg8: memref<2x1xf32, #tpu.memory_space<vmem>>, %arg9: memref<1x2x4096xf32, #tpu.memory_space<vmem>>) attributes {dimension_semantics = [#tpu.dimension_semantics<parallel>], iteration_bounds = array<i64: 2>, scalar_prefetch = 0 : i64, scratch_operands = 0 : i64, tpu.core_type = #tpu.core_type<tc>, window_params = [{transform_indices = @transform_0, window_bounds = array<i64: 1, 32, 256>}, {pipeline_mode = #tpu.pipeline_mode<synchronous>, transform_indices = @transform_1, window_bounds = array<i64: 64, 32>}, {pipeline_mode = #tpu.pipeline_mode<synchronous>, transform_indices = @transform_2, window_bounds = array<i64: 64, 1>}, {pipeline_mode = #tpu.pipeline_mode<synchronous>, transform_indices = @transform_3, window_bounds = array<i64: 256, 4096>}, {pipeline_mode = #tpu.pipeline_mode<synchronous>, transform_indices = @transform_4, window_bounds = array<i64: 64, 64>}, {pipeline_mode = #tpu.pipeline_mode<synchronous>, transform_indices = @transform_5, window_bounds = array<i64: 64, 1>}, {pipeline_mode = #tpu.pipeline_mode<synchronous>, transform_indices = @transform_6, window_bounds = array<i64: 2, 64>}, {pipeline_mode = #tpu.pipeline_mode<synchronous>, transform_indices = @transform_7, window_bounds = array<i64: 2, 1>}, {transform_indices = @transform_8, window_bounds = array<i64: 1, 2, 4096>}]} {
    %c0 = arith.constant 0 : index
    %c0_0 = arith.constant 0 : index
    %c0_1 = arith.constant 0 : index
    %0 = vector.load %arg1[%c0, %c0_0, %c0_1] : memref<1x32x256xf32, #tpu.memory_space<vmem>>, vector<1x32x256xf32>
    %1 = vector.shape_cast %0 : vector<1x32x256xf32> to vector<32x256xf32>
    %c0_2 = arith.constant 0 : index
    %c0_3 = arith.constant 0 : index
    %2 = vector.load %arg2[%c0_2, %c0_3] : memref<64x32xf32, #tpu.memory_space<vmem>>, vector<64x32xf32>
    %cst = arith.constant dense<0.000000e+00> : vector<64x256xf32>
    %3 = tpu.matmul %2, %1, %cst {dimension_numbers = #tpu.dot_dimension_numbers<[1], [0], [0], [1], [0, 0, 1, 1], [], []>} : vector<64x32xf32>, vector<32x256xf32>, vector<64x256xf32> -> vector<64x256xf32>
    %c0_4 = arith.constant 0 : index
    %c0_5 = arith.constant 0 : index
    %4 = vector.load %arg3[%c0_4, %c0_5] : memref<64x1xf32, #tpu.memory_space<vmem>>, vector<64x1xf32>
    %5 = vector.broadcast %4 : vector<64x1xf32> to vector<64x256xf32>
    %6 = arith.addf %3, %5 : vector<64x256xf32>
    %7 = arith.truncf %6 : vector<64x256xf32> to vector<64x256xbf16>
    %c0_6 = arith.constant 0 : index
    %c0_7 = arith.constant 0 : index
    %8 = vector.load %arg4[%c0_6, %c0_7] : memref<256x4096xbf16, #tpu.memory_space<vmem>>, vector<256x4096xbf16>
    %cst_8 = arith.constant dense<0.000000e+00> : vector<64x4096xf32>
    %9 = tpu.matmul %7, %8, %cst_8 {dimension_numbers = #tpu.dot_dimension_numbers<[1], [0], [0], [1], [0, 0, 1, 1], [], []>} : vector<64x256xbf16>, vector<256x4096xbf16>, vector<64x4096xf32> -> vector<64x4096xf32>
    %c0_9 = arith.constant 0 : index
    %c0_10 = arith.constant 0 : index
    %10 = vector.load %arg5[%c0_9, %c0_10] : memref<64x64xbf16, #tpu.memory_space<vmem>>, vector<64x64xbf16>
    %11 = arith.truncf %9 : vector<64x4096xf32> to vector<64x4096xbf16>
    %cst_11 = arith.constant dense<0.000000e+00> : vector<64x4096xf32>
    %12 = tpu.matmul %10, %11, %cst_11 {dimension_numbers = #tpu.dot_dimension_numbers<[1], [0], [0], [1], [0, 0, 1, 1], [], []>} : vector<64x64xbf16>, vector<64x4096xbf16>, vector<64x4096xf32> -> vector<64x4096xf32>
    %c0_12 = arith.constant 0 : index
    %c0_13 = arith.constant 0 : index
    %13 = vector.load %arg6[%c0_12, %c0_13] : memref<64x1xf32, #tpu.memory_space<vmem>>, vector<64x1xf32>
    %14 = vector.broadcast %13 : vector<64x1xf32> to vector<64x4096xf32>
    %15 = arith.addf %12, %14 : vector<64x4096xf32>
    %cst_14 = arith.constant 0.000000e+00 : f32
    %16 = vector.broadcast %cst_14 : f32 to vector<64x4096xf32>
    %17 = arith.maximumf %15, %16 : vector<64x4096xf32>
    %c0_15 = arith.constant 0 : index
    %c0_16 = arith.constant 0 : index
    %18 = vector.load %arg7[%c0_15, %c0_16] : memref<2x64xf32, #tpu.memory_space<vmem>>, vector<2x64xf32>
    %cst_17 = arith.constant dense<0.000000e+00> : vector<2x4096xf32>
    %19 = tpu.matmul %18, %17, %cst_17 {dimension_numbers = #tpu.dot_dimension_numbers<[1], [0], [0], [1], [0, 0, 1, 1], [], []>} : vector<2x64xf32>, vector<64x4096xf32>, vector<2x4096xf32> -> vector<2x4096xf32>
    %c0_18 = arith.constant 0 : index
    %c0_19 = arith.constant 0 : index
    %20 = vector.load %arg8[%c0_18, %c0_19] : memref<2x1xf32, #tpu.memory_space<vmem>>, vector<2x1xf32>
    %21 = vector.broadcast %20 : vector<2x1xf32> to vector<2x4096xf32>
    %22 = arith.addf %19, %21 : vector<2x4096xf32>
    %c0_20 = arith.constant 0 : index
    %c0_21 = arith.constant 0 : index
    %c0_22 = arith.constant 0 : index
    %23 = vector.load %arg9[%c0_20, %c0_21, %c0_22] : memref<1x2x4096xf32, #tpu.memory_space<vmem>>, vector<1x2x4096xf32>
    %24 = vector.shape_cast %23 : vector<1x2x4096xf32> to vector<2x4096xf32>
    %25 = vector.shape_cast %22 : vector<2x4096xf32> to vector<1x2x4096xf32>
    tpu.vector_store %arg9[%c0_20, %c0_21, %c0_22], %25 {strides = array<i32>} : memref<1x2x4096xf32, #tpu.memory_space<vmem>>, vector<1x2x4096xf32>,
    return
  }
  func.func @transform_0(%arg0: i32) -> (i32, i32, i32) {
    %c0_i32 = arith.constant 0 : i32
    %c0_i32_0 = arith.constant 0 : i32
    %c0_i32_1 = arith.constant 0 : i32
    return %arg0, %c0_i32, %c0_i32_0 : i32, i32, i32
  }
  func.func @transform_1(%arg0: i32) -> (i32, i32) {
    %c0_i32 = arith.constant 0 : i32
    %c0_i32_0 = arith.constant 0 : i32
    %c0_i32_1 = arith.constant 0 : i32
    return %c0_i32, %c0_i32_0 : i32, i32
  }
  func.func @transform_2(%arg0: i32) -> (i32, i32) {
    %c0_i32 = arith.constant 0 : i32
    %c0_i32_0 = arith.constant 0 : i32
    %c0_i32_1 = arith.constant 0 : i32
    return %c0_i32, %c0_i32_0 : i32, i32
  }
  func.func @transform_3(%arg0: i32) -> (i32, i32) {
    %c0_i32 = arith.constant 0 : i32
    %c0_i32_0 = arith.constant 0 : i32
    %c0_i32_1 = arith.constant 0 : i32
    return %c0_i32, %c0_i32_0 : i32, i32
  }
  func.func @transform_4(%arg0: i32) -> (i32, i32) {
    %c0_i32 = arith.constant 0 : i32
    %c0_i32_0 = arith.constant 0 : i32
    %c0_i32_1 = arith.constant 0 : i32
    return %c0_i32, %c0_i32_0 : i32, i32
  }
  func.func @transform_5(%arg0: i32) -> (i32, i32) {
    %c0_i32 = arith.constant 0 : i32
    %c0_i32_0 = arith.constant 0 : i32
    %c0_i32_1 = arith.constant 0 : i32
    return %c0_i32, %c0_i32_0 : i32, i32
  }
  func.func @transform_6(%arg0: i32) -> (i32, i32) {
    %c0_i32 = arith.constant 0 : i32
    %c0_i32_0 = arith.constant 0 : i32
    %c0_i32_1 = arith.constant 0 : i32
    return %c0_i32, %c0_i32_0 : i32, i32
  }
  func.func @transform_7(%arg0: i32) -> (i32, i32) {
    %c0_i32 = arith.constant 0 : i32
    %c0_i32_0 = arith.constant 0 : i32
    %c0_i32_1 = arith.constant 0 : i32
    return %c0_i32, %c0_i32_0 : i32, i32
  }
  func.func @transform_8(%arg0: i32) -> (i32, i32, i32) {
    %c0_i32 = arith.constant 0 : i32
    %c0_i32_0 = arith.constant 0 : i32
    %c0_i32_1 = arith.constant 0 : i32
    return %arg0, %c0_i32, %c0_i32_0 : i32, i32, i32
  }
}

</mosaic_0001>

<bundles_post_ra>
// kernel: tpu_custom_call.1
= control target key start
LH: loop header
LB: loop body
LE: loop exit
PB: predicated region body
PF: predicated region fallthrough
CT: control target
= control target key end

     0   :  { %s11146_s0 = inlined_call_operand.hbm [shape: f32[2,32,256], index: 0, kind: input, shape index: {}]   ;;  %s11147_s1 = inlined_call_operand.vmem [shape: f32[64,32], index: 1, kind: input, shape index: {}]   ;;  %s11148_s2 = inlined_call_operand.vmem [shape: f32[64,1], index: 2, kind: input, shape index: {}]   ;;  %s11149_s3 = inlined_call_operand.hbm [shape: bf16[256,4096], index: 3, kind: input, shape index: {}]   ;;  %s11150_s4 = inlined_call_operand.hbm [shape: bf16[64,64], index: 4, kind: input, shape index: {}]   ;;  %s11151_s5 = inlined_call_operand.vmem [shape: f32[64,1], index: 5, kind: input, shape index: {}]   ;;  %s11152_s6 = inlined_call_operand.hbm [shape: f32[2,64], index: 6, kind: input, shape index: {}]   ;;  %s11153_s7 = inlined_call_operand.vmem [shape: f32[2,1], index: 7, kind: input, shape index: {}]   ;;  %s11154_s8 = inlined_call_operand.hbm [shape: f32[2,2,4096], index: 8, kind: output, shape index: {}]  }
   0x1   :  { %11274 = sst [smem:[#allocation112_spill]] %s11149_s3 }
   0x2   :  { %13 = vsyncpa [#allocation3], 0 }
   0x3   :  { %15 = vsyncpa [#allocation3 + $0x1], 0 }
   0x4   :  { %16 = vsyncpa [#allocation6], 0 }
   0x5   :  { %17 = vsyncpa [#allocation9], 0 }
   0x6   :  { %18 = vsyncpa [#allocation4], 0 }
   0x7   :  { %20 = vsyncpa [#allocation4 + $0x1], 0  ;;  %s9134_s27 = smov 0   ;;  %s9136_s28 = smov 0  }
   0x8   :  { %s9138_s29 = smov 0   ;;  %s9140_s30 = smov 0  }
   0x9 LB: > { %11275 = sst [smem:[#allocation15_spill]] %s9061_s27  ;;  %s9155_s9 = sadd.s32 4294967295, %s9073_s30   ;;  %s9073_s30 = sphi %s9140_s30, %s11615_s30   ;;  %s9069_s29 = sphi %s9138_s29, %s11614_s29   ;;  %s9065_s28 = sphi %s9136_s28, %s11613_s28   ;;  %s9061_s27 = sphi %s9134_s27, %s11612_s27  }
   0xa   : > { %s7902_s10 = sadd.s32 4294967294, %s9073_s30   ;;  %p46_p0 = scmp.ne.s32.totalorder %s9065_s28, %s9061_s27 }
   0xb   : > { %p11155_p1 = scmp.eq.s32.totalorder %s9155_s9, 0  ;;  %p223_p3 = scmp.eq.s32.totalorder %s7902_s10, 1 }
   0xc   : > { %p7903_p5 = scmp.ge.s32.totalorder %s9073_s30, 1  ;;  %p230_p7 = scmp.lt.s32.totalorder %s9073_s30, 3 }
   0xd   : > { %p9164_p4 = por %p11155_p1, %p46_p0  ;;  %p9169_p6 = por %p223_p3, %p46_p0 }
   0xe   : > { %p9174_p8 = pnand %p7903_p5, %p230_p7  ;;  %s9075_s14 = smov [#allocation5]  }
   0xf   : > { %s11276_s11 = scalar_select %p9164_p4, 1, 0 }
  0x10   : > { %s11277_s12 = scalar_select %p9169_p6, 1, 0 }
  0x11   : > { %s11279_s13 = scalar_select %p9174_p8, 1, 0 }
  0x12   : > { %11278 = sst [smem:[#allocation16_spill]] %s11277_s12  ;;  %s248_s15 = sshll.u32 %s9075_s14, 4  ;;  %s9178_s15 = int_to_ptr.vmem [resolvable:$true] %s248_s15 }
  0x13   : > { %p8808_p9 = pneg %p9174_p8  ;;  %s9076_s17 = smov [#allocation7]  }
  0x14   : > { %s261_s18 = sshll.u32 %s9076_s17, 4  ;;  %s11281_s3 = sld [smem:[#allocation112_spill]]  ;;  %s9189_s18 = int_to_ptr.vmem [resolvable:$true] %s261_s18 }
  0x15   : > { %p9185_p11 = pnand %p8808_p9, %p11155_p1 }
  0x17   : > { %p9199_p13 = pneg %p9185_p11 }
  0x1a   : > { %s8885_s21 = scalar_lea.hbm %s11281_s3, 65536 }
  0x1b   : > { %p8886_p12 = scmp.ne.s32.totalorder %s11281_s3, %s8885_s21  ;;  %p8892_p5 = scmp.lt.u32.totalorder %s8885_s21, %s11281_s3 }
  0x1d   : > { %p8888_p0 = pnand %p9199_p13, %p8886_p12 }
  0x1f   : > { %p8889_p3 = pneg %p8888_p0 }
  0x21   : > { %p8894_p7 = pnand %p8892_p5, %p8889_p3 }
  0x23   : > { %8897 = shalt.err (!%p8894_p7)
}
  0x24   : > { %s8898_s10 = scalar_lea.vmem %s9178_s15, 65536  ;;  %p8906_p2 = scmp.lt.s32.totalorder %s9178_s15, %s9178_s15 }
  0x25   : > { %p8899_p9 = scmp.ne.s32.totalorder %s9178_s15, %s8898_s10  ;;  %p8907_p6 = scmp.lt.s32.totalorder %s8898_s10, %s8898_s10 }
  0x27   : > { %p8901_p10 = pnand %p8899_p9, %p9199_p13  ;;  %p8908_p12 = por %p8907_p6, %p8906_p2 }
  0x29   : > { %p8902_p1 = pneg %p8901_p10 }
  0x2b   : > { %p8909_p0 = pnand %p8908_p12, %p8902_p1 }
  0x2d   : > { %8912 = shalt.err (!%p8909_p0)
}
  0x2e   : > { %s9077_s14 = smov 2048   ;;  %s9078_s17 = smov 128  }
  0x2f   : > { %8811 = dma.hbm_to_vmem [thread:$0]  (!%p9185_p11), %s11281_s3, 65536, %s9178_s15, [#allocation6], %s9077_s14, %s9077_s14, %s9078_s17  }
  0x30   : > { %s8913_s23 = scalar_lea.hbm %s11150_s4, 512 }
  0x31   : > { %p8914_p2 = scmp.ne.s32.totalorder %s11150_s4, %s8913_s23  ;;  %p8920_p10 = scmp.lt.u32.totalorder %s8913_s23, %s11150_s4 }
  0x33   : > { %p8916_p1 = pnand %p8914_p2, %p9199_p13 }
  0x35   : > { %p8917_p6 = pneg %p8916_p1 }
  0x37   : > { %p8922_p3 = pnand %p8920_p10, %p8917_p6 }
  0x39   : > { %8925 = shalt.err (!%p8922_p3)
}
  0x3a   : > { %s8926_s15 = scalar_lea.vmem %s9189_s18, 512  ;;  %p8934_p12 = scmp.lt.s32.totalorder %s9189_s18, %s9189_s18 }
  0x3b   : > { %p8927_p5 = scmp.ne.s32.totalorder %s9189_s18, %s8926_s15  ;;  %p8935_p0 = scmp.lt.s32.totalorder %s8926_s15, %s8926_s15 }
  0x3d   : > { %p8929_p7 = pnand %p8927_p5, %p9199_p13  ;;  %p8936_p2 = por %p8935_p0, %p8934_p12 }
  0x3f   : > { %p8930_p9 = pneg %p8929_p7 }
  0x41   : > { %p8937_p1 = pnand %p8936_p2, %p8930_p9 }
  0x43   : > { %8940 = shalt.err (!%p8937_p1)
}
  0x44   : > { %s9079_s14 = smov 64   ;;  %s9080_s12 = smov 4  }
  0x45   : > { %8814 = dma.hbm_to_vmem [thread:$0]  (!%p9185_p11), %s11150_s4, 512, %s9189_s18, [#allocation6], %s9079_s14, %s9079_s14, %s9080_s12  }
  0x46   : > { %s9081_s20 = smov [#allocation8]   ;;  %s9244_s22 = sadd.s32 1, %s9073_s30  }
  0x47   : > { %s278_s21 = sshll.u32 %s9081_s20, 4  ;;  %s8941_s26 = scalar_lea.hbm %s11152_s6, 32  ;;  %s279_s21 = int_to_ptr.vmem [resolvable:$true] %s278_s21 }
  0x48   : > { %p8942_p6 = scmp.ne.s32.totalorder %s11152_s6, %s8941_s26  ;;  %p8948_p5 = scmp.lt.u32.totalorder %s8941_s26, %s11152_s6 }
  0x4a   : > { %p8944_p10 = pnand %p8942_p6, %p9199_p13 }
  0x4c   : > { %p8945_p3 = pneg %p8944_p10 }
  0x4e   : > { %p8950_p7 = pnand %p8948_p5, %p8945_p3 }
  0x50   : > { %8953 = shalt.err (!%p8950_p7)
}
  0x51   : > { %s8954_s18 = scalar_lea.vmem %s279_s21, 32  ;;  %p8962_p2 = scmp.lt.s32.totalorder %s279_s21, %s279_s21 }
  0x52   : > { %p8955_p9 = scmp.ne.s32.totalorder %s279_s21, %s8954_s18  ;;  %p8963_p1 = scmp.lt.s32.totalorder %s8954_s18, %s8954_s18 }
  0x54   : > { %p8957_p12 = pnand %p8955_p9, %p9199_p13  ;;  %p8964_p4 = por %p8963_p1, %p8962_p2 }
  0x56   : > { %p8958_p0 = pneg %p8957_p12 }
  0x58   : > { %p8965_p8 = pnand %p8964_p4, %p8958_p0 }
  0x5a   : > { %8968 = shalt.err (!%p8965_p8)
}
  0x5b   : > { %8817 = dma.hbm_to_vmem [thread:$0]  (!%p9185_p11), %s11152_s6, 32, %s279_s21, [#allocation9]  }
  0x5c   : > { %s30_s3 = ssub.s32 %s9073_s30, %s9244_s22  ;;  %s33_s27 = sadd.s32 1, %s9069_s29 }
  0x5d   : > { %p31_p4 = scmp.eq.s32.totalorder %s30_s3, 0  ;;  %p40_p8 = scmp.ne.s32.totalorder %s9069_s29, %s9065_s28 }
  0x5e   : > { %p41_p13 = scmp.eq.s32.totalorder %s9073_s30, 0  ;;  %p8829_p6 = scmp.lt.s32.totalorder %s9073_s30, 2 }
  0x5f   : > { %s9272_s16 = scalar_select %p31_p4, %s9069_s29, %s33_s27  }
  0x60   : > { %p42_p10 = por %p41_p13, %p40_p8  ;;  %p11283_p3 = scmp.eq.s32.totalorder %s9155_s9, 1 }
  0x61   : > { %s292_s17 = sand.u32 1, %s9069_s29   ;;  %s8526_s19 = sshll.u32 %s9073_s30, 10 }
  0x62   : > { %p9276_p5 = por %p11283_p3, %p40_p8  ;;  %s7908_s20 = sshll.u32 %s292_s17, 6 }
  0x63   : > { %s9285_s21 = scalar_lea.hbm %s11146_s0, %s8526_s19  ;;  %s296_s26 = scalar_lea.vmem [#allocation2], %s7908_s20 }
  0x64   : > { %s303_s10 = sshll.u32 %s296_s26, 4  ;;  %p9287_p11 = pnand %p8829_p6, %p42_p10  ;;  %s9291_s10 = int_to_ptr.vmem [resolvable:$true] %s303_s10 }
  0x65   : > { %s9293_s18 = scalar_lea.sflag [#allocation3], %s292_s17  ;;  %s8969_s14 = scalar_lea.hbm %s9285_s21, 1024 }
  0x66   : > { %p8970_p7 = scmp.ne.s32.totalorder %s9285_s21, %s8969_s14  ;;  %p8971_p9 = pneg %p9287_p11 }
  0x67   : > { %s8974_s27 = scalar_lea.hbm %s11146_s0, 2048  ;;  %p8975_p2 = scmp.lt.u32.totalorder %s9285_s21, %s11146_s0 }
  0x68   : > { %p8972_p12 = pnand %p8971_p9, %p8970_p7  ;;  %p8976_p1 = scmp.lt.u32.totalorder %s8974_s27, %s8969_s14 }
  0x69   : > { %p8978_p8 = scmp.lt.u32.totalorder %s8969_s14, %s9285_s21 }
  0x6a   : > { %p8973_p0 = pneg %p8972_p12  ;;  %p8977_p4 = por %p8976_p1, %p8975_p2 }
  0x6c   : > { %p8979_p13 = por %p8978_p8, %p8977_p4 }
  0x6e   : > { %p8980_p6 = pnand %p8979_p13, %p8973_p0 }
  0x70   : > { %8983 = shalt.err (!%p8980_p6)
}
  0x71   : > { %s8984_s17 = scalar_lea.vmem %s9291_s10, 1024  ;;  %s9082_s23 = smov [#allocation2]  }
  0x72   : > { %p8985_p10 = scmp.ne.s32.totalorder %s9291_s10, %s8984_s17  ;;  %s8989_s25 = sshll.u32 %s9082_s23, 4  ;;  %s8990_s25 = int_to_ptr.vmem [resolvable:$false] %s8989_s25 }
  0x73   : > { %s8991_s26 = scalar_lea.vmem %s8990_s25, 2048  ;;  %p8992_p12 = scmp.lt.s32.totalorder %s9291_s10, %s8990_s25 }
  0x74   : > { %p8987_p3 = pnand %p8985_p10, %p8971_p9  ;;  %p8993_p2 = scmp.lt.s32.totalorder %s8991_s26, %s8984_s17 }
  0x76   : > { %p8988_p7 = pneg %p8987_p3  ;;  %p8994_p1 = por %p8993_p2, %p8992_p12 }
  0x78   : > { %p8995_p4 = pnand %p8994_p1, %p8988_p7 }
  0x7a   : > { %8998 = shalt.err (!%p8995_p4)
}
  0x7b   : > { %s9083_s14 = smov 256   ;;  %s9084_s12 = smov 16  }
  0x7c   : > { %8821 = dma.hbm_to_vmem [thread:$0]  (!%p9287_p11), %s9285_s21, 1024, %s9291_s10, %s9293_s18, %s9083_s14, %s9083_s14, %s9084_s12  }
  0x7d   : > { %p11286_p9 = scmp.ne.s32.totalorder %s11279_s13, 0 }
  0x7f   : > { %315 = sbr.rel (%p11286_p9) target bundleno = 1573 (0x625), region = 52 }
  0x86   : > { %s9324_s3 = sand.u32 1, %s9065_s28   ;;  %p11287_p0 = scmp.ne.s32.totalorder %s11276_s11, 0 }
  0x87   : > { %s7912_s27 = sshll.u32 %s9324_s3, 6  ;;  %s318_s19 = scalar_lea.sflag [#allocation3], %s9324_s3 }
  0x88   : > { %s321_s20 = scalar_lea.vmem [#allocation2], %s7912_s27 }
  0x89   : > { %9044 = dma.done.wait (%p11287_p0), %s318_s19, 1024  }
  0x8a   : > { %9046 = vsyncadd (%p11287_p0), %s318_s19, 4294966272  ;;  %p11288_p11 = scmp.eq.s32.totalorder %s9155_s9, 0 }
  0x8c   : > { %9048 = dma.done.wait (%p11288_p11), [#allocation6], 66048   ;;  %p11289_p8 = pmov %p11288_p11 }
  0x8e   : > { %9050 = vsyncadd (%p11289_p8), [#allocation6], 4294901248  ;;  %p11290_p13 = pmov %p11289_p8 }
  0x8f   : > { %p11291_p6 = pmov %p11289_p8 }
  0x90   : > { %9052 = dma.done.wait (%p11290_p13), [#allocation9], 32  }
  0x91   : > { %9054 = vsyncadd (%p11291_p6), [#allocation9], 4294967264  ;;  %v11160_v0 = vmov 0.0   ;;  %v11162_v1 = vmov 0   ;;  %v368_v2 = vld [vmem:[%s321_s20 + $0x8] sm:$0xff]  ;;  %v370_v3 = vld [vmem:[%s321_s20 + $0x18] sm:$0xff] }
  0x92   : > { %520 = vmatprep.mubr.f32.mxu0 %v11160_v0  ;;  %8878 = vset.pattern.permute.xlu0 %v11162_v1  ;;  %v367_v4 = vld [vmem:[%s321_s20] sm:$0xff]  ;;  %v8528_v5 = vpack.c.bf16 %v370_v3, %v368_v2  ;;  %v369_v6 = vld [vmem:[%s321_s20 + $0x10] sm:$0xff]  ;;  %v372_v7 = vld [vmem:[%s321_s20 + $0x28] sm:$0xff]  ;;  %vm431_vm0 = vcmask 261120   ;;  %vm5021_vm1 = vcmask 523264   ;;  %s11045_s25 = scalar_lea.vmem [#allocation10], %s7912_s27 }
  0x93   : > { %8879 = vset.pattern.permute.xlu1 %v11162_v1  ;;  %v374_v8 = vld [vmem:[%s321_s20 + $0x38] sm:$0xff]  ;;  %v8530_v9 = vpack.c.bf16 %v369_v6, %v367_v4  ;;  %v371_v11 = vld [vmem:[%s321_s20 + $0x20] sm:$0xff]  ;;  %v373_v12 = vld [vmem:[%s321_s20 + $0x30] sm:$0xff]  ;;  %s8527_s27 = sshll.u32 %s9155_s9, 10  ;;  %s7803_s26 = sshll.u32 %s11045_s25, 4  ;;  %s11103_s26 = int_to_ptr.vmem [resolvable:$true] %s7803_s26 }
  0x94   : > { %v8532_v10 = vpack.c.bf16 %v374_v8, %v372_v7  ;;  %8529 = vmatprep.subr.bf16.mxu0 %v8528_v5  ;;  %v8534_v13 = vpack.c.bf16 %v373_v12, %v371_v11  ;;  %v383_v14 = vld [vmem:[%s11148_s2] sm:$0xff]  ;;  %v384_v15 = vld [vmem:[%s11148_s2 + $0x8] sm:$0xff]  ;;  %v385_v17 = vld [vmem:[%s11148_s2 + $0x10] sm:$0xff]  ;;  %s11101_s19 = scalar_lea.hbm %s11154_s8, %s8527_s27  ;;  %s7789_s20 = scalar_lea.sflag [#allocation4], %s9324_s3 }
  0x95   : > { %8531 = vmatpush1.bf16.msra.mxu0 %v8530_v9  ;;  %393 = vperm.xlu0 %8878, %v383_v14   ;;  %v375_v16 = vld [vmem:[%s11147_s1] sm:$0xff]  ;;  %v376_v18 = vld [vmem:[%s11147_s1 + $0x8] sm:$0xff]  ;;  %v386_v20 = vld [vmem:[%s11148_s2 + $0x18] sm:$0xff]  ;;  %s8999_s11 = scalar_lea.vmem %s11103_s26, 1024  ;;  %s9088_s9 = smov [#allocation10]  }
  0x96   : > { %8533 = vmatprep.subr.bf16.mxu0 %v8532_v10  ;;  %403 = vperm.xlu1 %8879, %v385_v17   ;;  %v387_v19 = vld [vmem:[%s11148_s2 + $0x20] sm:$0xff]  ;;  %v578_v23 = vld [vmem:[#allocation5 + $0x8] sm:$0xff]  ;;  %v389_v35 = vld [vmem:[%s11148_s2 + $0x30] sm:$0xff]  ;;  %p9000_p10 = scmp.ne.s32.totalorder %s11103_s26, %s8999_s11  ;;  %s9003_s13 = sshll.u32 %s9088_s9, 4  ;;  %s9004_s13 = int_to_ptr.vmem [resolvable:$false] %s9003_s13 }
  0x97   : > { %v577_v21 = vld [vmem:[#allocation5] sm:$0xff]  ;;  %v594_v25 = vld [vmem:[#allocation5 + $0x88] sm:$0xff]  ;;  %v377_v39 = vld [vmem:[%s11147_s1 + $0x10] sm:$0xff]  ;;  %s9005_s21 = scalar_lea.vmem %s9004_s13, 2048  ;;  %p9006_p12 = scmp.lt.s32.totalorder %s11103_s26, %s9004_s13 }
  0x98   : > { %v593_v22 = vld [vmem:[#allocation5 + $0x80] sm:$0xff]  ;;  %v7927_v29 = vcombine.low %v578_v23, %v594_v25  ;;  %v7928_v30 = vcombine.high %v578_v23, %v594_v25  ;;  %v610_v31 = vld [vmem:[#allocation5 + $0x108] sm:$0xff]  ;;  %v390_v44 = vld [vmem:[%s11148_s2 + $0x38] sm:$0xff]  ;;  %p9001_p3 = pnand %p9000_p10, %p9276_p5  ;;  %p9007_p2 = scmp.lt.s32.totalorder %s9005_s21, %s8999_s11 }
  0x99   : > { %8535 = vmatpush1.bf16.msra.mxu0 %v8534_v13  ;;  %398 = vperm.xlu0 %8878, %v384_v15   ;;  %v7926_v24 = vcombine.high %v577_v21, %v593_v22  ;;  %v7925_v26 = vcombine.low %v577_v21, %v593_v22  ;;  %v609_v27 = vld [vmem:[#allocation5 + $0x100] sm:$0xff]  ;;  %v626_v32 = vld [vmem:[#allocation5 + $0x188] sm:$0xff]  ;;  %v378_v50 = vld [vmem:[%s11147_s1 + $0x18] sm:$0xff] }
  0x9a   : > { %v625_v28 = vld [vmem:[#allocation5 + $0x180] sm:$0xff]  ;;  %408 = vperm.xlu1 %8879, %v386_v20   ;;  %v388_v33 = vld [vmem:[%s11148_s2 + $0x28] sm:$0xff]  ;;  %3722 = vmatprep.subr.bf16.mxu0 %v7928_v30  ;;  %v7960_v36 = vcombine.high %v610_v31, %v626_v32  ;;  %v7959_v43 = vcombine.low %v610_v31, %v626_v32  ;;  %v4955_v57 = vld [vmem:[%s11151_s5 + $0x10] sm:$0xff]  ;;  %p9002_p7 = pneg %p9001_p3  ;;  %p9008_p1 = por %p9007_p2, %p9006_p12 }
  0x9b   : > { %3649 = vmatprep.subr.bf16.mxu1 %v7926_v24  ;;  %v7958_v34 = vcombine.high %v609_v27, %v625_v28  ;;  %v641_v37 = vld [vmem:[#allocation5 + $0x200] sm:$0xff]  ;;  %v7957_v40 = vcombine.low %v609_v27, %v625_v28  ;;  %v642_v41 = vld [vmem:[#allocation5 + $0x208] sm:$0xff]  ;;  %v4956_v4 = vld [vmem:[%s11151_s5 + $0x18] sm:$0xff] }
  0x9c   : > { %7917 = vmatmul.mubr.msk.f32.vlgmr.msra.gmra.mrb[0].mxu0 %vm431_vm0, %v375_v16  ;;  %v657_v38 = vld [vmem:[#allocation5 + $0x280] sm:$0xff]  ;;  %3650 = vmatpush1.bf16.msra.mxu1 %v7925_v26  ;;  %v658_v42 = vld [vmem:[#allocation5 + $0x288] sm:$0xff]  ;;  %v4959_v17 = vld [vmem:[%s11151_s5 + $0x30] sm:$0xff]  ;;  %p9009_p4 = pnand %p9008_p1, %p9002_p7 }
  0x9d   : > { %526 = vmatprep.mubr.f32.mxu0 %v11160_v0  ;;  %413 = vperm.xlu0 %8878, %v387_v19   ;;  %v7990_v45 = vcombine.high %v641_v37, %v657_v38  ;;  %v4953_v46 = vld [vmem:[%s11151_s5] sm:$0xff]  ;;  %v7992_v47 = vcombine.high %v642_v41, %v658_v42  ;;  %v7989_v51 = vcombine.low %v641_v37, %v657_v38  ;;  %v674_v52 = vld [vmem:[#allocation5 + $0x308] sm:$0xff]  ;;  %v381_v21 = vld [vmem:[%s11147_s1 + $0x30] sm:$0xff] }
  0x9e   : > { %418 = vperm.xlu1 %8879, %v388_v33   ;;  %3723 = vmatpush1.bf16.msra.mxu0 %v7927_v29  ;;  %v673_v48 = vld [vmem:[#allocation5 + $0x300] sm:$0xff]  ;;  %v690_v53 = vld [vmem:[#allocation5 + $0x388] sm:$0xff]  ;;  %v7991_v54 = vcombine.low %v642_v41, %v658_v42  ;;  %v4960_v26 = vld [vmem:[%s11151_s5 + $0x38] sm:$0xff] }
  0x9f   : > { %3651 = vmatprep.subr.bf16.mxu1 %v7958_v34  ;;  %3724 = vmatprep.subr.bf16.mxu0 %v7960_v36  ;;  %v689_v49 = vld [vmem:[#allocation5 + $0x380] sm:$0xff]  ;;  %v4954_v55 = vld [vmem:[%s11151_s5 + $0x8] sm:$0xff]  ;;  %v8024_v58 = vcombine.high %v674_v52, %v690_v53  ;;  %v8023_v5 = vcombine.low %v674_v52, %v690_v53  ;;  %v382_v34 = vld [vmem:[%s11147_s1 + $0x38] sm:$0xff] }
  0xa0   : > { %7918 = vmatmul.mubr.msk.f32.gmra.mrb[2].mxu0 %vm431_vm0, %v376_v18  ;;  %3652 = vmatpush1.bf16.msra.mxu1 %v7957_v40  ;;  %v8022_v56 = vcombine.high %v673_v48, %v689_v49  ;;  %v705_v59 = vld [vmem:[#allocation5 + $0x400] sm:$0xff]  ;;  %v8021_v62 = vcombine.low %v673_v48, %v689_v49  ;;  %v706_v63 = vld [vmem:[#allocation5 + $0x408] sm:$0xff] }
  0xa1   : > { %532 = vmatprep.mubr.f32.mxu0 %v11160_v0  ;;  %423 = vperm.xlu0 %8878, %v389_v35   ;;  %v721_v60 = vld [vmem:[#allocation5 + $0x480] sm:$0xff]  ;;  %v722_v2 = vld [vmem:[#allocation5 + $0x488] sm:$0xff] }
  0xa2   : > { %428 = vperm.xlu1 %8879, %v390_v44   ;;  %3725 = vmatpush1.bf16.msra.mxu0 %v7959_v43  ;;  %v379_v61 = vld [vmem:[%s11147_s1 + $0x20] sm:$0xff]  ;;  %v380_v7 = vld [vmem:[%s11147_s1 + $0x28] sm:$0xff]  ;;  %v8054_v8 = vcombine.high %v705_v59, %v721_v60  ;;  %v8056_v12 = vcombine.high %v706_v63, %v722_v2  ;;  %v8053_v13 = vcombine.low %v705_v59, %v721_v60 }
  0xa3   : > { %3653 = vmatprep.subr.bf16.mxu1 %v7990_v45  ;;  %3726 = vmatprep.subr.bf16.mxu0 %v7992_v47  ;;  %v4957_v3 = vld [vmem:[%s11151_s5 + $0x20] sm:$0xff]  ;;  %v738_v10 = vld [vmem:[#allocation5 + $0x508] sm:$0xff]  ;;  %v8055_v14 = vcombine.low %v706_v63, %v722_v2 }
  0xa4   : > { %7919 = vmatmul.mubr.msk.f32.gmra.mrb[4].mxu0 %vm431_vm0, %v377_v39  ;;  %3654 = vmatpush1.bf16.msra.mxu1 %v7989_v51  ;;  %v737_v6 = vld [vmem:[#allocation5 + $0x500] sm:$0xff]  ;;  %v754_v11 = vld [vmem:[#allocation5 + $0x588] sm:$0xff] }
  0xa5   : > { %538 = vmatprep.mubr.f32.mxu0 %v11160_v0  ;;  %4963 = vperm.xlu0 %8878, %v4953_v46   ;;  %v753_v9 = vld [vmem:[#allocation5 + $0x580] sm:$0xff]  ;;  %v4958_v15 = vld [vmem:[%s11151_s5 + $0x28] sm:$0xff]  ;;  %v8088_v18 = vcombine.high %v738_v10, %v754_v11  ;;  %v8087_v25 = vcombine.low %v738_v10, %v754_v11 }
  0xa6   : > { %4968 = vperm.xlu1 %8879, %v4954_v55   ;;  %3727 = vmatpush1.bf16.msra.mxu0 %v7991_v54  ;;  %v8086_v16 = vcombine.high %v737_v6, %v753_v9  ;;  %v769_v19 = vld [vmem:[#allocation5 + $0x600] sm:$0xff]  ;;  %v8085_v22 = vcombine.low %v737_v6, %v753_v9  ;;  %v770_v23 = vld [vmem:[#allocation5 + $0x608] sm:$0xff] }
  0xa7   : > { %3655 = vmatprep.subr.bf16.mxu1 %v8022_v56  ;;  %3728 = vmatprep.subr.bf16.mxu0 %v8024_v58  ;;  %v785_v20 = vld [vmem:[#allocation5 + $0x680] sm:$0xff]  ;;  %v786_v24 = vld [vmem:[#allocation5 + $0x688] sm:$0xff] }
  0xa8   : > { %7920 = vmatmul.mubr.msk.f32.gmra.mrb[6].mxu0 %vm431_vm0, %v378_v50  ;;  %3656 = vmatpush1.bf16.msra.mxu1 %v8021_v62  ;;  %v8118_v27 = vcombine.high %v769_v19, %v785_v20  ;;  %v801_v28 = vld [vmem:[#allocation5 + $0x700] sm:$0xff]  ;;  %v8120_v31 = vcombine.high %v770_v23, %v786_v24  ;;  %v802_v32 = vld [vmem:[#allocation5 + $0x708] sm:$0xff]  ;;  %v8117_v35 = vcombine.low %v769_v19, %v785_v20 }
  0xa9   : > { %544 = vmatprep.mubr.f32.mxu0 %v11160_v0  ;;  %4973 = vperm.xlu0 %8878, %v4955_v57   ;;  %v817_v29 = vld [vmem:[#allocation5 + $0x780] sm:$0xff]  ;;  %v818_v33 = vld [vmem:[#allocation5 + $0x788] sm:$0xff]  ;;  %v8119_v36 = vcombine.low %v770_v23, %v786_v24 }
  0xaa   : > { %4978 = vperm.xlu1 %8879, %v4956_v4   ;;  %3729 = vmatpush1.bf16.msra.mxu0 %v8023_v5  ;;  %v6459_v30 = vld [vmem:[%s11153_s7] sm:$0x3]  ;;  %v8150_v37 = vcombine.high %v801_v28, %v817_v29  ;;  %v8152_v38 = vcombine.high %v802_v32, %v818_v33  ;;  %v834_v41 = vld [vmem:[#allocation5 + $0x808] sm:$0xff]  ;;  %v8149_v43 = vcombine.low %v801_v28, %v817_v29 }
  0xab   : > { %3657 = vmatprep.subr.bf16.mxu1 %v8054_v8  ;;  %3730 = vmatprep.subr.bf16.mxu0 %v8056_v12  ;;  %v833_v39 = vld [vmem:[#allocation5 + $0x800] sm:$0xff]  ;;  %v850_v42 = vld [vmem:[#allocation5 + $0x888] sm:$0xff]  ;;  %v8151_v44 = vcombine.low %v802_v32, %v818_v33 }
  0xac   : > { %7921 = vmatmul.mubr.msk.f32.gmra.mrb[8].mxu0 %vm431_vm0, %v379_v61  ;;  %3658 = vmatpush1.bf16.msra.mxu1 %v8053_v13  ;;  %v849_v40 = vld [vmem:[#allocation5 + $0x880] sm:$0xff]  ;;  %v8184_v46 = vcombine.high %v834_v41, %v850_v42  ;;  %v866_v49 = vld [vmem:[#allocation5 + $0x908] sm:$0xff]  ;;  %v8183_v52 = vcombine.low %v834_v41, %v850_v42 }
  0xad   : > { %550 = vmatprep.mubr.f32.mxu0 %v11160_v0  ;;  %4983 = vperm.xlu0 %8878, %v4957_v3   ;;  %v8182_v45 = vcombine.high %v833_v39, %v849_v40  ;;  %v865_v47 = vld [vmem:[#allocation5 + $0x900] sm:$0xff]  ;;  %v882_v50 = vld [vmem:[#allocation5 + $0x988] sm:$0xff]  ;;  %v8181_v51 = vcombine.low %v833_v39, %v849_v40 }
  0xae   : > { %4988 = vperm.xlu1 %8879, %v4958_v15   ;;  %3731 = vmatpush1.bf16.msra.mxu0 %v8055_v14  ;;  %v881_v48 = vld [vmem:[#allocation5 + $0x980] sm:$0xff]  ;;  %v8216_v54 = vcombine.high %v866_v49, %v882_v50  ;;  %v898_v57 = vld [vmem:[#allocation5 + $0xa08] sm:$0xff]  ;;  %v8215_v60 = vcombine.low %v866_v49, %v882_v50 }
  0xaf   : > { %3659 = vmatprep.subr.bf16.mxu1 %v8086_v16  ;;  %3732 = vmatprep.subr.bf16.mxu0 %v8088_v18  ;;  %v8214_v53 = vcombine.high %v865_v47, %v881_v48  ;;  %v897_v55 = vld [vmem:[#allocation5 + $0xa00] sm:$0xff]  ;;  %v914_v58 = vld [vmem:[#allocation5 + $0xa88] sm:$0xff]  ;;  %v8213_v59 = vcombine.low %v865_v47, %v881_v48  ;;  %v596_v47 = vld [vmem:[#allocation5 + $0x98] sm:$0xff] }
  0xb0   : > { %7922 = vmatmul.mubr.msk.f32.gmra.mrb[10].mxu0 %vm431_vm0, %v380_v7  ;;  %3660 = vmatpush1.bf16.msra.mxu1 %v8085_v22  ;;  %v913_v56 = vld [vmem:[#allocation5 + $0xa80] sm:$0xff]  ;;  %v8248_v62 = vcombine.high %v898_v57, %v914_v58  ;;  %v930_v3 = vld [vmem:[#allocation5 + $0xb08] sm:$0xff]  ;;  %v8247_v6 = vcombine.low %v898_v57, %v914_v58 }
  0xb1   : > { %556 = vmatprep.mubr.f32.mxu0 %v11160_v0  ;;  %4993 = vperm.xlu0 %8878, %v4959_v17   ;;  %v8246_v61 = vcombine.high %v897_v55, %v913_v56  ;;  %v929_v63 = vld [vmem:[#allocation5 + $0xb00] sm:$0xff]  ;;  %v946_v4 = vld [vmem:[#allocation5 + $0xb88] sm:$0xff]  ;;  %v8245_v5 = vcombine.low %v897_v55, %v913_v56 }
  0xb2   : > { %4998 = vperm.xlu1 %8879, %v4960_v26   ;;  %3733 = vmatpush1.bf16.msra.mxu0 %v8087_v25  ;;  %v945_v2 = vld [vmem:[#allocation5 + $0xb80] sm:$0xff]  ;;  %v8280_v8 = vcombine.high %v930_v3, %v946_v4  ;;  %v962_v11 = vld [vmem:[#allocation5 + $0xc08] sm:$0xff]  ;;  %v8279_v14 = vcombine.low %v930_v3, %v946_v4  ;;  %v628_v3 = vld [vmem:[#allocation5 + $0x198] sm:$0xff] }
  0xb3   : > { %3661 = vmatprep.subr.bf16.mxu1 %v8118_v27  ;;  %3734 = vmatprep.subr.bf16.mxu0 %v8120_v31  ;;  %v8278_v7 = vcombine.high %v929_v63, %v945_v2  ;;  %v961_v9 = vld [vmem:[#allocation5 + $0xc00] sm:$0xff]  ;;  %v978_v12 = vld [vmem:[#allocation5 + $0xc88] sm:$0xff]  ;;  %v8277_v13 = vcombine.low %v929_v63, %v945_v2  ;;  %v627_v63 = vld [vmem:[#allocation5 + $0x190] sm:$0xff] }
  0xb4   : > { %7923 = vmatmul.mubr.msk.f32.gmra.mrb[12].mxu0 %vm431_vm0, %v381_v21  ;;  %3662 = vmatpush1.bf16.msra.mxu1 %v8117_v35  ;;  %v977_v10 = vld [vmem:[#allocation5 + $0xc80] sm:$0xff]  ;;  %v8312_v16 = vcombine.high %v962_v11, %v978_v12  ;;  %v994_v19 = vld [vmem:[#allocation5 + $0xd08] sm:$0xff]  ;;  %v8311_v22 = vcombine.low %v962_v11, %v978_v12  ;;  %v612_v2 = vld [vmem:[#allocation5 + $0x118] sm:$0xff] }
  0xb5   : > { %562 = vmatprep.mubr.f32.mxu0 %v11160_v0  ;;  %6462 = vperm.xlu0 %8878, %v6459_v30   ;;  %v8310_v15 = vcombine.high %v961_v9, %v977_v10  ;;  %v993_v17 = vld [vmem:[#allocation5 + $0xd00] sm:$0xff]  ;;  %v1010_v20 = vld [vmem:[#allocation5 + $0xd88] sm:$0xff]  ;;  %v8309_v21 = vcombine.low %v961_v9, %v977_v10  ;;  %v7964_v9 = vcombine.high %v612_v2, %v628_v3  ;;  %v643_v10 = vld [vmem:[#allocation5 + $0x210] sm:$0xff] }
  0xb6   : > { %3735 = vmatpush1.bf16.msra.mxu0 %v8119_v36  ;;  %3663 = vmatprep.subr.bf16.mxu1 %v8150_v37  ;;  %v1009_v18 = vld [vmem:[#allocation5 + $0xd80] sm:$0xff]  ;;  %v8344_v24 = vcombine.high %v994_v19, %v1010_v20  ;;  %v8343_v26 = vcombine.low %v994_v19, %v1010_v20  ;;  %v1026_v29 = vld [vmem:[#allocation5 + $0xe08] sm:$0xff]  ;;  %v659_v12 = vld [vmem:[#allocation5 + $0x290] sm:$0xff]  ;;  %v7963_v19 = vcombine.low %v612_v2, %v628_v3 }
  0xb7   : > { %3736 = vmatprep.subr.bf16.mxu0 %v8152_v38  ;;  %v8342_v23 = vcombine.high %v993_v17, %v1009_v18  ;;  %v8341_v25 = vcombine.low %v993_v17, %v1009_v18  ;;  %v1025_v27 = vld [vmem:[#allocation5 + $0xe00] sm:$0xff]  ;;  %v1042_v31 = vld [vmem:[#allocation5 + $0xe88] sm:$0xff]  ;;  %v771_v3 = vld [vmem:[#allocation5 + $0x610] sm:$0xff] }
  0xb8   : > { %7924 = vmatmul.mubr.msk.f32.gmra.mrb[14].mxu0 %vm431_vm0, %v382_v34  ;;  %3664 = vmatpush1.bf16.msra.mxu1 %v8149_v43  ;;  %v1041_v28 = vld [vmem:[#allocation5 + $0xe80] sm:$0xff]  ;;  %v8375_v32 = vcombine.low %v1026_v29, %v1042_v31  ;;  %v8376_v33 = vcombine.high %v1026_v29, %v1042_v31  ;;  %v1058_v37 = vld [vmem:[#allocation5 + $0xf08] sm:$0xff]  ;;  %v579_v43 = vld [vmem:[#allocation5 + $0x10] sm:$0xff] }
  0xb9   : > { %3665 = vmatprep.subr.bf16.mxu1 %v8182_v45  ;;  %v8374_v30 = vcombine.high %v1025_v27, %v1041_v28  ;;  %v8373_v34 = vcombine.low %v1025_v27, %v1041_v28  ;;  %v1057_v35 = vld [vmem:[#allocation5 + $0xf00] sm:$0xff]  ;;  %v1074_v39 = vld [vmem:[#allocation5 + $0xf88] sm:$0xff]  ;;  %v580_v45 = vld [vmem:[#allocation5 + $0x18] sm:$0xff] }
  0xba   : > { %3737 = vmatpush1.bf16.msra.mxu0 %v8151_v44  ;;  %v1073_v36 = vld [vmem:[#allocation5 + $0xf80] sm:$0xff]  ;;  %v8407_v40 = vcombine.low %v1058_v37, %v1074_v39  ;;  %v8408_v41 = vcombine.high %v1058_v37, %v1074_v39  ;;  %v595_v44 = vld [vmem:[#allocation5 + $0x90] sm:$0xff]  ;;  %v7931_v49 = vcombine.low %v580_v45, %v596_v47  ;;  %v7932_v50 = vcombine.high %v580_v45, %v596_v47  ;;  %v676_v27 = vld [vmem:[#allocation5 + $0x318] sm:$0xff] }
  0xbb   : > { %3738 = vmatprep.subr.bf16.mxu0 %v8184_v46  ;;  %v8406_v38 = vcombine.high %v1057_v35, %v1073_v36  ;;  %v8405_v42 = vcombine.low %v1057_v35, %v1073_v36  ;;  %v7930_v46 = vcombine.high %v579_v43, %v595_v44  ;;  %v7929_v48 = vcombine.low %v579_v43, %v595_v44  ;;  %v692_v28 = vld [vmem:[#allocation5 + $0x398] sm:$0xff]  ;;  %v707_v37 = vld [vmem:[#allocation5 + $0x410] sm:$0xff]  ;;  %v970_v0 = vld [vmem:[#allocation5 + $0xc48] sm:$0xff] }
  0xbc   : > { %3666 = vmatpush1.bf16.msra.mxu1 %v8181_v51  ;;  %v8028_v36 = vcombine.high %v676_v27, %v692_v28  ;;  %v8027_v45 = vcombine.low %v676_v27, %v692_v28  ;;  %v986_v1 = vld [vmem:[#allocation5 + $0xcc8] sm:$0xff] }
  0xbd   : > { %3667 = vmatprep.subr.bf16.mxu1 %v8214_v53 }
  0xbe   : > { %3739 = vmatpush1.bf16.msra.mxu0 %v8183_v52 }
  0xbf   : > { %3740 = vmatprep.subr.bf16.mxu0 %v8216_v54 }
  0xc0   : > { %3668 = vmatpush1.bf16.msra.mxu1 %v8213_v59 }
  0xc1   : > { %3669 = vmatprep.subr.bf16.mxu1 %v8246_v61 }
  0xc2   : > { %3741 = vmatpush1.bf16.msra.mxu0 %v8215_v60  ;;  %v611_v60 = vld [vmem:[#allocation5 + $0x110] sm:$0xff] }
  0xc3   : > { %3742 = vmatprep.subr.bf16.mxu0 %v8248_v62  ;;  %v7961_v18 = vcombine.low %v611_v60, %v627_v63 }
  0xc4   : > { %3670 = vmatpush1.bf16.msra.mxu1 %v8245_v5 }
  0xc5   : > { %3671 = vmatprep.subr.bf16.mxu1 %v8278_v7 }
  0xc6   : > { %3743 = vmatpush1.bf16.msra.mxu0 %v8247_v6 }
  0xc7   : > { %3744 = vmatprep.subr.bf16.mxu0 %v8280_v8  ;;  %v7962_v8 = vcombine.high %v611_v60, %v627_v63 }
  0xc8   : > { %3672 = vmatpush1.bf16.msra.mxu1 %v8277_v13  ;;  %v644_v13 = vld [vmem:[#allocation5 + $0x218] sm:$0xff] }
  0xc9   : > { %3673 = vmatprep.subr.bf16.mxu1 %v8310_v15 }
  0xca   : > { %3745 = vmatpush1.bf16.msra.mxu0 %v8279_v14  ;;  %v660_v14 = vld [vmem:[#allocation5 + $0x298] sm:$0xff] }
  0xcb   : > { %3746 = vmatprep.subr.bf16.mxu0 %v8312_v16 }
  0xcc   : > { %3674 = vmatpush1.bf16.msra.mxu1 %v8309_v21 }
  0xcd   : > { %3675 = vmatprep.subr.bf16.mxu1 %v8342_v23  ;;  %v7996_v23 = vcombine.high %v644_v13, %v660_v14 }
  0xce   : > { %3747 = vmatpush1.bf16.msra.mxu0 %v8311_v22  ;;  %v7994_v22 = vcombine.high %v643_v10, %v659_v12 }
  0xcf   : > { %3748 = vmatprep.subr.bf16.mxu0 %v8344_v24  ;;  %v675_v24 = vld [vmem:[#allocation5 + $0x310] sm:$0xff] }
  0xd0   : > { %3676 = vmatpush1.bf16.msra.mxu1 %v8341_v25 }
  0xd1   : > { %3677 = vmatprep.subr.bf16.mxu1 %v8374_v30 }
  0xd2   : > { %3749 = vmatpush1.bf16.msra.mxu0 %v8343_v26  ;;  %v691_v26 = vld [vmem:[#allocation5 + $0x390] sm:$0xff] }
  0xd3   : > { %3750 = vmatprep.subr.bf16.mxu0 %v8376_v33  ;;  %v7995_v33 = vcombine.low %v644_v13, %v660_v14  ;;  %v8026_v35 = vcombine.high %v675_v24, %v691_v26  ;;  %v8025_v44 = vcombine.low %v675_v24, %v691_v26  ;;  %v804_v24 = vld [vmem:[#allocation5 + $0x718] sm:$0xff] }
  0xd4   : > { %3678 = vmatpush1.bf16.msra.mxu1 %v8373_v34 }
  0xd5   : > { %3679 = vmatprep.subr.bf16.mxu1 %v8406_v38  ;;  %v723_v38 = vld [vmem:[#allocation5 + $0x490] sm:$0xff] }
  0xd6   : > { %3751 = vmatpush1.bf16.msra.mxu0 %v8375_v32  ;;  %v7993_v32 = vcombine.low %v643_v10, %v659_v12  ;;  %v8057_v60 = vcombine.low %v707_v37, %v723_v38 }
  0xd7   : > { %3752 = vmatprep.subr.bf16.mxu0 %v8408_v41  ;;  %v724_v41 = vld [vmem:[#allocation5 + $0x498] sm:$0xff] }
  0xd8   : > { %3680 = vmatpush1.bf16.msra.mxu1 %v8405_v42 }
  0xd9   : > { %3795 = vmatprep.subr.bf16.mxu1 %v7930_v46  ;;  %v8058_v46 = vcombine.high %v707_v37, %v723_v38 }
  0xda   : > { %3753 = vmatpush1.bf16.msra.mxu0 %v8407_v40  ;;  %v708_v40 = vld [vmem:[#allocation5 + $0x418] sm:$0xff] }
  0xdb   : > { %3868 = vmatprep.subr.bf16.mxu0 %v7932_v50  ;;  %v8060_v50 = vcombine.high %v708_v40, %v724_v41 }
 0x114   : > { %v394_v51 = vpop.permute.xlu0 %393 }
 0x115   : > { %v404_v54 = vpop.permute.xlu1 %403 }
 0x118   : > { %v399_v55 = vpop.permute.xlu0 %398 }
 0x119   : > { %v409_v11 = vpop.permute.xlu1 %408 }
 0x11c   : > { %v414_v42 = vpop.permute.xlu0 %413 }
 0x11d   : > { %v419_v39 = vpop.permute.xlu1 %418 }
 0x121   : > { %v429_v10 = vpop.permute.xlu1 %428 }
 0x16f   : > { %v522_v52 = vpop.f32.mrb[0].mxu0 }
 0x170   : > { %v524_v53 = vpop.f32.mrb[1].mxu0  ;;  %v523_v57 = vadd.f32 %v522_v52, %v394_v51 }
 0x171   : > { %v525_v61 = vadd.f32 %v524_v53, %v394_v51  ;;  %v739_v51 = vld [vmem:[#allocation5 + $0x510] sm:$0xff] }
 0x173   : > { %v528_v56 = vpop.f32.mrb[2].mxu0 }
 0x174   : > { %v529_v58 = vadd.f32 %v528_v56, %v399_v55  ;;  %v530_v59 = vpop.f32.mrb[3].mxu0  ;;  %v756_v56 = vld [vmem:[#allocation5 + $0x598] sm:$0xff] }
 0x175   : > { %v531_v62 = vadd.f32 %v530_v59, %v399_v55  ;;  %v740_v55 = vld [vmem:[#allocation5 + $0x518] sm:$0xff] }
 0x176   : > { %v9435_v4 = vpack.c.bf16 %v529_v58, %v523_v57  ;;  %v8092_v2 = vcombine.high %v740_v55, %v756_v56  ;;  %v8091_v13 = vcombine.low %v740_v55, %v756_v56 }
 0x177   : > { %v9437_v5 = vpack.c.bf16 %v531_v62, %v525_v61  ;;  %v534_v6 = vpop.f32.mrb[4].mxu0  ;;  %v8059_v61 = vcombine.low %v708_v40, %v724_v41  ;;  %v867_v41 = vld [vmem:[#allocation5 + $0x910] sm:$0xff] }
 0x178   : > { %v536_v7 = vpop.f32.mrb[5].mxu0  ;;  %v535_v15 = vadd.f32 %v534_v6, %v404_v54  ;;  %v787_v6 = vld [vmem:[#allocation5 + $0x690] sm:$0xff] }
 0x179   : > { %3681 = vmatprep.mubr.bf16.mxu1 %v9437_v5  ;;  %3754 = vmatprep.mubr.bf16.mxu0 %v9437_v5  ;;  %v537_v16 = vadd.f32 %v536_v7, %v404_v54  ;;  %v755_v54 = vld [vmem:[#allocation5 + $0x590] sm:$0xff]  ;;  %v772_v7 = vld [vmem:[#allocation5 + $0x618] sm:$0xff]  ;;  %v8122_v14 = vcombine.high %v771_v3, %v787_v6  ;;  %v8121_v27 = vcombine.low %v771_v3, %v787_v6 }
 0x17a   : > { %3682 = vmatmul.mubr.bf16.vlgmr.msra.gmra.mrb[0].mxu1 %v9435_v4  ;;  %3755 = vmatmul.mubr.bf16.vlgmr.msra.gmra.mrb[16].mxu0 %v9435_v4  ;;  %v8090_v63 = vcombine.high %v739_v51, %v755_v54  ;;  %v8089_v12 = vcombine.low %v739_v51, %v755_v54  ;;  %v900_v51 = vld [vmem:[#allocation5 + $0xa18] sm:$0xff] }
 0x17b   : > { %3796 = vmatpush1.bf16.msra.mxu1 %v7929_v48  ;;  %3869 = vmatpush1.bf16.msra.mxu0 %v7931_v49  ;;  %v540_v17 = vpop.f32.mrb[6].mxu0 }
 0x17c   : > { %v541_v20 = vadd.f32 %v540_v17, %v409_v11  ;;  %v542_v21 = vpop.f32.mrb[7].mxu0  ;;  %3797 = vmatprep.subr.bf16.mxu1 %v7962_v8  ;;  %3870 = vmatprep.subr.bf16.mxu0 %v7964_v9  ;;  %v788_v8 = vld [vmem:[#allocation5 + $0x698] sm:$0xff]  ;;  %v424_v9 = vpop.permute.xlu0 %423 }
 0x17d   : > { %v543_v25 = vadd.f32 %v542_v21, %v409_v11  ;;  %v803_v21 = vld [vmem:[#allocation5 + $0x710] sm:$0xff]  ;;  %v8123_v28 = vcombine.low %v772_v7, %v788_v8 }
 0x17e   : > { %v9443_v29 = vpack.c.bf16 %v541_v20, %v535_v15 }
 0x17f   : > { %v9445_v30 = vpack.c.bf16 %v543_v25, %v537_v16  ;;  %3798 = vmatpush1.bf16.msra.mxu1 %v7961_v18  ;;  %3871 = vmatpush1.bf16.msra.mxu0 %v7963_v19  ;;  %v546_v31 = vpop.f32.mrb[8].mxu0  ;;  %v8124_v18 = vcombine.high %v772_v7, %v788_v8  ;;  %v820_v25 = vld [vmem:[#allocation5 + $0x798] sm:$0xff]  ;;  %v963_v7 = vld [vmem:[#allocation5 + $0xc10] sm:$0xff] }
 0x180   : > { %v548_v34 = vpop.f32.mrb[9].mxu0  ;;  %3799 = vmatprep.subr.bf16.mxu1 %v7994_v22  ;;  %3872 = vmatprep.subr.bf16.mxu0 %v7996_v23  ;;  %v547_v47 = vadd.f32 %v546_v31, %v414_v42  ;;  %v819_v23 = vld [vmem:[#allocation5 + $0x790] sm:$0xff]  ;;  %v8155_v38 = vcombine.low %v804_v24, %v820_v25 }
 0x181   : > { %3691 = vmatprep.mubr.bf16.mxu1 %v9445_v30  ;;  %3764 = vmatprep.mubr.bf16.mxu0 %v9445_v30  ;;  %v549_v52 = vadd.f32 %v548_v34, %v414_v42  ;;  %v835_v31 = vld [vmem:[#allocation5 + $0x810] sm:$0xff]  ;;  %v8153_v37 = vcombine.low %v803_v21, %v819_v23 }
 0x182   : > { %3692 = vmatmul.mubr.bf16.gmra.mrb[4].mxu1 %v9443_v29  ;;  %3765 = vmatmul.mubr.bf16.gmra.mrb[20].mxu0 %v9443_v29  ;;  %v851_v34 = vld [vmem:[#allocation5 + $0x890] sm:$0xff] }
 0x183   : > { %3800 = vmatpush1.bf16.msra.mxu1 %v7993_v32  ;;  %3873 = vmatpush1.bf16.msra.mxu0 %v7995_v33  ;;  %v552_v43 = vpop.f32.mrb[10].mxu0  ;;  %v8154_v32 = vcombine.high %v803_v21, %v819_v23  ;;  %v8156_v33 = vcombine.high %v804_v24, %v820_v25  ;;  %v883_v42 = vld [vmem:[#allocation5 + $0x990] sm:$0xff] }
 0x184   : > { %v553_v48 = vadd.f32 %v552_v43, %v419_v39  ;;  %v554_v49 = vpop.f32.mrb[11].mxu0  ;;  %3801 = vmatprep.subr.bf16.mxu1 %v8026_v35  ;;  %3874 = vmatprep.subr.bf16.mxu0 %v8028_v36  ;;  %v836_v35 = vld [vmem:[#allocation5 + $0x818] sm:$0xff]  ;;  %v979_v8 = vld [vmem:[#allocation5 + $0xc90] sm:$0xff] }
 0x185   : > { %v555_v53 = vadd.f32 %v554_v49, %v419_v39  ;;  %v852_v36 = vld [vmem:[#allocation5 + $0x898] sm:$0xff]  ;;  %v8186_v39 = vcombine.high %v835_v31, %v851_v34  ;;  %v899_v49 = vld [vmem:[#allocation5 + $0xa10] sm:$0xff] }
 0x186   : > { %v9451_v57 = vpack.c.bf16 %v553_v48, %v547_v47  ;;  %v8188_v40 = vcombine.high %v836_v35, %v852_v36  ;;  %v868_v43 = vld [vmem:[#allocation5 + $0x918] sm:$0xff]  ;;  %v8218_v47 = vcombine.high %v867_v41, %v883_v42  ;;  %v1027_v24 = vld [vmem:[#allocation5 + $0xe10] sm:$0xff] }
 0x187   : > { %v9453_v58 = vpack.c.bf16 %v555_v53, %v549_v52  ;;  %3802 = vmatpush1.bf16.msra.mxu1 %v8025_v44  ;;  %3875 = vmatpush1.bf16.msra.mxu0 %v8027_v45  ;;  %v558_v59 = vpop.f32.mrb[12].mxu0  ;;  %v884_v44 = vld [vmem:[#allocation5 + $0x998] sm:$0xff]  ;;  %v8185_v45 = vcombine.low %v835_v31, %v851_v34  ;;  %v8217_v53 = vcombine.low %v867_v41, %v883_v42  ;;  %v1043_v25 = vld [vmem:[#allocation5 + $0xe90] sm:$0xff] }
 0x188   : > { %v560_v62 = vpop.f32.mrb[13].mxu0  ;;  %3803 = vmatprep.subr.bf16.mxu1 %v8058_v46  ;;  %3876 = vmatprep.subr.bf16.mxu0 %v8060_v50  ;;  %v559_v15 = vadd.f32 %v558_v59, %v424_v9  ;;  %v8187_v46 = vcombine.low %v836_v35, %v852_v36  ;;  %v8220_v48 = vcombine.high %v868_v43, %v884_v44  ;;  %v915_v50 = vld [vmem:[#allocation5 + $0xa90] sm:$0xff]  ;;  %v916_v52 = vld [vmem:[#allocation5 + $0xa98] sm:$0xff] }
 0x189   : > { %3701 = vmatprep.mubr.bf16.mxu1 %v9453_v58  ;;  %3774 = vmatprep.mubr.bf16.mxu0 %v9453_v58  ;;  %v561_v19 = vadd.f32 %v560_v62, %v424_v9  ;;  %v8219_v54 = vcombine.low %v868_v43, %v884_v44  ;;  %v8250_v55 = vcombine.high %v899_v49, %v915_v50  ;;  %v931_v59 = vld [vmem:[#allocation5 + $0xb10] sm:$0xff]  ;;  %v948_v62 = vld [vmem:[#allocation5 + $0xb98] sm:$0xff]  ;;  %v581_v43 = vld [vmem:[#allocation5 + $0x20] sm:$0xff] }
 0x18a   : > { %3702 = vmatmul.mubr.bf16.gmra.mrb[8].mxu1 %v9451_v57  ;;  %3775 = vmatmul.mubr.bf16.gmra.mrb[24].mxu0 %v9451_v57  ;;  %v8252_v56 = vcombine.high %v900_v51, %v916_v52  ;;  %v964_v9 = vld [vmem:[#allocation5 + $0xc18] sm:$0xff]  ;;  %v1059_v35 = vld [vmem:[#allocation5 + $0xf10] sm:$0xff]  ;;  %v597_v44 = vld [vmem:[#allocation5 + $0xa0] sm:$0xff] }
 0x18b   : > { %3804 = vmatpush1.bf16.msra.mxu1 %v8057_v60  ;;  %3877 = vmatpush1.bf16.msra.mxu0 %v8059_v61  ;;  %v564_v11 = vpop.f32.mrb[14].mxu0  ;;  %v947_v60 = vld [vmem:[#allocation5 + $0xb90] sm:$0xff]  ;;  %v932_v61 = vld [vmem:[#allocation5 + $0xb18] sm:$0xff] }
 0x18c   : > { %v565_v16 = vadd.f32 %v564_v11, %v429_v10  ;;  %v566_v17 = vpop.f32.mrb[15].mxu0  ;;  %3805 = vmatprep.subr.bf16.mxu1 %v8090_v63  ;;  %3878 = vmatprep.subr.bf16.mxu0 %v8092_v2  ;;  %v8249_v63 = vcombine.low %v899_v49, %v915_v50  ;;  %v8251_v2 = vcombine.low %v900_v51, %v916_v52  ;;  %v1075_v36 = vld [vmem:[#allocation5 + $0xf90] sm:$0xff]  ;;  %v613_v51 = vld [vmem:[#allocation5 + $0x120] sm:$0xff] }
 0x18d   : > { %v567_v20 = vadd.f32 %v566_v17, %v429_v10  ;;  %v8282_v3 = vcombine.high %v931_v59, %v947_v60  ;;  %v8284_v6 = vcombine.high %v932_v61, %v948_v62  ;;  %v980_v10 = vld [vmem:[#allocation5 + $0xc98] sm:$0xff]  ;;  %v8281_v11 = vcombine.low %v931_v59, %v947_v60  ;;  %v629_v52 = vld [vmem:[#allocation5 + $0x1a0] sm:$0xff] }
 0x18e   : > { %v9459_v22 = vpack.c.bf16 %v565_v16, %v559_v15  ;;  %v995_v15 = vld [vmem:[#allocation5 + $0xd10] sm:$0xff]  ;;  %v996_v17 = vld [vmem:[#allocation5 + $0xd18] sm:$0xff]  ;;  %v8410_v41 = vcombine.high %v1059_v35, %v1075_v36  ;;  %v7934_v49 = vcombine.high %v581_v43, %v597_v44  ;;  %v7966_v59 = vcombine.high %v613_v51, %v629_v52 }
 0x18f   : > { %v9461_v26 = vpack.c.bf16 %v567_v20, %v561_v19  ;;  %3806 = vmatpush1.bf16.msra.mxu1 %v8089_v12  ;;  %3879 = vmatpush1.bf16.msra.mxu0 %v8091_v13  ;;  %v8283_v12 = vcombine.low %v932_v61, %v948_v62  ;;  %v8314_v13 = vcombine.high %v963_v7, %v979_v8  ;;  %v1011_v16 = vld [vmem:[#allocation5 + $0xd90] sm:$0xff]  ;;  %v645_v61 = vld [vmem:[#allocation5 + $0x220] sm:$0xff] }
 0x190   : > { %3807 = vmatprep.subr.bf16.mxu1 %v8122_v14  ;;  %3880 = vmatprep.subr.bf16.mxu0 %v8124_v18  ;;  %v8316_v14 = vcombine.high %v964_v9, %v980_v10  ;;  %v1012_v18 = vld [vmem:[#allocation5 + $0xd98] sm:$0xff]  ;;  %v8313_v19 = vcombine.low %v963_v7, %v979_v8  ;;  %v8315_v20 = vcombine.low %v964_v9, %v980_v10  ;;  %v661_v62 = vld [vmem:[#allocation5 + $0x2a0] sm:$0xff] }
 0x191   : > { %3711 = vmatprep.mubr.bf16.mxu1 %v9461_v26  ;;  %3784 = vmatprep.mubr.bf16.mxu0 %v9461_v26  ;;  %v8346_v21 = vcombine.high %v995_v15, %v1011_v16  ;;  %v8348_v23 = vcombine.high %v996_v17, %v1012_v18  ;;  %v8345_v31 = vcombine.low %v995_v15, %v1011_v16  ;;  %v677_v9 = vld [vmem:[#allocation5 + $0x320] sm:$0xff] }
 0x192   : > { %3712 = vmatmul.mubr.bf16.gmra.mrb[12].mxu1 %v9459_v22  ;;  %3785 = vmatmul.mubr.bf16.gmra.mrb[28].mxu0 %v9459_v22  ;;  %v7998_v7 = vcombine.high %v645_v61, %v661_v62  ;;  %v693_v10 = vld [vmem:[#allocation5 + $0x3a0] sm:$0xff] }
 0x193   : > { %3808 = vmatpush1.bf16.msra.mxu1 %v8121_v27  ;;  %3881 = vmatpush1.bf16.msra.mxu0 %v8123_v28  ;;  %v1028_v27 = vld [vmem:[#allocation5 + $0xe18] sm:$0xff]  ;;  %v8030_v15 = vcombine.high %v677_v9, %v693_v10 }
 0x194   : > { %3827 = vmatprep.mubr.bf16.mxu1 %v9437_v5  ;;  %3900 = vmatprep.mubr.bf16.mxu0 %v9437_v5  ;;  %v1044_v28 = vld [vmem:[#allocation5 + $0xe98] sm:$0xff] }
 0x195   : > { %3809 = vmatprep.subr.bf16.mxu1 %v8154_v32  ;;  %3882 = vmatprep.subr.bf16.mxu0 %v8156_v33  ;;  %v8347_v32 = vcombine.low %v996_v17, %v1012_v18  ;;  %v8378_v33 = vcombine.high %v1027_v24, %v1043_v25  ;;  %v8380_v34 = vcombine.high %v1028_v27, %v1044_v28  ;;  %v709_v17 = vld [vmem:[#allocation5 + $0x420] sm:$0xff] }
 0x196   : > { %v725_v18 = vld [vmem:[#allocation5 + $0x4a0] sm:$0xff] }
 0x197   : > { %3810 = vmatpush1.bf16.msra.mxu1 %v8153_v37  ;;  %3883 = vmatpush1.bf16.msra.mxu0 %v8155_v38  ;;  %v1060_v37 = vld [vmem:[#allocation5 + $0xf18] sm:$0xff] }
 0x198   : > { %3811 = vmatprep.subr.bf16.mxu1 %v8186_v39  ;;  %3884 = vmatprep.subr.bf16.mxu0 %v8188_v40  ;;  %v1076_v38 = vld [vmem:[#allocation5 + $0xf98] sm:$0xff]  ;;  %v8377_v39 = vcombine.low %v1027_v24, %v1043_v25  ;;  %v8379_v40 = vcombine.low %v1028_v27, %v1044_v28  ;;  %v8062_v24 = vcombine.high %v709_v17, %v725_v18  ;;  %v741_v27 = vld [vmem:[#allocation5 + $0x520] sm:$0xff] }
 0x199   : > { %v8412_v42 = vcombine.high %v1060_v37, %v1076_v38  ;;  %v757_v28 = vld [vmem:[#allocation5 + $0x5a0] sm:$0xff] }
 0x19b   : > { %3812 = vmatpush1.bf16.msra.mxu1 %v8185_v45  ;;  %3885 = vmatpush1.bf16.msra.mxu0 %v8187_v46  ;;  %v582_v45 = vld [vmem:[#allocation5 + $0x28] sm:$0xff] }
 0x19c   : > { %3813 = vmatprep.subr.bf16.mxu1 %v8218_v47  ;;  %3886 = vmatprep.subr.bf16.mxu0 %v8220_v48  ;;  %v598_v46 = vld [vmem:[#allocation5 + $0xa8] sm:$0xff]  ;;  %v8409_v47 = vcombine.low %v1059_v35, %v1075_v36  ;;  %v8411_v48 = vcombine.low %v1060_v37, %v1076_v38  ;;  %v8094_v35 = vcombine.high %v741_v27, %v757_v28  ;;  %v773_v37 = vld [vmem:[#allocation5 + $0x620] sm:$0xff] }
 0x19d   : > { %v7936_v50 = vcombine.high %v582_v45, %v598_v46  ;;  %v789_v38 = vld [vmem:[#allocation5 + $0x6a0] sm:$0xff] }
 0x19f   : > { %3814 = vmatpush1.bf16.msra.mxu1 %v8217_v53  ;;  %3887 = vmatpush1.bf16.msra.mxu0 %v8219_v54  ;;  %v614_v53 = vld [vmem:[#allocation5 + $0x128] sm:$0xff] }
 0x1a0   : > { %3815 = vmatprep.subr.bf16.mxu1 %v8250_v55  ;;  %3888 = vmatprep.subr.bf16.mxu0 %v8252_v56  ;;  %v630_v54 = vld [vmem:[#allocation5 + $0x1a8] sm:$0xff]  ;;  %v7933_v55 = vcombine.low %v581_v43, %v597_v44  ;;  %v7935_v56 = vcombine.low %v582_v45, %v598_v46  ;;  %v8126_v43 = vcombine.high %v773_v37, %v789_v38  ;;  %v805_v45 = vld [vmem:[#allocation5 + $0x720] sm:$0xff] }
 0x1a1   : > { %v7968_v60 = vcombine.high %v614_v53, %v630_v54  ;;  %v821_v46 = vld [vmem:[#allocation5 + $0x7a0] sm:$0xff] }
 0x1a3   : > { %3816 = vmatpush1.bf16.msra.mxu1 %v8249_v63  ;;  %3889 = vmatpush1.bf16.msra.mxu0 %v8251_v2  ;;  %v646_v63 = vld [vmem:[#allocation5 + $0x228] sm:$0xff] }
 0x1a4   : > { %3817 = vmatprep.subr.bf16.mxu1 %v8282_v3  ;;  %3890 = vmatprep.subr.bf16.mxu0 %v8284_v6  ;;  %v662_v2 = vld [vmem:[#allocation5 + $0x2a8] sm:$0xff]  ;;  %v7965_v3 = vcombine.low %v613_v51, %v629_v52  ;;  %v7967_v6 = vcombine.low %v614_v53, %v630_v54  ;;  %v8158_v51 = vcombine.high %v805_v45, %v821_v46  ;;  %v837_v53 = vld [vmem:[#allocation5 + $0x820] sm:$0xff] }
 0x1a5   : > { %v8000_v8 = vcombine.high %v646_v63, %v662_v2  ;;  %v853_v54 = vld [vmem:[#allocation5 + $0x8a0] sm:$0xff] }
 0x1a7   : > { %3818 = vmatpush1.bf16.msra.mxu1 %v8281_v11  ;;  %3891 = vmatpush1.bf16.msra.mxu0 %v8283_v12  ;;  %v678_v11 = vld [vmem:[#allocation5 + $0x328] sm:$0xff] }
 0x1a8   : > { %3819 = vmatprep.subr.bf16.mxu1 %v8314_v13  ;;  %3892 = vmatprep.subr.bf16.mxu0 %v8316_v14  ;;  %v694_v12 = vld [vmem:[#allocation5 + $0x3a8] sm:$0xff]  ;;  %v7997_v13 = vcombine.low %v645_v61, %v661_v62  ;;  %v7999_v14 = vcombine.low %v646_v63, %v662_v2  ;;  %v8190_v61 = vcombine.high %v837_v53, %v853_v54  ;;  %v869_v63 = vld [vmem:[#allocation5 + $0x920] sm:$0xff] }
 0x1a9   : > { %v8032_v16 = vcombine.high %v678_v11, %v694_v12  ;;  %v885_v2 = vld [vmem:[#allocation5 + $0x9a0] sm:$0xff] }
 0x1ab   : > { %3820 = vmatpush1.bf16.msra.mxu1 %v8313_v19  ;;  %3893 = vmatpush1.bf16.msra.mxu0 %v8315_v20  ;;  %v710_v19 = vld [vmem:[#allocation5 + $0x428] sm:$0xff] }
 0x1ac   : > { %3821 = vmatprep.subr.bf16.mxu1 %v8346_v21  ;;  %3894 = vmatprep.subr.bf16.mxu0 %v8348_v23  ;;  %v726_v20 = vld [vmem:[#allocation5 + $0x4a8] sm:$0xff]  ;;  %v8029_v21 = vcombine.low %v677_v9, %v693_v10  ;;  %v8031_v23 = vcombine.low %v678_v11, %v694_v12  ;;  %v8222_v9 = vcombine.high %v869_v63, %v885_v2  ;;  %v901_v11 = vld [vmem:[#allocation5 + $0xa20] sm:$0xff] }
 0x1ad   : > { %v8064_v25 = vcombine.high %v710_v19, %v726_v20  ;;  %v917_v12 = vld [vmem:[#allocation5 + $0xaa0] sm:$0xff] }
 0x1af   : > { %3822 = vmatpush1.bf16.msra.mxu1 %v8345_v31  ;;  %3895 = vmatpush1.bf16.msra.mxu0 %v8347_v32  ;;  %v742_v31 = vld [vmem:[#allocation5 + $0x528] sm:$0xff] }
 0x1b0   : > { %3823 = vmatprep.subr.bf16.mxu1 %v8378_v33  ;;  %3896 = vmatprep.subr.bf16.mxu0 %v8380_v34  ;;  %v758_v32 = vld [vmem:[#allocation5 + $0x5a8] sm:$0xff]  ;;  %v8061_v33 = vcombine.low %v709_v17, %v725_v18  ;;  %v8063_v34 = vcombine.low %v710_v19, %v726_v20  ;;  %v8254_v17 = vcombine.high %v901_v11, %v917_v12  ;;  %v933_v19 = vld [vmem:[#allocation5 + $0xb20] sm:$0xff] }
 0x1b1   : > { %v8096_v36 = vcombine.high %v742_v31, %v758_v32  ;;  %v949_v20 = vld [vmem:[#allocation5 + $0xba0] sm:$0xff] }
 0x1b3   : > { %3824 = vmatpush1.bf16.msra.mxu1 %v8377_v39  ;;  %3897 = vmatpush1.bf16.msra.mxu0 %v8379_v40  ;;  %v774_v39 = vld [vmem:[#allocation5 + $0x628] sm:$0xff] }
 0x1b4   : > { %3825 = vmatprep.subr.bf16.mxu1 %v8410_v41  ;;  %3898 = vmatprep.subr.bf16.mxu0 %v8412_v42  ;;  %v790_v40 = vld [vmem:[#allocation5 + $0x6a8] sm:$0xff]  ;;  %v8093_v41 = vcombine.low %v741_v27, %v757_v28  ;;  %v8095_v42 = vcombine.low %v742_v31, %v758_v32  ;;  %v8286_v27 = vcombine.high %v933_v19, %v949_v20  ;;  %v965_v31 = vld [vmem:[#allocation5 + $0xc20] sm:$0xff] }
 0x1b5   : > { %v8128_v44 = vcombine.high %v774_v39, %v790_v40  ;;  %v981_v32 = vld [vmem:[#allocation5 + $0xca0] sm:$0xff] }
 0x1b7   : > { %3826 = vmatpush1.bf16.msra.mxu1 %v8409_v47  ;;  %3899 = vmatpush1.bf16.msra.mxu0 %v8411_v48  ;;  %v806_v47 = vld [vmem:[#allocation5 + $0x728] sm:$0xff] }
 0x1b8   : > { %3941 = vmatprep.subr.bf16.mxu1 %v7934_v49  ;;  %4014 = vmatprep.subr.bf16.mxu0 %v7936_v50  ;;  %v822_v48 = vld [vmem:[#allocation5 + $0x7a8] sm:$0xff]  ;;  %v8125_v49 = vcombine.low %v773_v37, %v789_v38  ;;  %v8127_v50 = vcombine.low %v774_v39, %v790_v40  ;;  %v8318_v37 = vcombine.high %v965_v31, %v981_v32  ;;  %v997_v39 = vld [vmem:[#allocation5 + $0xd20] sm:$0xff] }
 0x1b9   : > { %v8160_v52 = vcombine.high %v806_v47, %v822_v48  ;;  %v1013_v40 = vld [vmem:[#allocation5 + $0xda0] sm:$0xff] }
 0x1ba   : > { %3828 = vmatmul.mubr.bf16.vlgmr.msra.gmra.mrb[16].mxu1 %v9435_v4  ;;  %3901 = vmatmul.mubr.bf16.vlgmr.msra.gmra.mrb[32].mxu0 %v9435_v4 }
 0x1bb   : > { %3837 = vmatprep.mubr.bf16.mxu1 %v9445_v30  ;;  %3910 = vmatprep.mubr.bf16.mxu0 %v9445_v30 }
 0x1bc   : > { %3942 = vmatpush1.bf16.msra.mxu1 %v7933_v55  ;;  %4015 = vmatpush1.bf16.msra.mxu0 %v7935_v56  ;;  %v838_v55 = vld [vmem:[#allocation5 + $0x828] sm:$0xff] }
 0x1bd   : > { %3943 = vmatprep.subr.bf16.mxu1 %v7966_v59  ;;  %4016 = vmatprep.subr.bf16.mxu0 %v7968_v60  ;;  %v854_v56 = vld [vmem:[#allocation5 + $0x8a8] sm:$0xff]  ;;  %v8157_v59 = vcombine.low %v805_v45, %v821_v46  ;;  %v8159_v60 = vcombine.low %v806_v47, %v822_v48  ;;  %v8350_v45 = vcombine.high %v997_v39, %v1013_v40  ;;  %v1029_v47 = vld [vmem:[#allocation5 + $0xe20] sm:$0xff] }
 0x1be   : > { %v8192_v62 = vcombine.high %v838_v55, %v854_v56  ;;  %v1045_v48 = vld [vmem:[#allocation5 + $0xea0] sm:$0xff] }
 0x1c0   : > { %3944 = vmatpush1.bf16.msra.mxu1 %v7965_v3  ;;  %4017 = vmatpush1.bf16.msra.mxu0 %v7967_v6  ;;  %v870_v3 = vld [vmem:[#allocation5 + $0x928] sm:$0xff] }
 0x1c1   : > { %3945 = vmatprep.subr.bf16.mxu1 %v7998_v7  ;;  %4018 = vmatprep.subr.bf16.mxu0 %v8000_v8  ;;  %v886_v6 = vld [vmem:[#allocation5 + $0x9a8] sm:$0xff]  ;;  %v8189_v7 = vcombine.low %v837_v53, %v853_v54  ;;  %v8191_v8 = vcombine.low %v838_v55, %v854_v56  ;;  %v8382_v53 = vcombine.high %v1029_v47, %v1045_v48  ;;  %v1061_v55 = vld [vmem:[#allocation5 + $0xf20] sm:$0xff] }
 0x1c2   : > { %3838 = vmatmul.mubr.bf16.gmra.mrb[20].mxu1 %v9443_v29  ;;  %3911 = vmatmul.mubr.bf16.gmra.mrb[36].mxu0 %v9443_v29  ;;  %v8224_v10 = vcombine.high %v870_v3, %v886_v6  ;;  %v1077_v56 = vld [vmem:[#allocation5 + $0xfa0] sm:$0xff] }
 0x1c3   : > { %3847 = vmatprep.mubr.bf16.mxu1 %v9453_v58  ;;  %3920 = vmatprep.mubr.bf16.mxu0 %v9453_v58 }
 0x1c4   : > { %3946 = vmatpush1.bf16.msra.mxu1 %v7997_v13  ;;  %4019 = vmatpush1.bf16.msra.mxu0 %v7999_v14  ;;  %v902_v13 = vld [vmem:[#allocation5 + $0xa28] sm:$0xff] }
 0x1c5   : > { %3947 = vmatprep.subr.bf16.mxu1 %v8030_v15  ;;  %4020 = vmatprep.subr.bf16.mxu0 %v8032_v16  ;;  %v918_v14 = vld [vmem:[#allocation5 + $0xaa8] sm:$0xff]  ;;  %v8221_v15 = vcombine.low %v869_v63, %v885_v2  ;;  %v8223_v16 = vcombine.low %v870_v3, %v886_v6  ;;  %v8414_v63 = vcombine.high %v1061_v55, %v1077_v56  ;;  %v583_v3 = vld [vmem:[#allocation5 + $0x30] sm:$0xff] }
 0x1c6   : > { %v8256_v18 = vcombine.high %v902_v13, %v918_v14  ;;  %v599_v6 = vld [vmem:[#allocation5 + $0xb0] sm:$0xff] }
 0x1c8   : > { %3948 = vmatpush1.bf16.msra.mxu1 %v8029_v21  ;;  %4021 = vmatpush1.bf16.msra.mxu0 %v8031_v23  ;;  %v934_v21 = vld [vmem:[#allocation5 + $0xb28] sm:$0xff] }
 0x1c9   : > { %3949 = vmatprep.subr.bf16.mxu1 %v8062_v24  ;;  %4022 = vmatprep.subr.bf16.mxu0 %v8064_v25  ;;  %v950_v23 = vld [vmem:[#allocation5 + $0xba8] sm:$0xff]  ;;  %v8253_v24 = vcombine.low %v901_v11, %v917_v12  ;;  %v8255_v25 = vcombine.low %v902_v13, %v918_v14  ;;  %v7938_v11 = vcombine.high %v583_v3, %v599_v6  ;;  %v615_v13 = vld [vmem:[#allocation5 + $0x130] sm:$0xff] }
 0x1ca   : > { %3848 = vmatmul.mubr.bf16.gmra.mrb[24].mxu1 %v9451_v57  ;;  %3921 = vmatmul.mubr.bf16.gmra.mrb[40].mxu0 %v9451_v57  ;;  %v8288_v28 = vcombine.high %v934_v21, %v950_v23  ;;  %v631_v14 = vld [vmem:[#allocation5 + $0x1b0] sm:$0xff] }
 0x1cb   : > { %3857 = vmatprep.mubr.bf16.mxu1 %v9461_v26  ;;  %3930 = vmatprep.mubr.bf16.mxu0 %v9461_v26 }
 0x1cc   : > { %3950 = vmatpush1.bf16.msra.mxu1 %v8061_v33  ;;  %4023 = vmatpush1.bf16.msra.mxu0 %v8063_v34  ;;  %v966_v33 = vld [vmem:[#allocation5 + $0xc28] sm:$0xff] }
 0x1cd   : > { %3951 = vmatprep.subr.bf16.mxu1 %v8094_v35  ;;  %4024 = vmatprep.subr.bf16.mxu0 %v8096_v36  ;;  %v982_v34 = vld [vmem:[#allocation5 + $0xca8] sm:$0xff]  ;;  %v8285_v35 = vcombine.low %v933_v19, %v949_v20  ;;  %v8287_v36 = vcombine.low %v934_v21, %v950_v23  ;;  %v7970_v19 = vcombine.high %v615_v13, %v631_v14  ;;  %v647_v21 = vld [vmem:[#allocation5 + $0x230] sm:$0xff] }
 0x1ce   : > { %v8320_v38 = vcombine.high %v966_v33, %v982_v34  ;;  %v663_v23 = vld [vmem:[#allocation5 + $0x2b0] sm:$0xff] }
 0x1d0   : > { %3952 = vmatpush1.bf16.msra.mxu1 %v8093_v41  ;;  %4025 = vmatpush1.bf16.msra.mxu0 %v8095_v42  ;;  %v998_v41 = vld [vmem:[#allocation5 + $0xd28] sm:$0xff] }
 0x1d1   : > { %3953 = vmatprep.subr.bf16.mxu1 %v8126_v43  ;;  %4026 = vmatprep.subr.bf16.mxu0 %v8128_v44  ;;  %v1014_v42 = vld [vmem:[#allocation5 + $0xda8] sm:$0xff]  ;;  %v8317_v43 = vcombine.low %v965_v31, %v981_v32  ;;  %v8319_v44 = vcombine.low %v966_v33, %v982_v34  ;;  %v8002_v31 = vcombine.high %v647_v21, %v663_v23  ;;  %v679_v33 = vld [vmem:[#allocation5 + $0x330] sm:$0xff] }
 0x1d2   : > { %3858 = vmatmul.mubr.bf16.gmra.mrb[28].mxu1 %v9459_v22  ;;  %3931 = vmatmul.mubr.bf16.gmra.mrb[44].mxu0 %v9459_v22  ;;  %v8352_v46 = vcombine.high %v998_v41, %v1014_v42  ;;  %v695_v34 = vld [vmem:[#allocation5 + $0x3b0] sm:$0xff] }
 0x1d3   : > { %3973 = vmatprep.mubr.bf16.mxu1 %v9437_v5  ;;  %4046 = vmatprep.mubr.bf16.mxu0 %v9437_v5 }
 0x1d4   : > { %3954 = vmatpush1.bf16.msra.mxu1 %v8125_v49  ;;  %4027 = vmatpush1.bf16.msra.mxu0 %v8127_v50  ;;  %v1030_v49 = vld [vmem:[#allocation5 + $0xe28] sm:$0xff] }
 0x1d5   : > { %3955 = vmatprep.subr.bf16.mxu1 %v8158_v51  ;;  %4028 = vmatprep.subr.bf16.mxu0 %v8160_v52  ;;  %v1046_v50 = vld [vmem:[#allocation5 + $0xea8] sm:$0xff]  ;;  %v8349_v51 = vcombine.low %v997_v39, %v1013_v40  ;;  %v8351_v52 = vcombine.low %v998_v41, %v1014_v42  ;;  %v8034_v39 = vcombine.high %v679_v33, %v695_v34  ;;  %v711_v41 = vld [vmem:[#allocation5 + $0x430] sm:$0xff] }
 0x1d6   : > { %v8384_v54 = vcombine.high %v1030_v49, %v1046_v50  ;;  %v727_v42 = vld [vmem:[#allocation5 + $0x4b0] sm:$0xff] }
 0x1d8   : > { %3956 = vmatpush1.bf16.msra.mxu1 %v8157_v59  ;;  %4029 = vmatpush1.bf16.msra.mxu0 %v8159_v60  ;;  %v1062_v59 = vld [vmem:[#allocation5 + $0xf28] sm:$0xff] }
 0x1d9   : > { %3957 = vmatprep.subr.bf16.mxu1 %v8190_v61  ;;  %4030 = vmatprep.subr.bf16.mxu0 %v8192_v62  ;;  %v1078_v60 = vld [vmem:[#allocation5 + $0xfa8] sm:$0xff]  ;;  %v8381_v61 = vcombine.low %v1029_v47, %v1045_v48  ;;  %v8383_v62 = vcombine.low %v1030_v49, %v1046_v50  ;;  %v8066_v47 = vcombine.high %v711_v41, %v727_v42  ;;  %v743_v49 = vld [vmem:[#allocation5 + $0x530] sm:$0xff] }
 0x1da   : > { %v8416_v2 = vcombine.high %v1062_v59, %v1078_v60  ;;  %v759_v50 = vld [vmem:[#allocation5 + $0x5b0] sm:$0xff] }
 0x1dc   : > { %3958 = vmatpush1.bf16.msra.mxu1 %v8189_v7  ;;  %4031 = vmatpush1.bf16.msra.mxu0 %v8191_v8  ;;  %v584_v7 = vld [vmem:[#allocation5 + $0x38] sm:$0xff] }
 0x1dd   : > { %3959 = vmatprep.subr.bf16.mxu1 %v8222_v9  ;;  %4032 = vmatprep.subr.bf16.mxu0 %v8224_v10  ;;  %v600_v8 = vld [vmem:[#allocation5 + $0xb8] sm:$0xff]  ;;  %v8413_v9 = vcombine.low %v1061_v55, %v1077_v56  ;;  %v8415_v10 = vcombine.low %v1062_v59, %v1078_v60  ;;  %v8098_v55 = vcombine.high %v743_v49, %v759_v50  ;;  %v775_v59 = vld [vmem:[#allocation5 + $0x630] sm:$0xff] }
 0x1de   : > { %v7940_v12 = vcombine.high %v584_v7, %v600_v8  ;;  %v791_v60 = vld [vmem:[#allocation5 + $0x6b0] sm:$0xff] }
 0x1e0   : > { %3960 = vmatpush1.bf16.msra.mxu1 %v8221_v15  ;;  %4033 = vmatpush1.bf16.msra.mxu0 %v8223_v16  ;;  %v616_v15 = vld [vmem:[#allocation5 + $0x138] sm:$0xff] }
 0x1e1   : > { %3961 = vmatprep.subr.bf16.mxu1 %v8254_v17  ;;  %4034 = vmatprep.subr.bf16.mxu0 %v8256_v18  ;;  %v632_v16 = vld [vmem:[#allocation5 + $0x1b8] sm:$0xff]  ;;  %v7937_v17 = vcombine.low %v583_v3, %v599_v6  ;;  %v7939_v18 = vcombine.low %v584_v7, %v600_v8  ;;  %v8130_v3 = vcombine.high %v775_v59, %v791_v60  ;;  %v807_v7 = vld [vmem:[#allocation5 + $0x730] sm:$0xff] }
 0x1e2   : > { %v7972_v20 = vcombine.high %v616_v15, %v632_v16  ;;  %v823_v8 = vld [vmem:[#allocation5 + $0x7b0] sm:$0xff] }
 0x1e4   : > { %3962 = vmatpush1.bf16.msra.mxu1 %v8253_v24  ;;  %4035 = vmatpush1.bf16.msra.mxu0 %v8255_v25  ;;  %v648_v24 = vld [vmem:[#allocation5 + $0x238] sm:$0xff] }
 0x1e5   : > { %3963 = vmatprep.subr.bf16.mxu1 %v8286_v27  ;;  %4036 = vmatprep.subr.bf16.mxu0 %v8288_v28  ;;  %v664_v25 = vld [vmem:[#allocation5 + $0x2b8] sm:$0xff]  ;;  %v7969_v27 = vcombine.low %v615_v13, %v631_v14  ;;  %v7971_v28 = vcombine.low %v616_v15, %v632_v16  ;;  %v8162_v13 = vcombine.high %v807_v7, %v823_v8  ;;  %v839_v15 = vld [vmem:[#allocation5 + $0x830] sm:$0xff] }
 0x1e6   : > { %v8004_v32 = vcombine.high %v648_v24, %v664_v25  ;;  %v855_v16 = vld [vmem:[#allocation5 + $0x8b0] sm:$0xff] }
 0x1e8   : > { %3964 = vmatpush1.bf16.msra.mxu1 %v8285_v35  ;;  %4037 = vmatpush1.bf16.msra.mxu0 %v8287_v36  ;;  %v680_v35 = vld [vmem:[#allocation5 + $0x338] sm:$0xff] }
 0x1e9   : > { %3965 = vmatprep.subr.bf16.mxu1 %v8318_v37  ;;  %4038 = vmatprep.subr.bf16.mxu0 %v8320_v38  ;;  %v696_v36 = vld [vmem:[#allocation5 + $0x3b8] sm:$0xff]  ;;  %v8001_v37 = vcombine.low %v647_v21, %v663_v23  ;;  %v8003_v38 = vcombine.low %v648_v24, %v664_v25  ;;  %v8194_v21 = vcombine.high %v839_v15, %v855_v16  ;;  %v871_v24 = vld [vmem:[#allocation5 + $0x930] sm:$0xff] }
 0x1ea   : > { %v8036_v40 = vcombine.high %v680_v35, %v696_v36  ;;  %v887_v25 = vld [vmem:[#allocation5 + $0x9b0] sm:$0xff] }
 0x1ec   : > { %3966 = vmatpush1.bf16.msra.mxu1 %v8317_v43  ;;  %4039 = vmatpush1.bf16.msra.mxu0 %v8319_v44  ;;  %v712_v43 = vld [vmem:[#allocation5 + $0x438] sm:$0xff] }
 0x1ed   : > { %3967 = vmatprep.subr.bf16.mxu1 %v8350_v45  ;;  %4040 = vmatprep.subr.bf16.mxu0 %v8352_v46  ;;  %v728_v44 = vld [vmem:[#allocation5 + $0x4b8] sm:$0xff]  ;;  %v8033_v45 = vcombine.low %v679_v33, %v695_v34  ;;  %v8035_v46 = vcombine.low %v680_v35, %v696_v36  ;;  %v8226_v33 = vcombine.high %v871_v24, %v887_v25  ;;  %v903_v35 = vld [vmem:[#allocation5 + $0xa30] sm:$0xff] }
 0x1ee   : > { %v8068_v48 = vcombine.high %v712_v43, %v728_v44  ;;  %v919_v36 = vld [vmem:[#allocation5 + $0xab0] sm:$0xff] }
 0x1f0   : > { %3968 = vmatpush1.bf16.msra.mxu1 %v8349_v51  ;;  %4041 = vmatpush1.bf16.msra.mxu0 %v8351_v52  ;;  %v744_v51 = vld [vmem:[#allocation5 + $0x538] sm:$0xff] }
 0x1f1   : > { %3969 = vmatprep.subr.bf16.mxu1 %v8382_v53  ;;  %4042 = vmatprep.subr.bf16.mxu0 %v8384_v54  ;;  %v760_v52 = vld [vmem:[#allocation5 + $0x5b8] sm:$0xff]  ;;  %v8065_v53 = vcombine.low %v711_v41, %v727_v42  ;;  %v8067_v54 = vcombine.low %v712_v43, %v728_v44  ;;  %v8258_v41 = vcombine.high %v903_v35, %v919_v36  ;;  %v935_v43 = vld [vmem:[#allocation5 + $0xb30] sm:$0xff] }
 0x1f2   : > { %v8100_v56 = vcombine.high %v744_v51, %v760_v52  ;;  %v951_v44 = vld [vmem:[#allocation5 + $0xbb0] sm:$0xff] }
 0x1f4   : > { %3970 = vmatpush1.bf16.msra.mxu1 %v8381_v61  ;;  %4043 = vmatpush1.bf16.msra.mxu0 %v8383_v62  ;;  %v776_v61 = vld [vmem:[#allocation5 + $0x638] sm:$0xff] }
 0x1f5   : > { %3971 = vmatprep.subr.bf16.mxu1 %v8414_v63  ;;  %4044 = vmatprep.subr.bf16.mxu0 %v8416_v2  ;;  %v792_v62 = vld [vmem:[#allocation5 + $0x6b8] sm:$0xff]  ;;  %v8097_v63 = vcombine.low %v743_v49, %v759_v50  ;;  %v8099_v2 = vcombine.low %v744_v51, %v760_v52  ;;  %v8290_v49 = vcombine.high %v935_v43, %v951_v44  ;;  %v967_v51 = vld [vmem:[#allocation5 + $0xc30] sm:$0xff] }
 0x1f6   : > { %v8132_v6 = vcombine.high %v776_v61, %v792_v62  ;;  %v983_v52 = vld [vmem:[#allocation5 + $0xcb0] sm:$0xff] }
 0x1f8   : > { %3972 = vmatpush1.bf16.msra.mxu1 %v8413_v9  ;;  %4045 = vmatpush1.bf16.msra.mxu0 %v8415_v10  ;;  %v808_v9 = vld [vmem:[#allocation5 + $0x738] sm:$0xff] }
 0x1f9   : > { %4087 = vmatprep.subr.bf16.mxu1 %v7938_v11  ;;  %4160 = vmatprep.subr.bf16.mxu0 %v7940_v12  ;;  %v824_v10 = vld [vmem:[#allocation5 + $0x7b8] sm:$0xff]  ;;  %v8129_v11 = vcombine.low %v775_v59, %v791_v60  ;;  %v8131_v12 = vcombine.low %v776_v61, %v792_v62  ;;  %v8322_v59 = vcombine.high %v967_v51, %v983_v52  ;;  %v999_v61 = vld [vmem:[#allocation5 + $0xd30] sm:$0xff] }
 0x1fa   : > { %v8164_v14 = vcombine.high %v808_v9, %v824_v10  ;;  %v1015_v62 = vld [vmem:[#allocation5 + $0xdb0] sm:$0xff] }
 0x1fb   : > { %3974 = vmatmul.mubr.bf16.vlgmr.msra.gmra.mrb[32].mxu1 %v9435_v4  ;;  %4047 = vmatmul.mubr.bf16.vlgmr.msra.gmra.mrb[48].mxu0 %v9435_v4 }
 0x1fc   : > { %3983 = vmatprep.mubr.bf16.mxu1 %v9445_v30  ;;  %4056 = vmatprep.mubr.bf16.mxu0 %v9445_v30 }
 0x1fd   : > { %4088 = vmatpush1.bf16.msra.mxu1 %v7937_v17  ;;  %4161 = vmatpush1.bf16.msra.mxu0 %v7939_v18  ;;  %v840_v17 = vld [vmem:[#allocation5 + $0x838] sm:$0xff] }
 0x1fe   : > { %4089 = vmatprep.subr.bf16.mxu1 %v7970_v19  ;;  %4162 = vmatprep.subr.bf16.mxu0 %v7972_v20  ;;  %v856_v18 = vld [vmem:[#allocation5 + $0x8b8] sm:$0xff]  ;;  %v8161_v19 = vcombine.low %v807_v7, %v823_v8  ;;  %v8163_v20 = vcombine.low %v808_v9, %v824_v10  ;;  %v8354_v7 = vcombine.high %v999_v61, %v1015_v62  ;;  %v1031_v9 = vld [vmem:[#allocation5 + $0xe30] sm:$0xff] }
 0x1ff   : > { %v8196_v23 = vcombine.high %v840_v17, %v856_v18  ;;  %v1047_v10 = vld [vmem:[#allocation5 + $0xeb0] sm:$0xff] }
 0x201   : > { %4090 = vmatpush1.bf16.msra.mxu1 %v7969_v27  ;;  %4163 = vmatpush1.bf16.msra.mxu0 %v7971_v28  ;;  %v872_v27 = vld [vmem:[#allocation5 + $0x938] sm:$0xff] }
 0x202   : > { %4091 = vmatprep.subr.bf16.mxu1 %v8002_v31  ;;  %4164 = vmatprep.subr.bf16.mxu0 %v8004_v32  ;;  %v888_v28 = vld [vmem:[#allocation5 + $0x9b8] sm:$0xff]  ;;  %v8193_v31 = vcombine.low %v839_v15, %v855_v16  ;;  %v8195_v32 = vcombine.low %v840_v17, %v856_v18  ;;  %v8386_v15 = vcombine.high %v1031_v9, %v1047_v10  ;;  %v1063_v17 = vld [vmem:[#allocation5 + $0xf30] sm:$0xff] }
 0x203   : > { %3984 = vmatmul.mubr.bf16.gmra.mrb[36].mxu1 %v9443_v29  ;;  %4057 = vmatmul.mubr.bf16.gmra.mrb[52].mxu0 %v9443_v29  ;;  %v8228_v34 = vcombine.high %v872_v27, %v888_v28  ;;  %v1079_v18 = vld [vmem:[#allocation5 + $0xfb0] sm:$0xff] }
 0x204   : > { %3993 = vmatprep.mubr.bf16.mxu1 %v9453_v58  ;;  %4066 = vmatprep.mubr.bf16.mxu0 %v9453_v58 }
 0x205   : > { %4092 = vmatpush1.bf16.msra.mxu1 %v8001_v37  ;;  %4165 = vmatpush1.bf16.msra.mxu0 %v8003_v38  ;;  %v904_v37 = vld [vmem:[#allocation5 + $0xa38] sm:$0xff] }
 0x206   : > { %4093 = vmatprep.subr.bf16.mxu1 %v8034_v39  ;;  %4166 = vmatprep.subr.bf16.mxu0 %v8036_v40  ;;  %v920_v38 = vld [vmem:[#allocation5 + $0xab8] sm:$0xff]  ;;  %v8225_v39 = vcombine.low %v871_v24, %v887_v25  ;;  %v8227_v40 = vcombine.low %v872_v27, %v888_v28  ;;  %v8418_v24 = vcombine.high %v1063_v17, %v1079_v18  ;;  %v585_v27 = vld [vmem:[#allocation5 + $0x40] sm:$0xff] }
 0x207   : > { %v8260_v42 = vcombine.high %v904_v37, %v920_v38  ;;  %v601_v28 = vld [vmem:[#allocation5 + $0xc0] sm:$0xff] }
 0x209   : > { %4094 = vmatpush1.bf16.msra.mxu1 %v8033_v45  ;;  %4167 = vmatpush1.bf16.msra.mxu0 %v8035_v46  ;;  %v936_v45 = vld [vmem:[#allocation5 + $0xb38] sm:$0xff] }
 0x20a   : > { %4095 = vmatprep.subr.bf16.mxu1 %v8066_v47  ;;  %4168 = vmatprep.subr.bf16.mxu0 %v8068_v48  ;;  %v952_v46 = vld [vmem:[#allocation5 + $0xbb8] sm:$0xff]  ;;  %v8257_v47 = vcombine.low %v903_v35, %v919_v36  ;;  %v8259_v48 = vcombine.low %v904_v37, %v920_v38  ;;  %v7942_v35 = vcombine.high %v585_v27, %v601_v28  ;;  %v617_v37 = vld [vmem:[#allocation5 + $0x140] sm:$0xff] }
 0x20b   : > { %3994 = vmatmul.mubr.bf16.gmra.mrb[40].mxu1 %v9451_v57  ;;  %4067 = vmatmul.mubr.bf16.gmra.mrb[56].mxu0 %v9451_v57  ;;  %v8292_v50 = vcombine.high %v936_v45, %v952_v46  ;;  %v633_v38 = vld [vmem:[#allocation5 + $0x1c0] sm:$0xff] }
 0x20c   : > { %4003 = vmatprep.mubr.bf16.mxu1 %v9461_v26  ;;  %4076 = vmatprep.mubr.bf16.mxu0 %v9461_v26 }
 0x20d   : > { %4096 = vmatpush1.bf16.msra.mxu1 %v8065_v53  ;;  %4169 = vmatpush1.bf16.msra.mxu0 %v8067_v54  ;;  %v968_v53 = vld [vmem:[#allocation5 + $0xc38] sm:$0xff] }
 0x20e   : > { %4097 = vmatprep.subr.bf16.mxu1 %v8098_v55  ;;  %4170 = vmatprep.subr.bf16.mxu0 %v8100_v56  ;;  %v984_v54 = vld [vmem:[#allocation5 + $0xcb8] sm:$0xff]  ;;  %v8289_v55 = vcombine.low %v935_v43, %v951_v44  ;;  %v8291_v56 = vcombine.low %v936_v45, %v952_v46  ;;  %v7974_v43 = vcombine.high %v617_v37, %v633_v38  ;;  %v649_v45 = vld [vmem:[#allocation5 + $0x240] sm:$0xff] }
 0x20f   : > { %v8324_v60 = vcombine.high %v968_v53, %v984_v54  ;;  %v665_v46 = vld [vmem:[#allocation5 + $0x2c0] sm:$0xff] }
 0x211   : > { %4098 = vmatpush1.bf16.msra.mxu1 %v8097_v63  ;;  %4171 = vmatpush1.bf16.msra.mxu0 %v8099_v2  ;;  %v1000_v63 = vld [vmem:[#allocation5 + $0xd38] sm:$0xff] }
 0x212   : > { %4099 = vmatprep.subr.bf16.mxu1 %v8130_v3  ;;  %4172 = vmatprep.subr.bf16.mxu0 %v8132_v6  ;;  %v1016_v2 = vld [vmem:[#allocation5 + $0xdb8] sm:$0xff]  ;;  %v8321_v3 = vcombine.low %v967_v51, %v983_v52  ;;  %v8323_v6 = vcombine.low %v968_v53, %v984_v54  ;;  %v8006_v51 = vcombine.high %v649_v45, %v665_v46  ;;  %v681_v53 = vld [vmem:[#allocation5 + $0x340] sm:$0xff] }
 0x213   : > { %4004 = vmatmul.mubr.bf16.gmra.mrb[44].mxu1 %v9459_v22  ;;  %4077 = vmatmul.mubr.bf16.gmra.mrb[60].mxu0 %v9459_v22  ;;  %v8356_v8 = vcombine.high %v1000_v63, %v1016_v2  ;;  %v697_v54 = vld [vmem:[#allocation5 + $0x3c0] sm:$0xff] }
 0x214   : > { %4119 = vmatprep.mubr.bf16.mxu1 %v9437_v5  ;;  %4192 = vmatprep.mubr.bf16.mxu0 %v9437_v5 }
 0x215   : > { %4100 = vmatpush1.bf16.msra.mxu1 %v8129_v11  ;;  %4173 = vmatpush1.bf16.msra.mxu0 %v8131_v12  ;;  %v1032_v11 = vld [vmem:[#allocation5 + $0xe38] sm:$0xff] }
 0x216   : > { %4101 = vmatprep.subr.bf16.mxu1 %v8162_v13  ;;  %4174 = vmatprep.subr.bf16.mxu0 %v8164_v14  ;;  %v1048_v12 = vld [vmem:[#allocation5 + $0xeb8] sm:$0xff]  ;;  %v8353_v13 = vcombine.low %v999_v61, %v1015_v62  ;;  %v8355_v14 = vcombine.low %v1000_v63, %v1016_v2  ;;  %v8038_v61 = vcombine.high %v681_v53, %v697_v54  ;;  %v713_v63 = vld [vmem:[#allocation5 + $0x440] sm:$0xff] }
 0x217   : > { %v8388_v16 = vcombine.high %v1032_v11, %v1048_v12  ;;  %v729_v2 = vld [vmem:[#allocation5 + $0x4c0] sm:$0xff] }
 0x219   : > { %4102 = vmatpush1.bf16.msra.mxu1 %v8161_v19  ;;  %4175 = vmatpush1.bf16.msra.mxu0 %v8163_v20  ;;  %v1064_v19 = vld [vmem:[#allocation5 + $0xf38] sm:$0xff] }
 0x21a   : > { %4103 = vmatprep.subr.bf16.mxu1 %v8194_v21  ;;  %4176 = vmatprep.subr.bf16.mxu0 %v8196_v23  ;;  %v1080_v20 = vld [vmem:[#allocation5 + $0xfb8] sm:$0xff]  ;;  %v8385_v21 = vcombine.low %v1031_v9, %v1047_v10  ;;  %v8387_v23 = vcombine.low %v1032_v11, %v1048_v12  ;;  %v8070_v9 = vcombine.high %v713_v63, %v729_v2  ;;  %v745_v11 = vld [vmem:[#allocation5 + $0x540] sm:$0xff] }
 0x21b   : > { %v8420_v25 = vcombine.high %v1064_v19, %v1080_v20  ;;  %v761_v12 = vld [vmem:[#allocation5 + $0x5c0] sm:$0xff] }
 0x21d   : > { %4104 = vmatpush1.bf16.msra.mxu1 %v8193_v31  ;;  %4177 = vmatpush1.bf16.msra.mxu0 %v8195_v32  ;;  %v586_v31 = vld [vmem:[#allocation5 + $0x48] sm:$0xff] }
 0x21e   : > { %4105 = vmatprep.subr.bf16.mxu1 %v8226_v33  ;;  %4178 = vmatprep.subr.bf16.mxu0 %v8228_v34  ;;  %v602_v32 = vld [vmem:[#allocation5 + $0xc8] sm:$0xff]  ;;  %v8417_v33 = vcombine.low %v1063_v17, %v1079_v18  ;;  %v8419_v34 = vcombine.low %v1064_v19, %v1080_v20  ;;  %v8102_v17 = vcombine.high %v745_v11, %v761_v12  ;;  %v777_v19 = vld [vmem:[#allocation5 + $0x640] sm:$0xff] }
 0x21f   : > { %v7944_v36 = vcombine.high %v586_v31, %v602_v32  ;;  %v793_v20 = vld [vmem:[#allocation5 + $0x6c0] sm:$0xff] }
 0x221   : > { %4106 = vmatpush1.bf16.msra.mxu1 %v8225_v39  ;;  %4179 = vmatpush1.bf16.msra.mxu0 %v8227_v40  ;;  %v618_v39 = vld [vmem:[#allocation5 + $0x148] sm:$0xff] }
 0x222   : > { %4107 = vmatprep.subr.bf16.mxu1 %v8258_v41  ;;  %4180 = vmatprep.subr.bf16.mxu0 %v8260_v42  ;;  %v634_v40 = vld [vmem:[#allocation5 + $0x1c8] sm:$0xff]  ;;  %v7941_v41 = vcombine.low %v585_v27, %v601_v28  ;;  %v7943_v42 = vcombine.low %v586_v31, %v602_v32  ;;  %v8101_v27 = vcombine.low %v745_v11, %v761_v12  ;;  %v889_v12 = vld [vmem:[#allocation5 + $0x9c0] sm:$0xff] }
 0x223   : > { %v7976_v44 = vcombine.high %v618_v39, %v634_v40 }
 0x225   : > { %4108 = vmatpush1.bf16.msra.mxu1 %v8257_v47  ;;  %4181 = vmatpush1.bf16.msra.mxu0 %v8259_v48  ;;  %v650_v47 = vld [vmem:[#allocation5 + $0x248] sm:$0xff] }
 0x226   : > { %4109 = vmatprep.subr.bf16.mxu1 %v8290_v49  ;;  %4182 = vmatprep.subr.bf16.mxu0 %v8292_v50  ;;  %v666_v48 = vld [vmem:[#allocation5 + $0x2c8] sm:$0xff]  ;;  %v7973_v49 = vcombine.low %v617_v37, %v633_v38  ;;  %v7975_v50 = vcombine.low %v618_v39, %v634_v40  ;;  %v809_v37 = vld [vmem:[#allocation5 + $0x740] sm:$0xff] }
 0x227   : > { %v8008_v52 = vcombine.high %v650_v47, %v666_v48  ;;  %v1034_v39 = vld [vmem:[#allocation5 + $0xe48] sm:$0xff] }
 0x228   : > { %v1050_v38 = vld [vmem:[#allocation5 + $0xec8] sm:$0xff] }
 0x229   : > { %4110 = vmatpush1.bf16.msra.mxu1 %v8289_v55  ;;  %4183 = vmatpush1.bf16.msra.mxu0 %v8291_v56  ;;  %v682_v55 = vld [vmem:[#allocation5 + $0x348] sm:$0xff] }
 0x22a   : > { %4111 = vmatprep.subr.bf16.mxu1 %v8322_v59  ;;  %4184 = vmatprep.subr.bf16.mxu0 %v8324_v60  ;;  %v698_v56 = vld [vmem:[#allocation5 + $0x3c8] sm:$0xff]  ;;  %v8005_v59 = vcombine.low %v649_v45, %v665_v46  ;;  %v8007_v60 = vcombine.low %v650_v47, %v666_v48  ;;  %v8133_v47 = vcombine.low %v777_v19, %v793_v20 }
 0x22b   : > { %v8040_v62 = vcombine.high %v682_v55, %v698_v56 }
 0x22d   : > { %4112 = vmatpush1.bf16.msra.mxu1 %v8321_v3  ;;  %4185 = vmatpush1.bf16.msra.mxu0 %v8323_v6  ;;  %v714_v3 = vld [vmem:[#allocation5 + $0x448] sm:$0xff] }
 0x22e   : > { %4113 = vmatprep.subr.bf16.mxu1 %v8354_v7  ;;  %4186 = vmatprep.subr.bf16.mxu0 %v8356_v8  ;;  %v730_v6 = vld [vmem:[#allocation5 + $0x4c8] sm:$0xff]  ;;  %v8037_v7 = vcombine.low %v681_v53, %v697_v54  ;;  %v8039_v8 = vcombine.low %v682_v55, %v698_v56 }
 0x22f   : > { %v8072_v10 = vcombine.high %v714_v3, %v730_v6  ;;  %v842_v53 = vld [vmem:[#allocation5 + $0x848] sm:$0xff] }
 0x230   : > { %v858_v54 = vld [vmem:[#allocation5 + $0x8c8] sm:$0xff] }
 0x231   : > { %4114 = vmatpush1.bf16.msra.mxu1 %v8353_v13  ;;  %4187 = vmatpush1.bf16.msra.mxu0 %v8355_v14  ;;  %v746_v13 = vld [vmem:[#allocation5 + $0x548] sm:$0xff] }
 0x232   : > { %4115 = vmatprep.subr.bf16.mxu1 %v8386_v15  ;;  %4188 = vmatprep.subr.bf16.mxu0 %v8388_v16  ;;  %v762_v14 = vld [vmem:[#allocation5 + $0x5c8] sm:$0xff]  ;;  %v8069_v15 = vcombine.low %v713_v63, %v729_v2  ;;  %v8071_v16 = vcombine.low %v714_v3, %v730_v6  ;;  %v8200_v2 = vcombine.high %v842_v53, %v858_v54 }
 0x233   : > { %v8104_v18 = vcombine.high %v746_v13, %v762_v14  ;;  %v8103_v28 = vcombine.low %v746_v13, %v762_v14  ;;  %v874_v13 = vld [vmem:[#allocation5 + $0x948] sm:$0xff] }
 0x234   : > { %v890_v14 = vld [vmem:[#allocation5 + $0x9c8] sm:$0xff] }
 0x235   : > { %4116 = vmatpush1.bf16.msra.mxu1 %v8385_v21  ;;  %4189 = vmatpush1.bf16.msra.mxu0 %v8387_v23  ;;  %v778_v21 = vld [vmem:[#allocation5 + $0x648] sm:$0xff] }
 0x236   : > { %4117 = vmatprep.subr.bf16.mxu1 %v8418_v24  ;;  %4190 = vmatprep.subr.bf16.mxu0 %v8420_v25  ;;  %v794_v23 = vld [vmem:[#allocation5 + $0x6c8] sm:$0xff] }
 0x237   : > { %v8135_v48 = vcombine.low %v778_v21, %v794_v23 }
 0x239   : > { %4118 = vmatpush1.bf16.msra.mxu1 %v8417_v33  ;;  %4191 = vmatpush1.bf16.msra.mxu0 %v8419_v34 }
 0x23a   : > { %4233 = vmatprep.subr.bf16.mxu1 %v7942_v35  ;;  %4306 = vmatprep.subr.bf16.mxu0 %v7944_v36  ;;  %v8134_v35 = vcombine.high %v777_v19, %v793_v20  ;;  %v8136_v36 = vcombine.high %v778_v21, %v794_v23  ;;  %v8232_v20 = vcombine.high %v874_v13, %v890_v14  ;;  %v905_v21 = vld [vmem:[#allocation5 + $0xa40] sm:$0xff] }
 0x23b   : > { %v921_v23 = vld [vmem:[#allocation5 + $0xac0] sm:$0xff] }
 0x23c   : > { %4120 = vmatmul.mubr.bf16.vlgmr.msra.gmra.mrb[48].mxu1 %v9435_v4  ;;  %4193 = vmatmul.mubr.bf16.vlgmr.msra.gmra.mrb[64].mxu0 %v9435_v4 }
 0x23d   : > { %4129 = vmatprep.mubr.bf16.mxu1 %v9445_v30  ;;  %4202 = vmatprep.mubr.bf16.mxu0 %v9445_v30 }
 0x23e   : > { %4234 = vmatpush1.bf16.msra.mxu1 %v7941_v41  ;;  %4307 = vmatpush1.bf16.msra.mxu0 %v7943_v42  ;;  %v825_v42 = vld [vmem:[#allocation5 + $0x7c0] sm:$0xff] }
 0x23f   : > { %4235 = vmatprep.subr.bf16.mxu1 %v7974_v43  ;;  %4308 = vmatprep.subr.bf16.mxu0 %v7976_v44  ;;  %v810_v43 = vld [vmem:[#allocation5 + $0x748] sm:$0xff] }
 0x240   : > { %v826_v44 = vld [vmem:[#allocation5 + $0x7c8] sm:$0xff] }
 0x242   : > { %4236 = vmatpush1.bf16.msra.mxu1 %v7973_v49  ;;  %4309 = vmatpush1.bf16.msra.mxu0 %v7975_v50  ;;  %v8166_v49 = vcombine.high %v809_v37, %v825_v42  ;;  %v8168_v50 = vcombine.high %v810_v43, %v826_v44 }
 0x243   : > { %4237 = vmatprep.subr.bf16.mxu1 %v8006_v51  ;;  %4310 = vmatprep.subr.bf16.mxu0 %v8008_v52  ;;  %v841_v51 = vld [vmem:[#allocation5 + $0x840] sm:$0xff] }
 0x244   : > { %4130 = vmatmul.mubr.bf16.gmra.mrb[52].mxu1 %v9443_v29  ;;  %4203 = vmatmul.mubr.bf16.gmra.mrb[68].mxu0 %v9443_v29  ;;  %v857_v52 = vld [vmem:[#allocation5 + $0x8c0] sm:$0xff] }
 0x245   : > { %4139 = vmatprep.mubr.bf16.mxu1 %v9453_v58  ;;  %4212 = vmatprep.mubr.bf16.mxu0 %v9453_v58  ;;  %v8198_v63 = vcombine.high %v841_v51, %v857_v52 }
 0x246   : > { %4238 = vmatpush1.bf16.msra.mxu1 %v8005_v59  ;;  %4311 = vmatpush1.bf16.msra.mxu0 %v8007_v60  ;;  %v8165_v59 = vcombine.low %v809_v37, %v825_v42  ;;  %v8167_v60 = vcombine.low %v810_v43, %v826_v44  ;;  %v8231_v42 = vcombine.low %v874_v13, %v890_v14 }
 0x247   : > { %4239 = vmatprep.subr.bf16.mxu1 %v8038_v61  ;;  %4312 = vmatprep.subr.bf16.mxu0 %v8040_v62  ;;  %v8261_v13 = vcombine.low %v905_v21, %v921_v23 }
 0x24a   : > { %4240 = vmatpush1.bf16.msra.mxu1 %v8037_v7  ;;  %4313 = vmatpush1.bf16.msra.mxu0 %v8039_v8  ;;  %v873_v7 = vld [vmem:[#allocation5 + $0x940] sm:$0xff] }
 0x24b   : > { %4241 = vmatprep.subr.bf16.mxu1 %v8070_v9  ;;  %4314 = vmatprep.subr.bf16.mxu0 %v8072_v10  ;;  %v8230_v19 = vcombine.high %v873_v7, %v889_v12  ;;  %v8229_v37 = vcombine.low %v873_v7, %v889_v12 }
 0x24c   : > { %4140 = vmatmul.mubr.bf16.gmra.mrb[56].mxu1 %v9451_v57  ;;  %4213 = vmatmul.mubr.bf16.gmra.mrb[72].mxu0 %v9451_v57 }
 0x24d   : > { %4149 = vmatprep.mubr.bf16.mxu1 %v9461_v26  ;;  %4222 = vmatprep.mubr.bf16.mxu0 %v9461_v26  ;;  %v9513_v24 = vpop.f32.mrb[0].mxu1  ;;  %v9515_v25 = vpop.f32.mrb[16].mxu0 }
 0x24e   : > { %4242 = vmatpush1.bf16.msra.mxu1 %v8069_v15  ;;  %4315 = vmatpush1.bf16.msra.mxu0 %v8071_v16  ;;  %v9517_v31 = vpop.f32.mrb[1].mxu1  ;;  %v9519_v32 = vpop.f32.mrb[17].mxu0  ;;  %v1033_v16 = vld [vmem:[#allocation5 + $0xe40] sm:$0xff] }
 0x24f   : > { %4243 = vmatprep.subr.bf16.mxu1 %v8102_v17  ;;  %4316 = vmatprep.subr.bf16.mxu0 %v8104_v18  ;;  %v9521_v33 = vpop.f32.mrb[2].mxu1  ;;  %v9523_v34 = vpop.f32.mrb[18].mxu0  ;;  %v8197_v17 = vcombine.low %v841_v51, %v857_v52  ;;  %v8199_v18 = vcombine.low %v842_v53, %v858_v54  ;;  %v937_v51 = vld [vmem:[#allocation5 + $0xb40] sm:$0xff] }
 0x250   : > { %v9529_v40 = vpop.f32.mrb[3].mxu1  ;;  %v9531_v41 = vpop.f32.mrb[19].mxu0  ;;  %v1049_v15 = vld [vmem:[#allocation5 + $0xec0] sm:$0xff] }
 0x252   : > { %4244 = vmatpush1.bf16.msra.mxu1 %v8101_v27  ;;  %4317 = vmatpush1.bf16.msra.mxu0 %v8103_v28  ;;  %v906_v27 = vld [vmem:[#allocation5 + $0xa48] sm:$0xff] }
 0x253   : > { %4245 = vmatprep.subr.bf16.mxu1 %v8134_v35  ;;  %4318 = vmatprep.subr.bf16.mxu0 %v8136_v36  ;;  %v922_v28 = vld [vmem:[#allocation5 + $0xac8] sm:$0xff] }
 0x254   : > { %4150 = vmatmul.mubr.bf16.gmra.mrb[60].mxu1 %v9459_v22  ;;  %4223 = vmatmul.mubr.bf16.gmra.mrb[76].mxu0 %v9459_v22  ;;  %v8263_v14 = vcombine.low %v906_v27, %v922_v28 }
 0x255   : > { %4265 = vmatprep.mubr.bf16.mxu1 %v9437_v5  ;;  %4338 = vmatprep.mubr.bf16.mxu0 %v9437_v5  ;;  %v9541_v55 = vpop.f32.mrb[4].mxu1  ;;  %v9543_v56 = vpop.f32.mrb[20].mxu0 }
 0x256   : > { %4246 = vmatpush1.bf16.msra.mxu1 %v8133_v47  ;;  %4319 = vmatpush1.bf16.msra.mxu0 %v8135_v48  ;;  %v9545_v61 = vpop.f32.mrb[5].mxu1  ;;  %v9547_v62 = vpop.f32.mrb[21].mxu0 }
 0x257   : > { %4247 = vmatprep.subr.bf16.mxu1 %v8166_v49  ;;  %4320 = vmatprep.subr.bf16.mxu0 %v8168_v50  ;;  %v9549_v3 = vpop.f32.mrb[6].mxu1  ;;  %v9551_v6 = vpop.f32.mrb[22].mxu0  ;;  %v8262_v49 = vcombine.high %v905_v21, %v921_v23  ;;  %v8264_v50 = vcombine.high %v906_v27, %v922_v28 }
 0x258   : > { %v9557_v10 = vpop.f32.mrb[7].mxu1  ;;  %v9559_v11 = vpop.f32.mrb[23].mxu0 }
 0x25a   : > { %4248 = vmatpush1.bf16.msra.mxu1 %v8165_v59  ;;  %4321 = vmatpush1.bf16.msra.mxu0 %v8167_v60  ;;  %v953_v60 = vld [vmem:[#allocation5 + $0xbc0] sm:$0xff] }
 0x25b   : > { %4249 = vmatprep.subr.bf16.mxu1 %v8198_v63  ;;  %4322 = vmatprep.subr.bf16.mxu0 %v8200_v2  ;;  %v938_v63 = vld [vmem:[#allocation5 + $0xb48] sm:$0xff]  ;;  %v8293_v7 = vcombine.low %v937_v51, %v953_v60 }
 0x25c   : > { %v954_v2 = vld [vmem:[#allocation5 + $0xbc8] sm:$0xff] }
 0x25d   : > { %v9565_v35 = vpop.f32.mrb[8].mxu1  ;;  %v9567_v36 = vpop.f32.mrb[24].mxu0  ;;  %v8295_v12 = vcombine.low %v938_v63, %v954_v2 }
 0x25e   : > { %4250 = vmatpush1.bf16.msra.mxu1 %v8197_v17  ;;  %4323 = vmatpush1.bf16.msra.mxu0 %v8199_v18  ;;  %v9569_v43 = vpop.f32.mrb[9].mxu1  ;;  %v9571_v44 = vpop.f32.mrb[25].mxu0  ;;  %v8294_v17 = vcombine.high %v937_v51, %v953_v60  ;;  %v8296_v18 = vcombine.high %v938_v63, %v954_v2  ;;  %v1017_v2 = vld [vmem:[#allocation5 + $0xdc0] sm:$0xff] }
 0x25f   : > { %4251 = vmatprep.subr.bf16.mxu1 %v8230_v19  ;;  %4324 = vmatprep.subr.bf16.mxu0 %v8232_v20  ;;  %v9573_v47 = vpop.f32.mrb[10].mxu1  ;;  %v9575_v48 = vpop.f32.mrb[26].mxu0  ;;  %v969_v19 = vld [vmem:[#allocation5 + $0xc40] sm:$0xff] }
 0x260   : > { %v9581_v54 = vpop.f32.mrb[11].mxu1  ;;  %v9583_v59 = vpop.f32.mrb[27].mxu0  ;;  %v985_v20 = vld [vmem:[#allocation5 + $0xcc0] sm:$0xff] }
 0x261   : > { %v8326_v28 = vcombine.high %v969_v19, %v985_v20  ;;  %v8325_v9 = vcombine.low %v969_v19, %v985_v20  ;;  %v1066_v19 = vld [vmem:[#allocation5 + $0xf48] sm:$0xff]  ;;  %v8391_v20 = vcombine.low %v1034_v39, %v1050_v38 }
 0x262   : > { %4252 = vmatpush1.bf16.msra.mxu1 %v8229_v37  ;;  %4325 = vmatpush1.bf16.msra.mxu0 %v8231_v42  ;;  %v8328_v42 = vcombine.high %v970_v0, %v986_v1 }
 0x263   : > { %4253 = vmatprep.subr.bf16.mxu1 %v8262_v49  ;;  %4326 = vmatprep.subr.bf16.mxu0 %v8264_v50  ;;  %v1001_v49 = vld [vmem:[#allocation5 + $0xd40] sm:$0xff]  ;;  %v8327_v50 = vcombine.low %v970_v0, %v986_v1  ;;  %v1082_v0 = vld [vmem:[#allocation5 + $0xfc8] sm:$0xff]  ;;  %v8389_v1 = vcombine.low %v1033_v16, %v1049_v15 }
 0x264   : > { %v8358_v51 = vcombine.high %v1001_v49, %v1017_v2  ;;  %v8357_v46 = vcombine.low %v1001_v49, %v1017_v2  ;;  %v588_v49 = vld [vmem:[#allocation5 + $0x58] sm:$0xff] }
 0x265   : > { %v9589_v53 = vpop.f32.mrb[12].mxu1  ;;  %v9591_v52 = vpop.f32.mrb[28].mxu0  ;;  %v604_v2 = vld [vmem:[#allocation5 + $0xd8] sm:$0xff] }
 0x266   : > { %11292 = vst [vmem:[#allocation17_spill] sm:$0xff] %v9591_v52  ;;  %4254 = vmatpush1.bf16.msra.mxu1 %v8261_v13  ;;  %4327 = vmatpush1.bf16.msra.mxu0 %v8263_v14  ;;  %v9593_v37 = vpop.f32.mrb[13].mxu1  ;;  %v9595_v21 = vpop.f32.mrb[29].mxu0  ;;  %v1002_v13 = vld [vmem:[#allocation5 + $0xd48] sm:$0xff] }
 0x267   : > { %4255 = vmatprep.subr.bf16.mxu1 %v8294_v17  ;;  %4328 = vmatprep.subr.bf16.mxu0 %v8296_v18  ;;  %v9597_v23 = vpop.f32.mrb[14].mxu1  ;;  %v9599_v27 = vpop.f32.mrb[30].mxu0  ;;  %v1018_v14 = vld [vmem:[#allocation5 + $0xdc8] sm:$0xff]  ;;  %v8390_v17 = vcombine.high %v1033_v16, %v1049_v15  ;;  %v8392_v18 = vcombine.high %v1034_v39, %v1050_v38  ;;  %v620_v15 = vld [vmem:[#allocation5 + $0x158] sm:$0xff]  ;;  %v7947_v16 = vcombine.low %v588_v49, %v604_v2 }
 0x268   : > { %11293 = vst [vmem:[#allocation18_spill] sm:$0xff] %v9599_v27  ;;  %v9605_v60 = vpop.f32.mrb[15].mxu1  ;;  %v9607_v63 = vpop.f32.mrb[31].mxu0  ;;  %v8360_v8 = vcombine.high %v1002_v13, %v1018_v14  ;;  %v8359_v45 = vcombine.low %v1002_v13, %v1018_v14  ;;  %v7948_v14 = vcombine.high %v588_v49, %v604_v2  ;;  %v636_v38 = vld [vmem:[#allocation5 + $0x1d8] sm:$0xff] }
 0x269   : > { %v684_v49 = vld [vmem:[#allocation5 + $0x358] sm:$0xff] }
 0x26a   : > { %4256 = vmatpush1.bf16.msra.mxu1 %v8293_v7  ;;  %4329 = vmatpush1.bf16.msra.mxu0 %v8295_v12  ;;  %v1065_v7 = vld [vmem:[#allocation5 + $0xf40] sm:$0xff]  ;;  %v700_v2 = vld [vmem:[#allocation5 + $0x3d8] sm:$0xff] }
 0x26b   : > { %4257 = vmatprep.subr.bf16.mxu1 %v8326_v28  ;;  %4330 = vmatprep.subr.bf16.mxu0 %v8328_v42  ;;  %v1081_v12 = vld [vmem:[#allocation5 + $0xfc0] sm:$0xff]  ;;  %v8424_v42 = vcombine.high %v1066_v19, %v1082_v0 }
 0x26c   : > { %v8422_v28 = vcombine.high %v1065_v7, %v1081_v12 }
 0x26e   : > { %4258 = vmatpush1.bf16.msra.mxu1 %v8325_v9  ;;  %4331 = vmatpush1.bf16.msra.mxu0 %v8327_v50  ;;  %v587_v9 = vld [vmem:[#allocation5 + $0x50] sm:$0xff] }
 0x26f   : > { %4259 = vmatprep.subr.bf16.mxu1 %v8358_v51  ;;  %4332 = vmatprep.subr.bf16.mxu0 %v8360_v8  ;;  %v603_v50 = vld [vmem:[#allocation5 + $0xd0] sm:$0xff]  ;;  %v8421_v8 = vcombine.low %v1065_v7, %v1081_v12  ;;  %v8423_v51 = vcombine.low %v1066_v19, %v1082_v0  ;;  %v652_v12 = vld [vmem:[#allocation5 + $0x258] sm:$0xff] }
 0x270   : > { %v7946_v13 = vcombine.high %v587_v9, %v603_v50  ;;  %v7945_v39 = vcombine.low %v587_v9, %v603_v50  ;;  %v667_v7 = vld [vmem:[#allocation5 + $0x2d0] sm:$0xff]  ;;  %v668_v19 = vld [vmem:[#allocation5 + $0x2d8] sm:$0xff] }
 0x271   : > { %v683_v9 = vld [vmem:[#allocation5 + $0x350] sm:$0xff] }
 0x272   : > { %4260 = vmatpush1.bf16.msra.mxu1 %v8357_v46  ;;  %4333 = vmatpush1.bf16.msra.mxu0 %v8359_v45  ;;  %v619_v46 = vld [vmem:[#allocation5 + $0x150] sm:$0xff] }
 0x273   : > { %4261 = vmatprep.subr.bf16.mxu1 %v8390_v17  ;;  %4334 = vmatprep.subr.bf16.mxu0 %v8392_v18  ;;  %v635_v45 = vld [vmem:[#allocation5 + $0x1d0] sm:$0xff]  ;;  %v7980_v18 = vcombine.high %v620_v15, %v636_v38 }
 0x274   : > { %v7978_v17 = vcombine.high %v619_v46, %v635_v45  ;;  %v7977_v0 = vcombine.low %v619_v46, %v635_v45  ;;  %v699_v50 = vld [vmem:[#allocation5 + $0x3d0] sm:$0xff]  ;;  %v716_v45 = vld [vmem:[#allocation5 + $0x458] sm:$0xff] }
 0x275   : > { %v731_v46 = vld [vmem:[#allocation5 + $0x4d0] sm:$0xff] }
 0x276   : > { %4262 = vmatpush1.bf16.msra.mxu1 %v8389_v1  ;;  %4335 = vmatpush1.bf16.msra.mxu0 %v8391_v20  ;;  %v651_v1 = vld [vmem:[#allocation5 + $0x250] sm:$0xff]  ;;  %v7979_v20 = vcombine.low %v620_v15, %v636_v38  ;;  %v732_v15 = vld [vmem:[#allocation5 + $0x4d8] sm:$0xff]  ;;  %v8041_v38 = vcombine.low %v683_v9, %v699_v50 }
 0x277   : > { %4263 = vmatprep.subr.bf16.mxu1 %v8422_v28  ;;  %4336 = vmatprep.subr.bf16.mxu0 %v8424_v42  ;;  %v8010_v28 = vcombine.high %v651_v1, %v667_v7  ;;  %v8012_v42 = vcombine.high %v652_v12, %v668_v19 }
 0x27a   : > { %4264 = vmatpush1.bf16.msra.mxu1 %v8421_v8  ;;  %4337 = vmatpush1.bf16.msra.mxu0 %v8423_v51  ;;  %v8009_v8 = vcombine.low %v651_v1, %v667_v7  ;;  %v8011_v51 = vcombine.low %v652_v12, %v668_v19  ;;  %v747_v1 = vld [vmem:[#allocation5 + $0x550] sm:$0xff]  ;;  %v748_v12 = vld [vmem:[#allocation5 + $0x558] sm:$0xff] }
 0x27b   : > { %4379 = vmatprep.subr.bf16.mxu1 %v7946_v13  ;;  %4452 = vmatprep.subr.bf16.mxu0 %v7948_v14  ;;  %v8042_v13 = vcombine.high %v683_v9, %v699_v50  ;;  %v8044_v14 = vcombine.high %v684_v49, %v700_v2  ;;  %v763_v7 = vld [vmem:[#allocation5 + $0x5d0] sm:$0xff]  ;;  %v764_v19 = vld [vmem:[#allocation5 + $0x5d8] sm:$0xff] }
 0x27d   : > { %4266 = vmatmul.mubr.bf16.vlgmr.msra.gmra.mrb[64].mxu1 %v9435_v4  ;;  %4339 = vmatmul.mubr.bf16.vlgmr.msra.gmra.mrb[80].mxu0 %v9435_v4 }
 0x27e   : > { %4275 = vmatprep.mubr.bf16.mxu1 %v9445_v30  ;;  %4348 = vmatprep.mubr.bf16.mxu0 %v9445_v30 }
 0x27f   : > { %4380 = vmatpush1.bf16.msra.mxu1 %v7945_v39  ;;  %4453 = vmatpush1.bf16.msra.mxu0 %v7947_v16  ;;  %v715_v39 = vld [vmem:[#allocation5 + $0x450] sm:$0xff]  ;;  %v8043_v16 = vcombine.low %v684_v49, %v700_v2  ;;  %v780_v49 = vld [vmem:[#allocation5 + $0x658] sm:$0xff] }
 0x280   : > { %4381 = vmatprep.subr.bf16.mxu1 %v7978_v17  ;;  %4454 = vmatprep.subr.bf16.mxu0 %v7980_v18  ;;  %v8074_v17 = vcombine.high %v715_v39, %v731_v46  ;;  %v8076_v18 = vcombine.high %v716_v45, %v732_v15  ;;  %v796_v2 = vld [vmem:[#allocation5 + $0x6d8] sm:$0xff] }
 0x283   : > { %4382 = vmatpush1.bf16.msra.mxu1 %v7977_v0  ;;  %4455 = vmatpush1.bf16.msra.mxu0 %v7979_v20  ;;  %v8073_v0 = vcombine.low %v715_v39, %v731_v46  ;;  %v8075_v20 = vcombine.low %v716_v45, %v732_v15  ;;  %v8105_v39 = vcombine.low %v747_v1, %v763_v7 }
 0x284   : > { %4383 = vmatprep.subr.bf16.mxu1 %v8010_v28  ;;  %4456 = vmatprep.subr.bf16.mxu0 %v8012_v42  ;;  %v8106_v28 = vcombine.high %v747_v1, %v763_v7  ;;  %v8108_v42 = vcombine.high %v748_v12, %v764_v19  ;;  %v8107_v46 = vcombine.low %v748_v12, %v764_v19  ;;  %v811_v1 = vld [vmem:[#allocation5 + $0x750] sm:$0xff] }
 0x285   : > { %4276 = vmatmul.mubr.bf16.gmra.mrb[68].mxu1 %v9443_v29  ;;  %4349 = vmatmul.mubr.bf16.gmra.mrb[84].mxu0 %v9443_v29  ;;  %v827_v19 = vld [vmem:[#allocation5 + $0x7d0] sm:$0xff] }
 0x286   : > { %4285 = vmatprep.mubr.bf16.mxu1 %v9453_v58  ;;  %4358 = vmatprep.mubr.bf16.mxu0 %v9453_v58 }
 0x287   : > { %4384 = vmatpush1.bf16.msra.mxu1 %v8009_v8  ;;  %4457 = vmatpush1.bf16.msra.mxu0 %v8011_v51  ;;  %v779_v8 = vld [vmem:[#allocation5 + $0x650] sm:$0xff] }
 0x288   : > { %4385 = vmatprep.subr.bf16.mxu1 %v8042_v13  ;;  %4458 = vmatprep.subr.bf16.mxu0 %v8044_v14  ;;  %v795_v51 = vld [vmem:[#allocation5 + $0x6d0] sm:$0xff] }
 0x28b   : > { %4386 = vmatpush1.bf16.msra.mxu1 %v8041_v38  ;;  %4459 = vmatpush1.bf16.msra.mxu0 %v8043_v16  ;;  %v8138_v38 = vcombine.high %v779_v8, %v795_v51  ;;  %v8139_v16 = vcombine.low %v780_v49, %v796_v2 }
 0x28c   : > { %4387 = vmatprep.subr.bf16.mxu1 %v8074_v17  ;;  %4460 = vmatprep.subr.bf16.mxu0 %v8076_v18  ;;  %v8170_v17 = vcombine.high %v811_v1, %v827_v19 }
 0x28d   : > { %4286 = vmatmul.mubr.bf16.gmra.mrb[72].mxu1 %v9451_v57  ;;  %4359 = vmatmul.mubr.bf16.gmra.mrb[88].mxu0 %v9451_v57  ;;  %v9623_v9 = vpop.f32.mrb[16].mxu1  ;;  %v9625_v50 = vpop.f32.mrb[32].mxu0 }
 0x28e   : > { %11294 = vst [vmem:[#allocation19_spill] sm:$0xff] %v9623_v9  ;;  %11295 = vst [vmem:[#allocation20_spill] sm:$0xff] %v9625_v50  ;;  %4295 = vmatprep.mubr.bf16.mxu1 %v9461_v26  ;;  %4368 = vmatprep.mubr.bf16.mxu0 %v9461_v26  ;;  %v9629_v13 = vpop.f32.mrb[17].mxu1  ;;  %v9631_v14 = vpop.f32.mrb[33].mxu0  ;;  %v859_v9 = vld [vmem:[#allocation5 + $0x8d0] sm:$0xff] }
 0x28f   : > { %11296 = vst [vmem:[#allocation21_spill] sm:$0xff] %v9629_v13  ;;  %11297 = vst [vmem:[#allocation22_spill] sm:$0xff] %v9631_v14  ;;  %4388 = vmatpush1.bf16.msra.mxu1 %v8073_v0  ;;  %4461 = vmatpush1.bf16.msra.mxu0 %v8075_v20  ;;  %v9633_v45 = vpop.f32.mrb[18].mxu1  ;;  %v9635_v15 = vpop.f32.mrb[34].mxu0  ;;  %v8140_v0 = vcombine.high %v780_v49, %v796_v2  ;;  %v812_v20 = vld [vmem:[#allocation5 + $0x758] sm:$0xff]  ;;  %v8169_v49 = vcombine.low %v811_v1, %v827_v19  ;;  %v875_v1 = vld [vmem:[#allocation5 + $0x950] sm:$0xff] }
 0x290   : > { %11298 = vst [vmem:[#allocation23_spill] sm:$0xff] %v9633_v45  ;;  %11299 = vst [vmem:[#allocation24_spill] sm:$0xff] %v9635_v15  ;;  %4389 = vmatprep.subr.bf16.mxu1 %v8106_v28  ;;  %4462 = vmatprep.subr.bf16.mxu0 %v8108_v42  ;;  %v9641_v18 = vpop.f32.mrb[19].mxu1  ;;  %v9643_v52 = vpop.f32.mrb[35].mxu0  ;;  %v828_v28 = vld [vmem:[#allocation5 + $0x7d8] sm:$0xff]  ;;  %v8137_v42 = vcombine.low %v779_v8, %v795_v51  ;;  %v843_v15 = vld [vmem:[#allocation5 + $0x850] sm:$0xff] }
 0x291   : > { %11300 = vst [vmem:[#allocation25_spill] sm:$0xff] %v9641_v18  ;;  %11301 = vst [vmem:[#allocation26_spill] sm:$0xff] %v9643_v52  ;;  %v8172_v50 = vcombine.high %v812_v20, %v828_v28  ;;  %v844_v45 = vld [vmem:[#allocation5 + $0x858] sm:$0xff]  ;;  %v8171_v2 = vcombine.low %v812_v20, %v828_v28 }
 0x292   : > { %v860_v14 = vld [vmem:[#allocation5 + $0x8d8] sm:$0xff] }
 0x293   : > { %4390 = vmatpush1.bf16.msra.mxu1 %v8105_v39  ;;  %4463 = vmatpush1.bf16.msra.mxu0 %v8107_v46  ;;  %v892_v28 = vld [vmem:[#allocation5 + $0x9d8] sm:$0xff] }
 0x294   : > { %4391 = vmatprep.subr.bf16.mxu1 %v8138_v38  ;;  %4464 = vmatprep.subr.bf16.mxu0 %v8140_v0  ;;  %v8202_v38 = vcombine.high %v843_v15, %v859_v9  ;;  %v8203_v0 = vcombine.low %v844_v45, %v860_v14  ;;  %v908_v19 = vld [vmem:[#allocation5 + $0xa58] sm:$0xff] }
 0x295   : > { %4296 = vmatmul.mubr.bf16.gmra.mrb[76].mxu1 %v9459_v22  ;;  %4369 = vmatmul.mubr.bf16.gmra.mrb[92].mxu0 %v9459_v22  ;;  %v9651_v7 = vpop.f32.mrb[20].mxu1  ;;  %v9653_v12 = vpop.f32.mrb[36].mxu0 }
 0x296   : > { %11302 = vst [vmem:[#allocation27_spill] sm:$0xff] %v9651_v7  ;;  %11303 = vst [vmem:[#allocation28_spill] sm:$0xff] %v9653_v12  ;;  %4411 = vmatprep.mubr.bf16.mxu1 %v9437_v5  ;;  %4484 = vmatprep.mubr.bf16.mxu0 %v9437_v5  ;;  %v9657_v8 = vpop.f32.mrb[21].mxu1  ;;  %v9659_v51 = vpop.f32.mrb[37].mxu0  ;;  %v923_v7 = vld [vmem:[#allocation5 + $0xad0] sm:$0xff] }
 0x297   : > { %11304 = vst [vmem:[#allocation29_spill] sm:$0xff] %v9657_v8  ;;  %11305 = vst [vmem:[#allocation30_spill] sm:$0xff] %v9659_v51  ;;  %4392 = vmatpush1.bf16.msra.mxu1 %v8137_v42  ;;  %4465 = vmatpush1.bf16.msra.mxu0 %v8139_v16  ;;  %v9661_v39 = vpop.f32.mrb[22].mxu1  ;;  %v9663_v46 = vpop.f32.mrb[38].mxu0  ;;  %v8204_v16 = vcombine.high %v844_v45, %v860_v14  ;;  %v8201_v42 = vcombine.low %v843_v15, %v859_v9  ;;  %v924_v8 = vld [vmem:[#allocation5 + $0xad8] sm:$0xff] }
 0x298   : > { %11306 = vst [vmem:[#allocation31_spill] sm:$0xff] %v9661_v39  ;;  %11307 = vst [vmem:[#allocation32_spill] sm:$0xff] %v9663_v46  ;;  %4393 = vmatprep.subr.bf16.mxu1 %v8170_v17  ;;  %4466 = vmatprep.subr.bf16.mxu0 %v8172_v50  ;;  %v9669_v13 = vpop.f32.mrb[23].mxu1  ;;  %v9671_v18 = vpop.f32.mrb[39].mxu0  ;;  %v891_v17 = vld [vmem:[#allocation5 + $0x9d0] sm:$0xff]  ;;  %v876_v50 = vld [vmem:[#allocation5 + $0x958] sm:$0xff] }
 0x299   : > { %11308 = vst [vmem:[#allocation33_spill] sm:$0xff] %v9669_v13  ;;  %11309 = vst [vmem:[#allocation34_spill] sm:$0xff] %v9671_v18  ;;  %v8234_v52 = vcombine.high %v875_v1, %v891_v17  ;;  %v8236_v12 = vcombine.high %v876_v50, %v892_v28  ;;  %v907_v46 = vld [vmem:[#allocation5 + $0xa50] sm:$0xff]  ;;  %v8233_v9 = vcombine.low %v875_v1, %v891_v17  ;;  %v972_v17 = vld [vmem:[#allocation5 + $0xc58] sm:$0xff] }
 0x29a   : > { %v8235_v14 = vcombine.low %v876_v50, %v892_v28  ;;  %v939_v1 = vld [vmem:[#allocation5 + $0xb50] sm:$0xff]  ;;  %v956_v28 = vld [vmem:[#allocation5 + $0xbd8] sm:$0xff] }
 0x29b   : > { %4394 = vmatpush1.bf16.msra.mxu1 %v8169_v49  ;;  %4467 = vmatpush1.bf16.msra.mxu0 %v8171_v2  ;;  %v8266_v49 = vcombine.high %v907_v46, %v923_v7  ;;  %v8267_v2 = vcombine.low %v908_v19, %v924_v8 }
 0x29c   : > { %4395 = vmatprep.subr.bf16.mxu1 %v8202_v38  ;;  %4468 = vmatprep.subr.bf16.mxu0 %v8204_v16 }
 0x29d   : > { %v9677_v39 = vpop.f32.mrb[24].mxu1  ;;  %v9679_v27 = vpop.f32.mrb[40].mxu0 }
 0x29e   : > { %11310 = vst [vmem:[#allocation35_spill] sm:$0xff] %v9677_v39  ;;  %11311 = vst [vmem:[#allocation36_spill] sm:$0xff] %v9679_v27  ;;  %v9681_v20 = vpop.f32.mrb[25].mxu1  ;;  %v9683_v51 = vpop.f32.mrb[41].mxu0  ;;  %v987_v39 = vld [vmem:[#allocation5 + $0xcd0] sm:$0xff] }
 0x29f   : > { %11312 = vst [vmem:[#allocation37_spill] sm:$0xff] %v9681_v20  ;;  %11313 = vst [vmem:[#allocation38_spill] sm:$0xff] %v9683_v51  ;;  %4396 = vmatpush1.bf16.msra.mxu1 %v8201_v42  ;;  %4469 = vmatpush1.bf16.msra.mxu0 %v8203_v0  ;;  %v9685_v45 = vpop.f32.mrb[26].mxu1  ;;  %v9687_v15 = vpop.f32.mrb[42].mxu0  ;;  %v8268_v0 = vcombine.high %v908_v19, %v924_v8  ;;  %v8265_v42 = vcombine.low %v907_v46, %v923_v7  ;;  %v988_v20 = vld [vmem:[#allocation5 + $0xcd8] sm:$0xff] }
 0x2a0   : > { %11314 = vst [vmem:[#allocation39_spill] sm:$0xff] %v9685_v45  ;;  %11315 = vst [vmem:[#allocation40_spill] sm:$0xff] %v9687_v15  ;;  %4397 = vmatprep.subr.bf16.mxu1 %v8234_v52  ;;  %4470 = vmatprep.subr.bf16.mxu0 %v8236_v12  ;;  %v9693_v16 = vpop.f32.mrb[27].mxu1  ;;  %v9695_v18 = vpop.f32.mrb[43].mxu0  ;;  %v955_v52 = vld [vmem:[#allocation5 + $0xbd0] sm:$0xff]  ;;  %v940_v12 = vld [vmem:[#allocation5 + $0xb58] sm:$0xff] }
 0x2a1   : > { %11316 = vst [vmem:[#allocation41_spill] sm:$0xff] %v9693_v16  ;;  %11317 = vst [vmem:[#allocation42_spill] sm:$0xff] %v9695_v18  ;;  %v8298_v38 = vcombine.high %v939_v1, %v955_v52  ;;  %v8300_v27 = vcombine.high %v940_v12, %v956_v28  ;;  %v971_v15 = vld [vmem:[#allocation5 + $0xc50] sm:$0xff]  ;;  %v8297_v7 = vcombine.low %v939_v1, %v955_v52  ;;  %v1052_v16 = vld [vmem:[#allocation5 + $0xed8] sm:$0xff] }
 0x2a2   : > { %v8299_v8 = vcombine.low %v940_v12, %v956_v28  ;;  %v1003_v1 = vld [vmem:[#allocation5 + $0xd50] sm:$0xff]  ;;  %v1020_v28 = vld [vmem:[#allocation5 + $0xdd8] sm:$0xff] }
 0x2a3   : > { %4398 = vmatpush1.bf16.msra.mxu1 %v8233_v9  ;;  %4471 = vmatpush1.bf16.msra.mxu0 %v8235_v14  ;;  %v8330_v9 = vcombine.high %v971_v15, %v987_v39  ;;  %v8331_v14 = vcombine.low %v972_v17, %v988_v20 }
 0x2a4   : > { %4399 = vmatprep.subr.bf16.mxu1 %v8266_v49  ;;  %4472 = vmatprep.subr.bf16.mxu0 %v8268_v0 }
 0x2a5   : > { %v9701_v45 = vpop.f32.mrb[28].mxu1  ;;  %v9703_v13 = vpop.f32.mrb[44].mxu0 }
 0x2a6   : > { %11318 = vst [vmem:[#allocation43_spill] sm:$0xff] %v9701_v45  ;;  %11319 = vst [vmem:[#allocation44_spill] sm:$0xff] %v9703_v13  ;;  %v9705_v50 = vpop.f32.mrb[29].mxu1  ;;  %v9707_v51 = vpop.f32.mrb[45].mxu0  ;;  %v1051_v45 = vld [vmem:[#allocation5 + $0xed0] sm:$0xff] }
 0x2a7   : > { %11320 = vst [vmem:[#allocation45_spill] sm:$0xff] %v9705_v50  ;;  %11321 = vst [vmem:[#allocation46_spill] sm:$0xff] %v9707_v51  ;;  %4400 = vmatpush1.bf16.msra.mxu1 %v8265_v42  ;;  %4473 = vmatpush1.bf16.msra.mxu0 %v8267_v2  ;;  %v9709_v46 = vpop.f32.mrb[30].mxu1  ;;  %v9711_v19 = vpop.f32.mrb[46].mxu0  ;;  %v8332_v2 = vcombine.high %v972_v17, %v988_v20  ;;  %v8329_v42 = vcombine.low %v971_v15, %v987_v39  ;;  %v1068_v39 = vld [vmem:[#allocation5 + $0xf58] sm:$0xff] }
 0x2a8   : > { %11322 = vst [vmem:[#allocation47_spill] sm:$0xff] %v9709_v46  ;;  %11323 = vst [vmem:[#allocation48_spill] sm:$0xff] %v9711_v19  ;;  %4401 = vmatprep.subr.bf16.mxu1 %v8298_v38  ;;  %4474 = vmatprep.subr.bf16.mxu0 %v8300_v27  ;;  %v9717_v0 = vpop.f32.mrb[31].mxu1  ;;  %v9719_v18 = vpop.f32.mrb[47].mxu0  ;;  %v1019_v38 = vld [vmem:[#allocation5 + $0xdd0] sm:$0xff]  ;;  %v1004_v27 = vld [vmem:[#allocation5 + $0xd58] sm:$0xff] }
 0x2a9   : > { %11324 = vst [vmem:[#allocation49_spill] sm:$0xff] %v9717_v0  ;;  %11325 = vst [vmem:[#allocation50_spill] sm:$0xff] %v9719_v18  ;;  %v8362_v49 = vcombine.high %v1003_v1, %v1019_v38  ;;  %v8364_v13 = vcombine.high %v1004_v27, %v1020_v28  ;;  %v1035_v19 = vld [vmem:[#allocation5 + $0xe50] sm:$0xff]  ;;  %v1036_v46 = vld [vmem:[#allocation5 + $0xe58] sm:$0xff]  ;;  %v8361_v52 = vcombine.low %v1003_v1, %v1019_v38 }
 0x2aa   : > { %v8363_v50 = vcombine.low %v1004_v27, %v1020_v28  ;;  %v8394_v12 = vcombine.high %v1035_v19, %v1051_v45  ;;  %v8396_v51 = vcombine.high %v1036_v46, %v1052_v16  ;;  %v1084_v20 = vld [vmem:[#allocation5 + $0xfd8] sm:$0xff]  ;;  %v8393_v15 = vcombine.low %v1035_v19, %v1051_v45  ;;  %v590_v1 = vld [vmem:[#allocation5 + $0x68] sm:$0xff] }
 0x2ab   : > { %4402 = vmatpush1.bf16.msra.mxu1 %v8297_v7  ;;  %4475 = vmatpush1.bf16.msra.mxu0 %v8299_v8  ;;  %v1067_v7 = vld [vmem:[#allocation5 + $0xf50] sm:$0xff]  ;;  %v8395_v17 = vcombine.low %v1036_v46, %v1052_v16  ;;  %v606_v38 = vld [vmem:[#allocation5 + $0xe8] sm:$0xff] }
 0x2ac   : > { %4403 = vmatprep.subr.bf16.mxu1 %v8330_v9  ;;  %4476 = vmatprep.subr.bf16.mxu0 %v8332_v2  ;;  %v1083_v8 = vld [vmem:[#allocation5 + $0xfd0] sm:$0xff]  ;;  %v8428_v2 = vcombine.high %v1068_v39, %v1084_v20  ;;  %v7952_v28 = vcombine.high %v590_v1, %v606_v38  ;;  %v622_v45 = vld [vmem:[#allocation5 + $0x168] sm:$0xff]  ;;  %v7951_v46 = vcombine.low %v590_v1, %v606_v38 }
 0x2ad   : > { %v8426_v9 = vcombine.high %v1067_v7, %v1083_v8  ;;  %v638_v16 = vld [vmem:[#allocation5 + $0x1e8] sm:$0xff] }
 0x2ae   : > { %v686_v1 = vld [vmem:[#allocation5 + $0x368] sm:$0xff] }
 0x2af   : > { %4404 = vmatpush1.bf16.msra.mxu1 %v8329_v42  ;;  %4477 = vmatpush1.bf16.msra.mxu0 %v8331_v14  ;;  %v589_v42 = vld [vmem:[#allocation5 + $0x60] sm:$0xff]  ;;  %v702_v38 = vld [vmem:[#allocation5 + $0x3e8] sm:$0xff] }
 0x2b0   : > { %4405 = vmatprep.subr.bf16.mxu1 %v8362_v49  ;;  %4478 = vmatprep.subr.bf16.mxu0 %v8364_v13  ;;  %v605_v14 = vld [vmem:[#allocation5 + $0xe0] sm:$0xff]  ;;  %v8425_v13 = vcombine.low %v1067_v7, %v1083_v8  ;;  %v8427_v49 = vcombine.low %v1068_v39, %v1084_v20  ;;  %v654_v8 = vld [vmem:[#allocation5 + $0x268] sm:$0xff] }
 0x2b1   : > { %v7950_v27 = vcombine.high %v589_v42, %v605_v14  ;;  %v669_v7 = vld [vmem:[#allocation5 + $0x2e0] sm:$0xff]  ;;  %v670_v39 = vld [vmem:[#allocation5 + $0x2e8] sm:$0xff] }
 0x2b3   : > { %4406 = vmatpush1.bf16.msra.mxu1 %v8361_v52  ;;  %4479 = vmatpush1.bf16.msra.mxu0 %v8363_v50  ;;  %v621_v52 = vld [vmem:[#allocation5 + $0x160] sm:$0xff] }
 0x2b4   : > { %4407 = vmatprep.subr.bf16.mxu1 %v8394_v12  ;;  %4480 = vmatprep.subr.bf16.mxu0 %v8396_v51  ;;  %v637_v50 = vld [vmem:[#allocation5 + $0x1e0] sm:$0xff]  ;;  %v7949_v51 = vcombine.low %v589_v42, %v605_v14  ;;  %v7984_v12 = vcombine.high %v622_v45, %v638_v16 }
 0x2b5   : > { %v7982_v19 = vcombine.high %v621_v52, %v637_v50  ;;  %v7981_v20 = vcombine.low %v621_v52, %v637_v50  ;;  %v685_v42 = vld [vmem:[#allocation5 + $0x360] sm:$0xff]  ;;  %v718_v50 = vld [vmem:[#allocation5 + $0x468] sm:$0xff] }
 0x2b6   : > { %v701_v14 = vld [vmem:[#allocation5 + $0x3e0] sm:$0xff] }
 0x2b7   : > { %4408 = vmatpush1.bf16.msra.mxu1 %v8393_v15  ;;  %4481 = vmatpush1.bf16.msra.mxu0 %v8395_v17  ;;  %v653_v15 = vld [vmem:[#allocation5 + $0x260] sm:$0xff]  ;;  %v7983_v17 = vcombine.low %v622_v45, %v638_v16  ;;  %v734_v45 = vld [vmem:[#allocation5 + $0x4e8] sm:$0xff]  ;;  %v8045_v16 = vcombine.low %v685_v42, %v701_v14 }
 0x2b8   : > { %4409 = vmatprep.subr.bf16.mxu1 %v8426_v9  ;;  %4482 = vmatprep.subr.bf16.mxu0 %v8428_v2  ;;  %v8014_v9 = vcombine.high %v653_v15, %v669_v7  ;;  %v8016_v2 = vcombine.high %v654_v8, %v670_v39  ;;  %v733_v52 = vld [vmem:[#allocation5 + $0x4e0] sm:$0xff] }
 0x2bb   : > { %4410 = vmatpush1.bf16.msra.mxu1 %v8425_v13  ;;  %4483 = vmatpush1.bf16.msra.mxu0 %v8427_v49  ;;  %v8013_v13 = vcombine.low %v653_v15, %v669_v7  ;;  %v8015_v49 = vcombine.low %v654_v8, %v670_v39  ;;  %v749_v15 = vld [vmem:[#allocation5 + $0x560] sm:$0xff]  ;;  %v750_v8 = vld [vmem:[#allocation5 + $0x568] sm:$0xff] }
 0x2bc   : > { %4525 = vmatprep.subr.bf16.mxu1 %v7950_v27  ;;  %4598 = vmatprep.subr.bf16.mxu0 %v7952_v28  ;;  %v8046_v27 = vcombine.high %v685_v42, %v701_v14  ;;  %v8048_v28 = vcombine.high %v686_v1, %v702_v38  ;;  %v765_v7 = vld [vmem:[#allocation5 + $0x5e0] sm:$0xff]  ;;  %v766_v39 = vld [vmem:[#allocation5 + $0x5e8] sm:$0xff] }
 0x2be   : > { %4412 = vmatmul.mubr.bf16.vlgmr.msra.gmra.mrb[80].mxu1 %v9435_v4  ;;  %4485 = vmatmul.mubr.bf16.vlgmr.msra.gmra.mrb[96].mxu0 %v9435_v4 }
 0x2bf   : > { %4421 = vmatprep.mubr.bf16.mxu1 %v9445_v30  ;;  %4494 = vmatprep.mubr.bf16.mxu0 %v9445_v30 }
 0x2c0   : > { %4526 = vmatpush1.bf16.msra.mxu1 %v7949_v51  ;;  %4599 = vmatpush1.bf16.msra.mxu0 %v7951_v46  ;;  %v717_v51 = vld [vmem:[#allocation5 + $0x460] sm:$0xff]  ;;  %v8047_v46 = vcombine.low %v686_v1, %v702_v38  ;;  %v782_v1 = vld [vmem:[#allocation5 + $0x668] sm:$0xff] }
 0x2c1   : > { %4527 = vmatprep.subr.bf16.mxu1 %v7982_v19  ;;  %4600 = vmatprep.subr.bf16.mxu0 %v7984_v12  ;;  %v8078_v19 = vcombine.high %v717_v51, %v733_v52  ;;  %v8080_v12 = vcombine.high %v718_v50, %v734_v45  ;;  %v798_v38 = vld [vmem:[#allocation5 + $0x6e8] sm:$0xff] }
 0x2c4   : > { %4528 = vmatpush1.bf16.msra.mxu1 %v7981_v20  ;;  %4601 = vmatpush1.bf16.msra.mxu0 %v7983_v17  ;;  %v8077_v20 = vcombine.low %v717_v51, %v733_v52  ;;  %v8079_v17 = vcombine.low %v718_v50, %v734_v45  ;;  %v8109_v51 = vcombine.low %v749_v15, %v765_v7 }
 0x2c5   : > { %4529 = vmatprep.subr.bf16.mxu1 %v8014_v9  ;;  %4602 = vmatprep.subr.bf16.mxu0 %v8016_v2  ;;  %v8110_v9 = vcombine.high %v749_v15, %v765_v7  ;;  %v8112_v2 = vcombine.high %v750_v8, %v766_v39  ;;  %v8111_v52 = vcombine.low %v750_v8, %v766_v39  ;;  %v813_v15 = vld [vmem:[#allocation5 + $0x760] sm:$0xff] }
 0x2c6   : > { %4422 = vmatmul.mubr.bf16.gmra.mrb[84].mxu1 %v9443_v29  ;;  %4495 = vmatmul.mubr.bf16.gmra.mrb[100].mxu0 %v9443_v29  ;;  %v829_v39 = vld [vmem:[#allocation5 + $0x7e0] sm:$0xff] }
 0x2c7   : > { %4431 = vmatprep.mubr.bf16.mxu1 %v9453_v58  ;;  %4504 = vmatprep.mubr.bf16.mxu0 %v9453_v58 }
 0x2c8   : > { %4530 = vmatpush1.bf16.msra.mxu1 %v8013_v13  ;;  %4603 = vmatpush1.bf16.msra.mxu0 %v8015_v49  ;;  %v781_v13 = vld [vmem:[#allocation5 + $0x660] sm:$0xff] }
 0x2c9   : > { %4531 = vmatprep.subr.bf16.mxu1 %v8046_v27  ;;  %4604 = vmatprep.subr.bf16.mxu0 %v8048_v28  ;;  %v797_v49 = vld [vmem:[#allocation5 + $0x6e0] sm:$0xff] }
 0x2cc   : > { %4532 = vmatpush1.bf16.msra.mxu1 %v8045_v16  ;;  %4605 = vmatpush1.bf16.msra.mxu0 %v8047_v46  ;;  %v8142_v16 = vcombine.high %v781_v13, %v797_v49  ;;  %v8143_v46 = vcombine.low %v782_v1, %v798_v38 }
 0x2cd   : > { %4533 = vmatprep.subr.bf16.mxu1 %v8078_v19  ;;  %4606 = vmatprep.subr.bf16.mxu0 %v8080_v12  ;;  %v8174_v19 = vcombine.high %v813_v15, %v829_v39 }
 0x2ce   : > { %4432 = vmatmul.mubr.bf16.gmra.mrb[88].mxu1 %v9451_v57  ;;  %4505 = vmatmul.mubr.bf16.gmra.mrb[104].mxu0 %v9451_v57  ;;  %v9735_v42 = vpop.f32.mrb[32].mxu1  ;;  %v9737_v14 = vpop.f32.mrb[48].mxu0 }
 0x2cf   : > { %11326 = vst [vmem:[#allocation51_spill] sm:$0xff] %v9735_v42  ;;  %11327 = vst [vmem:[#allocation52_spill] sm:$0xff] %v9737_v14  ;;  %4441 = vmatprep.mubr.bf16.mxu1 %v9461_v26  ;;  %4514 = vmatprep.mubr.bf16.mxu0 %v9461_v26  ;;  %v9741_v27 = vpop.f32.mrb[33].mxu1  ;;  %v9743_v28 = vpop.f32.mrb[49].mxu0  ;;  %v861_v42 = vld [vmem:[#allocation5 + $0x8e0] sm:$0xff] }
 0x2d0   : > { %11328 = vst [vmem:[#allocation53_spill] sm:$0xff] %v9741_v27  ;;  %11329 = vst [vmem:[#allocation54_spill] sm:$0xff] %v9743_v28  ;;  %4534 = vmatpush1.bf16.msra.mxu1 %v8077_v20  ;;  %4607 = vmatpush1.bf16.msra.mxu0 %v8079_v17  ;;  %v9745_v50 = vpop.f32.mrb[34].mxu1  ;;  %v9747_v45 = vpop.f32.mrb[50].mxu0  ;;  %v8144_v20 = vcombine.high %v782_v1, %v798_v38  ;;  %v814_v17 = vld [vmem:[#allocation5 + $0x768] sm:$0xff]  ;;  %v8173_v1 = vcombine.low %v813_v15, %v829_v39  ;;  %v877_v15 = vld [vmem:[#allocation5 + $0x960] sm:$0xff] }
 0x2d1   : > { %11330 = vst [vmem:[#allocation55_spill] sm:$0xff] %v9745_v50  ;;  %11331 = vst [vmem:[#allocation56_spill] sm:$0xff] %v9747_v45  ;;  %4535 = vmatprep.subr.bf16.mxu1 %v8110_v9  ;;  %4608 = vmatprep.subr.bf16.mxu0 %v8112_v2  ;;  %v9753_v12 = vpop.f32.mrb[35].mxu1  ;;  %v9755_v18 = vpop.f32.mrb[51].mxu0  ;;  %v830_v9 = vld [vmem:[#allocation5 + $0x7e8] sm:$0xff]  ;;  %v8141_v2 = vcombine.low %v781_v13, %v797_v49  ;;  %v845_v45 = vld [vmem:[#allocation5 + $0x860] sm:$0xff] }
 0x2d2   : > { %11332 = vst [vmem:[#allocation57_spill] sm:$0xff] %v9753_v12  ;;  %11333 = vst [vmem:[#allocation58_spill] sm:$0xff] %v9755_v18  ;;  %v8176_v14 = vcombine.high %v814_v17, %v830_v9  ;;  %v846_v50 = vld [vmem:[#allocation5 + $0x868] sm:$0xff]  ;;  %v8175_v38 = vcombine.low %v814_v17, %v830_v9 }
 0x2d3   : > { %v862_v28 = vld [vmem:[#allocation5 + $0x8e8] sm:$0xff] }
 0x2d4   : > { %4536 = vmatpush1.bf16.msra.mxu1 %v8109_v51  ;;  %4609 = vmatpush1.bf16.msra.mxu0 %v8111_v52  ;;  %v894_v9 = vld [vmem:[#allocation5 + $0x9e8] sm:$0xff] }
 0x2d5   : > { %4537 = vmatprep.subr.bf16.mxu1 %v8142_v16  ;;  %4610 = vmatprep.subr.bf16.mxu0 %v8144_v20  ;;  %v8206_v16 = vcombine.high %v845_v45, %v861_v42  ;;  %v8207_v20 = vcombine.low %v846_v50, %v862_v28  ;;  %v910_v39 = vld [vmem:[#allocation5 + $0xa68] sm:$0xff] }
 0x2d6   : > { %4442 = vmatmul.mubr.bf16.gmra.mrb[92].mxu1 %v9459_v22  ;;  %4515 = vmatmul.mubr.bf16.gmra.mrb[108].mxu0 %v9459_v22  ;;  %v9763_v7 = vpop.f32.mrb[36].mxu1  ;;  %v9765_v8 = vpop.f32.mrb[52].mxu0 }
 0x2d7   : > { %11334 = vst [vmem:[#allocation59_spill] sm:$0xff] %v9763_v7  ;;  %11335 = vst [vmem:[#allocation60_spill] sm:$0xff] %v9765_v8  ;;  %4557 = vmatprep.mubr.bf16.mxu1 %v9437_v5  ;;  %4630 = vmatprep.mubr.bf16.mxu0 %v9437_v5  ;;  %v9769_v13 = vpop.f32.mrb[37].mxu1  ;;  %v9771_v49 = vpop.f32.mrb[53].mxu0  ;;  %v925_v7 = vld [vmem:[#allocation5 + $0xae0] sm:$0xff] }
 0x2d8   : > { %11336 = vst [vmem:[#allocation61_spill] sm:$0xff] %v9769_v13  ;;  %11337 = vst [vmem:[#allocation62_spill] sm:$0xff] %v9771_v49  ;;  %4538 = vmatpush1.bf16.msra.mxu1 %v8141_v2  ;;  %4611 = vmatpush1.bf16.msra.mxu0 %v8143_v46  ;;  %v9773_v51 = vpop.f32.mrb[38].mxu1  ;;  %v9775_v52 = vpop.f32.mrb[54].mxu0  ;;  %v8208_v46 = vcombine.high %v846_v50, %v862_v28  ;;  %v8205_v2 = vcombine.low %v845_v45, %v861_v42  ;;  %v926_v13 = vld [vmem:[#allocation5 + $0xae8] sm:$0xff] }
 0x2d9   : > { %11338 = vst [vmem:[#allocation63_spill] sm:$0xff] %v9773_v51  ;;  %11339 = vst [vmem:[#allocation64_spill] sm:$0xff] %v9775_v52  ;;  %4539 = vmatprep.subr.bf16.mxu1 %v8174_v19  ;;  %4612 = vmatprep.subr.bf16.mxu0 %v8176_v14  ;;  %v9781_v27 = vpop.f32.mrb[39].mxu1  ;;  %v9783_v12 = vpop.f32.mrb[55].mxu0  ;;  %v893_v19 = vld [vmem:[#allocation5 + $0x9e0] sm:$0xff]  ;;  %v878_v14 = vld [vmem:[#allocation5 + $0x968] sm:$0xff] }
 0x2da   : > { %11340 = vst [vmem:[#allocation65_spill] sm:$0xff] %v9781_v27  ;;  %11341 = vst [vmem:[#allocation66_spill] sm:$0xff] %v9783_v12  ;;  %v8238_v18 = vcombine.high %v877_v15, %v893_v19  ;;  %v8240_v8 = vcombine.high %v878_v14, %v894_v9  ;;  %v909_v52 = vld [vmem:[#allocation5 + $0xa60] sm:$0xff]  ;;  %v8237_v42 = vcombine.low %v877_v15, %v893_v19  ;;  %v974_v19 = vld [vmem:[#allocation5 + $0xc68] sm:$0xff] }
 0x2db   : > { %v8239_v28 = vcombine.low %v878_v14, %v894_v9  ;;  %v941_v15 = vld [vmem:[#allocation5 + $0xb60] sm:$0xff]  ;;  %v958_v9 = vld [vmem:[#allocation5 + $0xbe8] sm:$0xff] }
 0x2dc   : > { %4540 = vmatpush1.bf16.msra.mxu1 %v8173_v1  ;;  %4613 = vmatpush1.bf16.msra.mxu0 %v8175_v38  ;;  %v8270_v1 = vcombine.high %v909_v52, %v925_v7  ;;  %v8271_v38 = vcombine.low %v910_v39, %v926_v13 }
 0x2dd   : > { %4541 = vmatprep.subr.bf16.mxu1 %v8206_v16  ;;  %4614 = vmatprep.subr.bf16.mxu0 %v8208_v46 }
 0x2de   : > { %v9789_v51 = vpop.f32.mrb[40].mxu1  ;;  %v9791_v0 = vpop.f32.mrb[56].mxu0 }
 0x2df   : > { %11342 = vst [vmem:[#allocation67_spill] sm:$0xff] %v9789_v51  ;;  %11343 = vst [vmem:[#allocation68_spill] sm:$0xff] %v9791_v0  ;;  %v9793_v17 = vpop.f32.mrb[41].mxu1  ;;  %v9795_v49 = vpop.f32.mrb[57].mxu0  ;;  %v989_v51 = vld [vmem:[#allocation5 + $0xce0] sm:$0xff] }
 0x2e0   : > { %11344 = vst [vmem:[#allocation69_spill] sm:$0xff] %v9793_v17  ;;  %11345 = vst [vmem:[#allocation70_spill] sm:$0xff] %v9795_v49  ;;  %4542 = vmatpush1.bf16.msra.mxu1 %v8205_v2  ;;  %4615 = vmatpush1.bf16.msra.mxu0 %v8207_v20  ;;  %v9797_v50 = vpop.f32.mrb[42].mxu1  ;;  %v9799_v45 = vpop.f32.mrb[58].mxu0  ;;  %v8272_v20 = vcombine.high %v910_v39, %v926_v13  ;;  %v8269_v2 = vcombine.low %v909_v52, %v925_v7  ;;  %v990_v17 = vld [vmem:[#allocation5 + $0xce8] sm:$0xff] }
 0x2e1   : > { %11346 = vst [vmem:[#allocation71_spill] sm:$0xff] %v9797_v50  ;;  %11347 = vst [vmem:[#allocation72_spill] sm:$0xff] %v9799_v45  ;;  %4543 = vmatprep.subr.bf16.mxu1 %v8238_v18  ;;  %4616 = vmatprep.subr.bf16.mxu0 %v8240_v8  ;;  %v9805_v46 = vpop.f32.mrb[43].mxu1  ;;  %v9807_v12 = vpop.f32.mrb[59].mxu0  ;;  %v957_v18 = vld [vmem:[#allocation5 + $0xbe0] sm:$0xff]  ;;  %v942_v8 = vld [vmem:[#allocation5 + $0xb68] sm:$0xff] }
 0x2e2   : > { %11348 = vst [vmem:[#allocation73_spill] sm:$0xff] %v9805_v46  ;;  %11349 = vst [vmem:[#allocation74_spill] sm:$0xff] %v9807_v12  ;;  %v8302_v16 = vcombine.high %v941_v15, %v957_v18  ;;  %v8304_v0 = vcombine.high %v942_v8, %v958_v9  ;;  %v973_v45 = vld [vmem:[#allocation5 + $0xc60] sm:$0xff]  ;;  %v8301_v7 = vcombine.low %v941_v15, %v957_v18  ;;  %v1054_v46 = vld [vmem:[#allocation5 + $0xee8] sm:$0xff] }
 0x2e3   : > { %v8303_v13 = vcombine.low %v942_v8, %v958_v9  ;;  %v1005_v15 = vld [vmem:[#allocation5 + $0xd60] sm:$0xff]  ;;  %v1022_v9 = vld [vmem:[#allocation5 + $0xde8] sm:$0xff] }
 0x2e4   : > { %4544 = vmatpush1.bf16.msra.mxu1 %v8237_v42  ;;  %4617 = vmatpush1.bf16.msra.mxu0 %v8239_v28  ;;  %v8334_v42 = vcombine.high %v973_v45, %v989_v51  ;;  %v8335_v28 = vcombine.low %v974_v19, %v990_v17 }
 0x2e5   : > { %4545 = vmatprep.subr.bf16.mxu1 %v8270_v1  ;;  %4618 = vmatprep.subr.bf16.mxu0 %v8272_v20 }
 0x2e6   : > { %v9813_v50 = vpop.f32.mrb[44].mxu1  ;;  %v9815_v27 = vpop.f32.mrb[60].mxu0 }
 0x2e7   : > { %11350 = vst [vmem:[#allocation75_spill] sm:$0xff] %v9813_v50  ;;  %11351 = vst [vmem:[#allocation76_spill] sm:$0xff] %v9815_v27  ;;  %v9817_v14 = vpop.f32.mrb[45].mxu1  ;;  %v9819_v49 = vpop.f32.mrb[61].mxu0  ;;  %v1053_v50 = vld [vmem:[#allocation5 + $0xee0] sm:$0xff] }
 0x2e8   : > { %11352 = vst [vmem:[#allocation77_spill] sm:$0xff] %v9817_v14  ;;  %11353 = vst [vmem:[#allocation78_spill] sm:$0xff] %v9819_v49  ;;  %4546 = vmatpush1.bf16.msra.mxu1 %v8269_v2  ;;  %4619 = vmatpush1.bf16.msra.mxu0 %v8271_v38  ;;  %v9821_v52 = vpop.f32.mrb[46].mxu1  ;;  %v9823_v39 = vpop.f32.mrb[62].mxu0  ;;  %v8336_v38 = vcombine.high %v974_v19, %v990_v17  ;;  %v8333_v2 = vcombine.low %v973_v45, %v989_v51  ;;  %v1070_v51 = vld [vmem:[#allocation5 + $0xf68] sm:$0xff] }
 0x2e9   : > { %11354 = vst [vmem:[#allocation79_spill] sm:$0xff] %v9821_v52  ;;  %11355 = vst [vmem:[#allocation80_spill] sm:$0xff] %v9823_v39  ;;  %4547 = vmatprep.subr.bf16.mxu1 %v8302_v16  ;;  %4620 = vmatprep.subr.bf16.mxu0 %v8304_v0  ;;  %v9829_v20 = vpop.f32.mrb[47].mxu1  ;;  %v9831_v12 = vpop.f32.mrb[63].mxu0  ;;  %v1021_v16 = vld [vmem:[#allocation5 + $0xde0] sm:$0xff]  ;;  %v1006_v0 = vld [vmem:[#allocation5 + $0xd68] sm:$0xff] }
 0x2ea   : > { %11356 = vst [vmem:[#allocation81_spill] sm:$0xff] %v9831_v12  ;;  %v8366_v1 = vcombine.high %v1005_v15, %v1021_v16  ;;  %v8368_v27 = vcombine.high %v1006_v0, %v1022_v9  ;;  %v1037_v39 = vld [vmem:[#allocation5 + $0xe60] sm:$0xff]  ;;  %v1038_v52 = vld [vmem:[#allocation5 + $0xe68] sm:$0xff]  ;;  %v8365_v18 = vcombine.low %v1005_v15, %v1021_v16  ;;  %v8367_v14 = vcombine.low %v1006_v0, %v1022_v9  ;;  %v592_v15 = vld [vmem:[#allocation5 + $0x78] sm:$0xff] }
 0x2eb   : > { %v8398_v8 = vcombine.high %v1037_v39, %v1053_v50  ;;  %v8400_v49 = vcombine.high %v1038_v52, %v1054_v46  ;;  %v1086_v17 = vld [vmem:[#allocation5 + $0xfe8] sm:$0xff]  ;;  %v8397_v45 = vcombine.low %v1037_v39, %v1053_v50  ;;  %v8399_v19 = vcombine.low %v1038_v52, %v1054_v46  ;;  %v608_v16 = vld [vmem:[#allocation5 + $0xf8] sm:$0xff] }
 0x2ec   : > { %4548 = vmatpush1.bf16.msra.mxu1 %v8301_v7  ;;  %4621 = vmatpush1.bf16.msra.mxu0 %v8303_v13  ;;  %v1069_v7 = vld [vmem:[#allocation5 + $0xf60] sm:$0xff]  ;;  %v7956_v9 = vcombine.high %v592_v15, %v608_v16  ;;  %v624_v50 = vld [vmem:[#allocation5 + $0x178] sm:$0xff]  ;;  %v7955_v52 = vcombine.low %v592_v15, %v608_v16 }
 0x2ed   : > { %4549 = vmatprep.subr.bf16.mxu1 %v8334_v42  ;;  %4622 = vmatprep.subr.bf16.mxu0 %v8336_v38  ;;  %v1085_v13 = vld [vmem:[#allocation5 + $0xfe0] sm:$0xff]  ;;  %v8432_v38 = vcombine.high %v1070_v51, %v1086_v17  ;;  %v640_v46 = vld [vmem:[#allocation5 + $0x1f8] sm:$0xff] }
 0x2ee   : > { %v8430_v42 = vcombine.high %v1069_v7, %v1085_v13  ;;  %v688_v15 = vld [vmem:[#allocation5 + $0x378] sm:$0xff] }
 0x2ef   : > { %v704_v16 = vld [vmem:[#allocation5 + $0x3f8] sm:$0xff] }
 0x2f0   : > { %4550 = vmatpush1.bf16.msra.mxu1 %v8333_v2  ;;  %4623 = vmatpush1.bf16.msra.mxu0 %v8335_v28  ;;  %v591_v2 = vld [vmem:[#allocation5 + $0x70] sm:$0xff] }
 0x2f1   : > { %4551 = vmatprep.subr.bf16.mxu1 %v8366_v1  ;;  %4624 = vmatprep.subr.bf16.mxu0 %v8368_v27  ;;  %v607_v28 = vld [vmem:[#allocation5 + $0xf0] sm:$0xff]  ;;  %v8429_v27 = vcombine.low %v1069_v7, %v1085_v13  ;;  %v8431_v1 = vcombine.low %v1070_v51, %v1086_v17  ;;  %v656_v13 = vld [vmem:[#allocation5 + $0x278] sm:$0xff] }
 0x2f2   : > { %v7954_v0 = vcombine.high %v591_v2, %v607_v28  ;;  %v671_v7 = vld [vmem:[#allocation5 + $0x2f0] sm:$0xff]  ;;  %v672_v51 = vld [vmem:[#allocation5 + $0x2f8] sm:$0xff] }
 0x2f4   : > { %4552 = vmatpush1.bf16.msra.mxu1 %v8365_v18  ;;  %4625 = vmatpush1.bf16.msra.mxu0 %v8367_v14  ;;  %v623_v18 = vld [vmem:[#allocation5 + $0x170] sm:$0xff] }
 0x2f5   : > { %4553 = vmatprep.subr.bf16.mxu1 %v8398_v8  ;;  %4626 = vmatprep.subr.bf16.mxu0 %v8400_v49  ;;  %v639_v14 = vld [vmem:[#allocation5 + $0x1f0] sm:$0xff]  ;;  %v7953_v49 = vcombine.low %v591_v2, %v607_v28  ;;  %v7988_v8 = vcombine.high %v624_v50, %v640_v46 }
 0x2f6   : > { %v7986_v39 = vcombine.high %v623_v18, %v639_v14  ;;  %v7985_v17 = vcombine.low %v623_v18, %v639_v14  ;;  %v687_v2 = vld [vmem:[#allocation5 + $0x370] sm:$0xff]  ;;  %v720_v14 = vld [vmem:[#allocation5 + $0x478] sm:$0xff] }
 0x2f7   : > { %v703_v28 = vld [vmem:[#allocation5 + $0x3f0] sm:$0xff] }
 0x2f8   : > { %4554 = vmatpush1.bf16.msra.mxu1 %v8397_v45  ;;  %4627 = vmatpush1.bf16.msra.mxu0 %v8399_v19  ;;  %v655_v45 = vld [vmem:[#allocation5 + $0x270] sm:$0xff]  ;;  %v7987_v19 = vcombine.low %v624_v50, %v640_v46  ;;  %v736_v50 = vld [vmem:[#allocation5 + $0x4f8] sm:$0xff]  ;;  %v8049_v46 = vcombine.low %v687_v2, %v703_v28 }
 0x2f9   : > { %4555 = vmatprep.subr.bf16.mxu1 %v8430_v42  ;;  %4628 = vmatprep.subr.bf16.mxu0 %v8432_v38  ;;  %v8018_v42 = vcombine.high %v655_v45, %v671_v7  ;;  %v8020_v38 = vcombine.high %v656_v13, %v672_v51  ;;  %v735_v18 = vld [vmem:[#allocation5 + $0x4f0] sm:$0xff] }
 0x2fc   : > { %4556 = vmatpush1.bf16.msra.mxu1 %v8429_v27  ;;  %4629 = vmatpush1.bf16.msra.mxu0 %v8431_v1  ;;  %v8017_v27 = vcombine.low %v655_v45, %v671_v7  ;;  %v8019_v1 = vcombine.low %v656_v13, %v672_v51  ;;  %v751_v45 = vld [vmem:[#allocation5 + $0x570] sm:$0xff]  ;;  %v752_v13 = vld [vmem:[#allocation5 + $0x578] sm:$0xff] }
 0x2fd   : > { %4671 = vmatprep.subr.bf16.mxu1 %v7954_v0  ;;  %4744 = vmatprep.subr.bf16.mxu0 %v7956_v9  ;;  %v8050_v0 = vcombine.high %v687_v2, %v703_v28  ;;  %v8052_v9 = vcombine.high %v688_v15, %v704_v16  ;;  %v767_v7 = vld [vmem:[#allocation5 + $0x5f0] sm:$0xff]  ;;  %v768_v51 = vld [vmem:[#allocation5 + $0x5f8] sm:$0xff] }
 0x2ff   : > { %4558 = vmatmul.mubr.bf16.vlgmr.msra.gmra.mrb[96].mxu1 %v9435_v4  ;;  %4631 = vmatmul.mubr.bf16.vlgmr.msra.gmra.mrb[112].mxu0 %v9435_v4 }
 0x300   : > { %4567 = vmatprep.mubr.bf16.mxu1 %v9445_v30  ;;  %4640 = vmatprep.mubr.bf16.mxu0 %v9445_v30 }
 0x301   : > { %4672 = vmatpush1.bf16.msra.mxu1 %v7953_v49  ;;  %4745 = vmatpush1.bf16.msra.mxu0 %v7955_v52  ;;  %v719_v49 = vld [vmem:[#allocation5 + $0x470] sm:$0xff]  ;;  %v8051_v52 = vcombine.low %v688_v15, %v704_v16  ;;  %v784_v15 = vld [vmem:[#allocation5 + $0x678] sm:$0xff] }
 0x302   : > { %4673 = vmatprep.subr.bf16.mxu1 %v7986_v39  ;;  %4746 = vmatprep.subr.bf16.mxu0 %v7988_v8  ;;  %v8082_v39 = vcombine.high %v719_v49, %v735_v18  ;;  %v8084_v8 = vcombine.high %v720_v14, %v736_v50  ;;  %v800_v16 = vld [vmem:[#allocation5 + $0x6f8] sm:$0xff] }
 0x305   : > { %4674 = vmatpush1.bf16.msra.mxu1 %v7985_v17  ;;  %4747 = vmatpush1.bf16.msra.mxu0 %v7987_v19  ;;  %v8081_v17 = vcombine.low %v719_v49, %v735_v18  ;;  %v8083_v19 = vcombine.low %v720_v14, %v736_v50  ;;  %v8113_v49 = vcombine.low %v751_v45, %v767_v7 }
 0x306   : > { %4675 = vmatprep.subr.bf16.mxu1 %v8018_v42  ;;  %4748 = vmatprep.subr.bf16.mxu0 %v8020_v38  ;;  %v8114_v42 = vcombine.high %v751_v45, %v767_v7  ;;  %v8116_v38 = vcombine.high %v752_v13, %v768_v51  ;;  %v8115_v18 = vcombine.low %v752_v13, %v768_v51  ;;  %v815_v45 = vld [vmem:[#allocation5 + $0x770] sm:$0xff] }
 0x307   : > { %4568 = vmatmul.mubr.bf16.gmra.mrb[100].mxu1 %v9443_v29  ;;  %4641 = vmatmul.mubr.bf16.gmra.mrb[116].mxu0 %v9443_v29  ;;  %v831_v51 = vld [vmem:[#allocation5 + $0x7f0] sm:$0xff] }
 0x308   : > { %4577 = vmatprep.mubr.bf16.mxu1 %v9453_v58  ;;  %4650 = vmatprep.mubr.bf16.mxu0 %v9453_v58 }
 0x309   : > { %4676 = vmatpush1.bf16.msra.mxu1 %v8017_v27  ;;  %4749 = vmatpush1.bf16.msra.mxu0 %v8019_v1  ;;  %v783_v27 = vld [vmem:[#allocation5 + $0x670] sm:$0xff] }
 0x30a   : > { %4677 = vmatprep.subr.bf16.mxu1 %v8050_v0  ;;  %4750 = vmatprep.subr.bf16.mxu0 %v8052_v9  ;;  %v799_v1 = vld [vmem:[#allocation5 + $0x6f0] sm:$0xff] }
 0x30d   : > { %4678 = vmatpush1.bf16.msra.mxu1 %v8049_v46  ;;  %4751 = vmatpush1.bf16.msra.mxu0 %v8051_v52  ;;  %v8146_v46 = vcombine.high %v783_v27, %v799_v1  ;;  %v8147_v52 = vcombine.low %v784_v15, %v800_v16 }
 0x30e   : > { %4679 = vmatprep.subr.bf16.mxu1 %v8082_v39  ;;  %4752 = vmatprep.subr.bf16.mxu0 %v8084_v8  ;;  %v8178_v39 = vcombine.high %v815_v45, %v831_v51 }
 0x30f   : > { %4578 = vmatmul.mubr.bf16.gmra.mrb[104].mxu1 %v9451_v57  ;;  %4651 = vmatmul.mubr.bf16.gmra.mrb[120].mxu0 %v9451_v57  ;;  %v9847_v2 = vpop.f32.mrb[48].mxu1  ;;  %v9849_v28 = vpop.f32.mrb[64].mxu0 }
 0x310   : > { %11357 = vst [vmem:[#allocation82_spill] sm:$0xff] %v9847_v2  ;;  %11358 = vst [vmem:[#allocation83_spill] sm:$0xff] %v9849_v28  ;;  %4587 = vmatprep.mubr.bf16.mxu1 %v9461_v26  ;;  %4660 = vmatprep.mubr.bf16.mxu0 %v9461_v26  ;;  %v9853_v0 = vpop.f32.mrb[49].mxu1  ;;  %v9855_v9 = vpop.f32.mrb[65].mxu0  ;;  %v863_v2 = vld [vmem:[#allocation5 + $0x8f0] sm:$0xff] }
 0x311   : > { %11359 = vst [vmem:[#allocation84_spill] sm:$0xff] %v9853_v0  ;;  %11360 = vst [vmem:[#allocation85_spill] sm:$0xff] %v9855_v9  ;;  %4680 = vmatpush1.bf16.msra.mxu1 %v8081_v17  ;;  %4753 = vmatpush1.bf16.msra.mxu0 %v8083_v19  ;;  %v9857_v14 = vpop.f32.mrb[50].mxu1  ;;  %v9859_v50 = vpop.f32.mrb[66].mxu0  ;;  %v8148_v17 = vcombine.high %v784_v15, %v800_v16  ;;  %v816_v19 = vld [vmem:[#allocation5 + $0x778] sm:$0xff]  ;;  %v8177_v15 = vcombine.low %v815_v45, %v831_v51  ;;  %v879_v45 = vld [vmem:[#allocation5 + $0x970] sm:$0xff] }
 0x312   : > { %11361 = vst [vmem:[#allocation86_spill] sm:$0xff] %v9857_v14  ;;  %11362 = vst [vmem:[#allocation87_spill] sm:$0xff] %v9859_v50  ;;  %4681 = vmatprep.subr.bf16.mxu1 %v8114_v42  ;;  %4754 = vmatprep.subr.bf16.mxu0 %v8116_v38  ;;  %v9865_v8 = vpop.f32.mrb[51].mxu1  ;;  %v9867_v12 = vpop.f32.mrb[67].mxu0  ;;  %v832_v42 = vld [vmem:[#allocation5 + $0x7f8] sm:$0xff]  ;;  %v8145_v38 = vcombine.low %v783_v27, %v799_v1  ;;  %v847_v50 = vld [vmem:[#allocation5 + $0x870] sm:$0xff] }
 0x313   : > { %11363 = vst [vmem:[#allocation88_spill] sm:$0xff] %v9865_v8  ;;  %11364 = vst [vmem:[#allocation89_spill] sm:$0xff] %v9867_v12  ;;  %v8180_v28 = vcombine.high %v816_v19, %v832_v42  ;;  %v848_v14 = vld [vmem:[#allocation5 + $0x878] sm:$0xff]  ;;  %v8179_v16 = vcombine.low %v816_v19, %v832_v42 }
 0x314   : > { %v864_v9 = vld [vmem:[#allocation5 + $0x8f8] sm:$0xff] }
 0x315   : > { %4682 = vmatpush1.bf16.msra.mxu1 %v8113_v49  ;;  %4755 = vmatpush1.bf16.msra.mxu0 %v8115_v18  ;;  %v896_v42 = vld [vmem:[#allocation5 + $0x9f8] sm:$0xff] }
 0x316   : > { %4683 = vmatprep.subr.bf16.mxu1 %v8146_v46  ;;  %4756 = vmatprep.subr.bf16.mxu0 %v8148_v17  ;;  %v8210_v46 = vcombine.high %v847_v50, %v863_v2  ;;  %v8211_v17 = vcombine.low %v848_v14, %v864_v9  ;;  %v912_v51 = vld [vmem:[#allocation5 + $0xa78] sm:$0xff] }
 0x317   : > { %4588 = vmatmul.mubr.bf16.gmra.mrb[108].mxu1 %v9459_v22  ;;  %4661 = vmatmul.mubr.bf16.gmra.mrb[124].mxu0 %v9459_v22  ;;  %v9875_v7 = vpop.f32.mrb[52].mxu1  ;;  %v9877_v13 = vpop.f32.mrb[68].mxu0 }
 0x318   : > { %11365 = vst [vmem:[#allocation90_spill] sm:$0xff] %v9875_v7  ;;  %11366 = vst [vmem:[#allocation91_spill] sm:$0xff] %v9877_v13  ;;  %4703 = vmatprep.mubr.bf16.mxu1 %v9437_v5  ;;  %4776 = vmatprep.mubr.bf16.mxu0 %v9437_v5  ;;  %v9881_v27 = vpop.f32.mrb[53].mxu1  ;;  %v9883_v1 = vpop.f32.mrb[69].mxu0  ;;  %v927_v7 = vld [vmem:[#allocation5 + $0xaf0] sm:$0xff] }
 0x319   : > { %11367 = vst [vmem:[#allocation92_spill] sm:$0xff] %v9881_v27  ;;  %11368 = vst [vmem:[#allocation93_spill] sm:$0xff] %v9883_v1  ;;  %4684 = vmatpush1.bf16.msra.mxu1 %v8145_v38  ;;  %4757 = vmatpush1.bf16.msra.mxu0 %v8147_v52  ;;  %v9885_v49 = vpop.f32.mrb[54].mxu1  ;;  %v9887_v18 = vpop.f32.mrb[70].mxu0  ;;  %v8212_v52 = vcombine.high %v848_v14, %v864_v9  ;;  %v8209_v38 = vcombine.low %v847_v50, %v863_v2  ;;  %v928_v27 = vld [vmem:[#allocation5 + $0xaf8] sm:$0xff] }
 0x31a   : > { %11369 = vst [vmem:[#allocation94_spill] sm:$0xff] %v9885_v49  ;;  %11370 = vst [vmem:[#allocation95_spill] sm:$0xff] %v9887_v18  ;;  %4685 = vmatprep.subr.bf16.mxu1 %v8178_v39  ;;  %4758 = vmatprep.subr.bf16.mxu0 %v8180_v28  ;;  %v9893_v12 = vpop.f32.mrb[55].mxu1  ;;  %v9895_v0 = vpop.f32.mrb[71].mxu0  ;;  %v895_v39 = vld [vmem:[#allocation5 + $0x9f0] sm:$0xff]  ;;  %v880_v28 = vld [vmem:[#allocation5 + $0x978] sm:$0xff] }
 0x31b   : > { %11371 = vst [vmem:[#allocation96_spill] sm:$0xff] %v9893_v12  ;;  %11372 = vst [vmem:[#allocation97_spill] sm:$0xff] %v9895_v0  ;;  %v8242_v5 = vcombine.high %v879_v45, %v895_v39  ;;  %v8244_v13 = vcombine.high %v880_v28, %v896_v42  ;;  %v911_v18 = vld [vmem:[#allocation5 + $0xa70] sm:$0xff]  ;;  %v8241_v2 = vcombine.low %v879_v45, %v895_v39  ;;  %v976_v39 = vld [vmem:[#allocation5 + $0xc78] sm:$0xff] }
 0x31c   : > { %v8243_v9 = vcombine.low %v880_v28, %v896_v42  ;;  %v943_v45 = vld [vmem:[#allocation5 + $0xb70] sm:$0xff]  ;;  %v960_v42 = vld [vmem:[#allocation5 + $0xbf8] sm:$0xff] }
 0x31d   : > { %4686 = vmatpush1.bf16.msra.mxu1 %v8177_v15  ;;  %4759 = vmatpush1.bf16.msra.mxu0 %v8179_v16  ;;  %v8274_v15 = vcombine.high %v911_v18, %v927_v7  ;;  %v8275_v16 = vcombine.low %v912_v51, %v928_v27 }
 0x31e   : > { %4687 = vmatprep.subr.bf16.mxu1 %v8210_v46  ;;  %4760 = vmatprep.subr.bf16.mxu0 %v8212_v52 }
 0x31f   : > { %v9901_v49 = vpop.f32.mrb[56].mxu1  ;;  %v9903_v8 = vpop.f32.mrb[72].mxu0 }
 0x320   : > { %11373 = vst [vmem:[#allocation98_spill] sm:$0xff] %v9901_v49  ;;  %11374 = vst [vmem:[#allocation99_spill] sm:$0xff] %v9903_v8  ;;  %v9905_v19 = vpop.f32.mrb[57].mxu1  ;;  %v9907_v1 = vpop.f32.mrb[73].mxu0  ;;  %v991_v49 = vld [vmem:[#allocation5 + $0xcf0] sm:$0xff] }
 0x321   : > { %11375 = vst [vmem:[#allocation100_spill] sm:$0xff] %v9905_v19  ;;  %11376 = vst [vmem:[#allocation101_spill] sm:$0xff] %v9907_v1  ;;  %4688 = vmatpush1.bf16.msra.mxu1 %v8209_v38  ;;  %4761 = vmatpush1.bf16.msra.mxu0 %v8211_v17  ;;  %v9909_v14 = vpop.f32.mrb[58].mxu1  ;;  %v9911_v50 = vpop.f32.mrb[74].mxu0  ;;  %v8276_v17 = vcombine.high %v912_v51, %v928_v27  ;;  %v8273_v38 = vcombine.low %v911_v18, %v927_v7  ;;  %v992_v19 = vld [vmem:[#allocation5 + $0xcf8] sm:$0xff] }
 0x322   : > { %11377 = vst [vmem:[#allocation102_spill] sm:$0xff] %v9909_v14  ;;  %11378 = vst [vmem:[#allocation103_spill] sm:$0xff] %v9911_v50  ;;  %4689 = vmatprep.subr.bf16.mxu1 %v8242_v5  ;;  %4762 = vmatprep.subr.bf16.mxu0 %v8244_v13  ;;  %v9917_v52 = vpop.f32.mrb[59].mxu1  ;;  %v9919_v0 = vpop.f32.mrb[75].mxu0  ;;  %v959_v5 = vld [vmem:[#allocation5 + $0xbf0] sm:$0xff]  ;;  %v944_v13 = vld [vmem:[#allocation5 + $0xb78] sm:$0xff] }
 0x323   : > { %11379 = vst [vmem:[#allocation104_spill] sm:$0xff] %v9917_v52  ;;  %11380 = vst [vmem:[#allocation105_spill] sm:$0xff] %v9919_v0  ;;  %v8306_v46 = vcombine.high %v943_v45, %v959_v5  ;;  %v8308_v8 = vcombine.high %v944_v13, %v960_v42  ;;  %v975_v50 = vld [vmem:[#allocation5 + $0xc70] sm:$0xff]  ;;  %v8305_v7 = vcombine.low %v943_v45, %v959_v5  ;;  %v1056_v52 = vld [vmem:[#allocation5 + $0xef8] sm:$0xff] }
 0x324   : > { %v8307_v27 = vcombine.low %v944_v13, %v960_v42  ;;  %v1007_v45 = vld [vmem:[#allocation5 + $0xd70] sm:$0xff]  ;;  %v1024_v42 = vld [vmem:[#allocation5 + $0xdf8] sm:$0xff] }
 0x325   : > { %4690 = vmatpush1.bf16.msra.mxu1 %v8241_v2  ;;  %4763 = vmatpush1.bf16.msra.mxu0 %v8243_v9  ;;  %v8338_v2 = vcombine.high %v975_v50, %v991_v49  ;;  %v8339_v9 = vcombine.low %v976_v39, %v992_v19 }
 0x326   : > { %4691 = vmatprep.subr.bf16.mxu1 %v8274_v15  ;;  %4764 = vmatprep.subr.bf16.mxu0 %v8276_v17 }
 0x327   : > { %v9925_v14 = vpop.f32.mrb[60].mxu1  ;;  %v9927_v12 = vpop.f32.mrb[76].mxu0 }
 0x328   : > { %11381 = vst [vmem:[#allocation106_spill] sm:$0xff] %v9925_v14  ;;  %11382 = vst [vmem:[#allocation107_spill] sm:$0xff] %v9927_v12  ;;  %v9929_v28 = vpop.f32.mrb[61].mxu1  ;;  %v9931_v1 = vpop.f32.mrb[77].mxu0  ;;  %v1055_v14 = vld [vmem:[#allocation5 + $0xef0] sm:$0xff] }
 0x329   : > { %11383 = vst [vmem:[#allocation108_spill] sm:$0xff] %v9929_v28  ;;  %11384 = vst [vmem:[#allocation109_spill] sm:$0xff] %v9931_v1  ;;  %4692 = vmatpush1.bf16.msra.mxu1 %v8273_v38  ;;  %4765 = vmatpush1.bf16.msra.mxu0 %v8275_v16  ;;  %v9933_v18 = vpop.f32.mrb[62].mxu1  ;;  %v9935_v51 = vpop.f32.mrb[78].mxu0  ;;  %v8340_v16 = vcombine.high %v976_v39, %v992_v19  ;;  %v8337_v38 = vcombine.low %v975_v50, %v991_v49  ;;  %v1072_v49 = vld [vmem:[#allocation5 + $0xf78] sm:$0xff] }
 0x32a   : > { %11385 = vst [vmem:[#allocation110_spill] sm:$0xff] %v9933_v18  ;;  %11386 = vst [vmem:[#allocation111_spill] sm:$0xff] %v9935_v51  ;;  %4693 = vmatprep.subr.bf16.mxu1 %v8306_v46  ;;  %4766 = vmatprep.subr.bf16.mxu0 %v8308_v8  ;;  %v9941_v17 = vpop.f32.mrb[63].mxu1  ;;  %v9943_v0 = vpop.f32.mrb[79].mxu0  ;;  %v1023_v46 = vld [vmem:[#allocation5 + $0xdf0] sm:$0xff]  ;;  %v1008_v8 = vld [vmem:[#allocation5 + $0xd78] sm:$0xff] }
 0x32b   : > { %v8370_v15 = vcombine.high %v1007_v45, %v1023_v46  ;;  %v8372_v12 = vcombine.high %v1008_v8, %v1024_v42  ;;  %v1039_v51 = vld [vmem:[#allocation5 + $0xe70] sm:$0xff]  ;;  %v1040_v18 = vld [vmem:[#allocation5 + $0xe78] sm:$0xff]  ;;  %v8369_v5 = vcombine.low %v1007_v45, %v1023_v46  ;;  %v8371_v28 = vcombine.low %v1008_v8, %v1024_v42  ;;  %v10067_v42 = vld [vmem:[#allocation7] sm:$0xff]  }
 0x32c   : > { %v8402_v13 = vcombine.high %v1039_v51, %v1055_v14  ;;  %v8404_v1 = vcombine.high %v1040_v18, %v1056_v52  ;;  %v1088_v19 = vld [vmem:[#allocation5 + $0xff8] sm:$0xff]  ;;  %v8401_v50 = vcombine.low %v1039_v51, %v1055_v14  ;;  %v8403_v39 = vcombine.low %v1040_v18, %v1056_v52  ;;  %v11517_v46 = vld [vmem:[#allocation82_spill] sm:$0xff] }
 0x32d   : > { %4694 = vmatpush1.bf16.msra.mxu1 %v8305_v7  ;;  %4767 = vmatpush1.bf16.msra.mxu0 %v8307_v27  ;;  %v1071_v7 = vld [vmem:[#allocation5 + $0xf70] sm:$0xff]  ;;  %v8435_v45 = vcombine.low %v1072_v49, %v1088_v19  ;;  %v11388_v14 = vpack.c.bf16 %v9531_v41, %v9519_v32  ;;  %v11391_v32 = vpack.c.bf16 %v9557_v10, %v9545_v61  ;;  %v11525_v8 = vld [vmem:[#allocation92_spill] sm:$0xff] }
 0x32e   : > { %4695 = vmatprep.subr.bf16.mxu1 %v8338_v2  ;;  %4768 = vmatprep.subr.bf16.mxu0 %v8340_v16  ;;  %v1087_v27 = vld [vmem:[#allocation5 + $0xff0] sm:$0xff]  ;;  %v8436_v16 = vcombine.high %v1072_v49, %v1088_v19  ;;  %v11399_v41 = vpack.c.bf16 %v9605_v60, %v9593_v37 }
 0x32f   : > { %v8434_v2 = vcombine.high %v1071_v7, %v1087_v27  ;;  %v11408_v10 = vld [vmem:[#allocation26_spill] sm:$0xff]  ;;  %v11413_v49 = vld [vmem:[#allocation19_spill] sm:$0xff] }
 0x331   : > { %4696 = vmatpush1.bf16.msra.mxu1 %v8337_v38  ;;  %4769 = vmatpush1.bf16.msra.mxu0 %v8339_v9  ;;  %v8433_v9 = vcombine.low %v1071_v7, %v1087_v27  ;;  %v11412_v27 = vld [vmem:[#allocation23_spill] sm:$0xff] }
 0x332   : > { %4697 = vmatprep.subr.bf16.mxu1 %v8370_v15  ;;  %4770 = vmatprep.subr.bf16.mxu0 %v8372_v12  ;;  %v11387_v12 = vpack.c.bf16 %v9529_v40, %v9517_v31  ;;  %v11390_v31 = vpack.c.bf16 %v9523_v34, %v9515_v25  ;;  %v11392_v40 = vpack.c.bf16 %v9559_v11, %v9547_v62  ;;  %v11405_v62 = vld [vmem:[#allocation25_spill] sm:$0xff]  ;;  %v11409_v11 = vld [vmem:[#allocation22_spill] sm:$0xff] }
 0x333   : > { %v11396_v25 = vpack.c.bf16 %v9583_v59, %v9571_v44  ;;  %v11398_v34 = vpack.c.bf16 %v9575_v48, %v9567_v36  ;;  %v11414_v19 = vpack.c.bf16 %v11412_v27, %v11413_v49  ;;  %v11434_v27 = vld [vmem:[#allocation38_spill] sm:$0xff] }
 0x335   : > { %4698 = vmatpush1.bf16.msra.mxu1 %v8369_v5  ;;  %4771 = vmatpush1.bf16.msra.mxu0 %v8371_v28  ;;  %v11411_v28 = vmov 0  }
 0x336   : > { %4699 = vmatprep.subr.bf16.mxu1 %v8402_v13  ;;  %4772 = vmatprep.subr.bf16.mxu0 %v8404_v1  ;;  %v11389_v1 = vpack.c.bf16 %v9521_v33, %v9513_v24  ;;  %v11395_v24 = vpack.c.bf16 %v9581_v54, %v9569_v43  ;;  %v11397_v33 = vpack.c.bf16 %v9573_v47, %v9565_v35  ;;  %v11520_v54 = vld [vmem:[#allocation83_spill] sm:$0xff] }
 0x337   : > { %v11410_v35 = vpack.c.bf16 %v11408_v10, %v11409_v11  ;;  %v11431_v10 = vld [vmem:[#allocation37_spill] sm:$0xff] }
 0x339   : > { %4700 = vmatpush1.bf16.msra.mxu1 %v8401_v50  ;;  %4773 = vmatpush1.bf16.msra.mxu0 %v8403_v39  ;;  %v11415_v50 = vld [vmem:[#allocation24_spill] sm:$0xff] }
 0x33a   : > { %4701 = vmatprep.subr.bf16.mxu1 %v8434_v2  ;;  %4774 = vmatprep.subr.bf16.mxu0 %v8436_v16  ;;  %v11416_v39 = vld [vmem:[#allocation20_spill] sm:$0xff] }
 0x33b   : > { %v11417_v2 = vpack.c.bf16 %v11415_v50, %v11416_v39  ;;  %v11436_v39 = vld [vmem:[#allocation39_spill] sm:$0xff] }
 0x33d   : > { %4702 = vmatpush1.bf16.msra.mxu1 %v8433_v9  ;;  %4775 = vmatpush1.bf16.msra.mxu0 %v8435_v45  ;;  %v11418_v45 = vld [vmem:[#allocation33_spill] sm:$0xff] }
 0x33e   : > { %5034 = vmatprep.subr.bf16.mxu1 %v11387_v12  ;;  %5107 = vmatprep.subr.bf16.mxu0 %v11388_v14  ;;  %v11419_v12 = vld [vmem:[#allocation29_spill] sm:$0xff] }
 0x33f   : > { %v11420_v14 = vpack.c.bf16 %v11418_v45, %v11419_v12  ;;  %v11439_v12 = vld [vmem:[#allocation40_spill] sm:$0xff] }
 0x340   : > { %4704 = vmatmul.mubr.bf16.vlgmr.msra.gmra.mrb[112].mxu1 %v9435_v4  ;;  %4777 = vmatmul.mubr.bf16.vlgmr.msra.gmra.mrb[128].mxu0 %v9435_v4  ;;  %v11393_v4 = vpack.c.bf16 %v9549_v3, %v9541_v55  ;;  %v11400_v55 = vpack.c.bf16 %v9607_v63, %v9595_v21  ;;  %v11406_v3 = vld [vmem:[#allocation21_spill] sm:$0xff] }
 0x341   : > { %4713 = vmatprep.mubr.bf16.mxu1 %v9445_v30  ;;  %4786 = vmatprep.mubr.bf16.mxu0 %v9445_v30  ;;  %v11394_v30 = vpack.c.bf16 %v9551_v6, %v9543_v56  ;;  %v11403_v56 = vld [vmem:[#allocation17_spill] sm:$0xff]  ;;  %v11407_v6 = vpack.c.bf16 %v11405_v62, %v11406_v3  ;;  %v11428_v62 = vld [vmem:[#allocation28_spill] sm:$0xff] }
 0x342   : > { %5035 = vmatpush1.bf16.msra.mxu1 %v11389_v1  ;;  %5108 = vmatpush1.bf16.msra.mxu0 %v11390_v31  ;;  %v11421_v1 = vld [vmem:[#allocation34_spill] sm:$0xff] }
 0x343   : > { %5036 = vmatprep.subr.bf16.mxu1 %v11391_v32  ;;  %5109 = vmatprep.subr.bf16.mxu0 %v11392_v40  ;;  %v11422_v31 = vld [vmem:[#allocation30_spill] sm:$0xff] }
 0x344   : > { %v11423_v32 = vpack.c.bf16 %v11421_v1, %v11422_v31 }
 0x346   : > { %5037 = vmatpush1.bf16.msra.mxu1 %v11393_v4  ;;  %5110 = vmatpush1.bf16.msra.mxu0 %v11394_v30  ;;  %v11473_v30 = vld [vmem:[#allocation59_spill] sm:$0xff] }
 0x347   : > { %5038 = vmatprep.subr.bf16.mxu1 %v11395_v24  ;;  %5111 = vmatprep.subr.bf16.mxu0 %v11396_v25  ;;  %v11472_v24 = vld [vmem:[#allocation63_spill] sm:$0xff] }
 0x348   : > { %4714 = vmatmul.mubr.bf16.gmra.mrb[116].mxu1 %v9443_v29  ;;  %4787 = vmatmul.mubr.bf16.gmra.mrb[132].mxu0 %v9443_v29  ;;  %v11401_v29 = vpack.c.bf16 %v9597_v23, %v9589_v53 }
 0x349   : > { %4723 = vmatprep.mubr.bf16.mxu1 %v9453_v58  ;;  %4796 = vmatprep.mubr.bf16.mxu0 %v9453_v58  ;;  %v11402_v58 = vld [vmem:[#allocation18_spill] sm:$0xff] }
 0x34a   : > { %5039 = vmatpush1.bf16.msra.mxu1 %v11397_v33  ;;  %5112 = vmatpush1.bf16.msra.mxu0 %v11398_v34  ;;  %v11404_v61 = vpack.c.bf16 %v11402_v58, %v11403_v56  ;;  %v11425_v58 = vld [vmem:[#allocation27_spill] sm:$0xff] }
 0x34b   : > { %5040 = vmatprep.subr.bf16.mxu1 %v11399_v41  ;;  %5113 = vmatprep.subr.bf16.mxu0 %v11400_v55  ;;  %v10111_v55 = vld [vmem:[#allocation7 + $0x8] sm:$0xff]   ;;  %v11519_v41 = vld [vmem:[#allocation87_spill] sm:$0xff] }
 0x34c   : > { %v11521_v21 = vpack.c.bf16 %v11519_v41, %v11520_v54 }
 0x34e   : > { %5041 = vmatpush1.bf16.msra.mxu1 %v11401_v29  ;;  %5114 = vmatpush1.bf16.msra.mxu0 %v11404_v61  ;;  %v11424_v29 = vld [vmem:[#allocation31_spill] sm:$0xff]  ;;  %v11427_v61 = vld [vmem:[#allocation32_spill] sm:$0xff] }
 0x34f   : > { %5180 = vmatprep.subr.bf16.mxu1 %v11407_v6  ;;  %5253 = vmatprep.subr.bf16.mxu0 %v11410_v35  ;;  %v11426_v56 = vpack.c.bf16 %v11424_v29, %v11425_v58  ;;  %v11429_v3 = vpack.c.bf16 %v11427_v61, %v11428_v62  ;;  %v11430_v6 = vld [vmem:[#allocation41_spill] sm:$0xff]  ;;  %v11433_v35 = vld [vmem:[#allocation42_spill] sm:$0xff] }
 0x350   : > { %4724 = vmatmul.mubr.bf16.gmra.mrb[120].mxu1 %v9451_v57  ;;  %4797 = vmatmul.mubr.bf16.gmra.mrb[136].mxu0 %v9451_v57  ;;  %v10013_v36 = vpop.f32.mrb[64].mxu1  ;;  %v10015_v43 = vpop.f32.mrb[80].mxu0  ;;  %v11432_v11 = vpack.c.bf16 %v11430_v6, %v11431_v10  ;;  %v11435_v49 = vpack.c.bf16 %v11433_v35, %v11434_v27  ;;  %v11442_v29 = vld [vmem:[#allocation49_spill] sm:$0xff]  ;;  %v11445_v61 = vld [vmem:[#allocation50_spill] sm:$0xff] }
 0x351   : > { %4733 = vmatprep.mubr.bf16.mxu1 %v9461_v26  ;;  %4806 = vmatprep.mubr.bf16.mxu0 %v9461_v26  ;;  %v10019_v44 = vpop.f32.mrb[65].mxu1  ;;  %v10021_v47 = vpop.f32.mrb[81].mxu0  ;;  %v11443_v58 = vld [vmem:[#allocation45_spill] sm:$0xff]  ;;  %v11446_v62 = vld [vmem:[#allocation46_spill] sm:$0xff] }
 0x352   : > { %v10023_v48 = vpop.f32.mrb[66].mxu1  ;;  %v10025_v53 = vpop.f32.mrb[82].mxu0  ;;  %v11457_v35 = vld [vmem:[#allocation58_spill] sm:$0xff] }
 0x353   : > { %v10031_v59 = vpop.f32.mrb[67].mxu1  ;;  %v10033_v37 = vpop.f32.mrb[83].mxu0 }
 0x358   : > { %4734 = vmatmul.mubr.bf16.gmra.mrb[124].mxu1 %v9459_v22  ;;  %4807 = vmatmul.mubr.bf16.gmra.mrb[140].mxu0 %v9459_v22  ;;  %v10041_v23 = vpop.f32.mrb[68].mxu1  ;;  %v10043_v60 = vpop.f32.mrb[84].mxu0 }
 0x359   : > { %v10045_v63 = vpop.f32.mrb[69].mxu1  ;;  %v10047_v52 = vpop.f32.mrb[85].mxu0  ;;  %5066 = vmatprep.mubr.bf16.mxu1 %v11411_v28  ;;  %5139 = vmatprep.mubr.bf16.mxu0 %v11411_v28 }
 0x35a   : > { %v10051_v18 = vpop.f32.mrb[70].mxu1  ;;  %v10053_v51 = vpop.f32.mrb[86].mxu0 }
 0x35b   : > { %v10059_v5 = vpop.f32.mrb[71].mxu1  ;;  %v10061_v13 = vpop.f32.mrb[87].mxu0 }
 0x360   : > { %8441 = vmatmul.mubr.msk.bf16.vlgmr.msra.gmra.mrb[128].mxu1 %vm5021_vm1, %v10067_v42  ;;  %8445 = vmatmul.mubr.msk.bf16.vlgmr.msra.gmra.mrb[144].mxu0 %vm5021_vm1, %v10067_v42  ;;  %v10073_v38 = vpop.f32.mrb[72].mxu1  ;;  %v10075_v7 = vpop.f32.mrb[88].mxu0 }
 0x361   : > { %5181 = vmatpush1.bf16.msra.mxu1 %v11414_v19  ;;  %5254 = vmatpush1.bf16.msra.mxu0 %v11417_v2  ;;  %v10083_v16 = vpop.f32.mrb[73].mxu1  ;;  %v10085_v9 = vpop.f32.mrb[89].mxu0  ;;  %v11437_v2 = vld [vmem:[#allocation35_spill] sm:$0xff] }
 0x362   : > { %5182 = vmatprep.subr.bf16.mxu1 %v11420_v14  ;;  %5255 = vmatprep.subr.bf16.mxu0 %v11423_v32  ;;  %v10093_v40 = vpop.f32.mrb[74].mxu1  ;;  %v10095_v4 = vpop.f32.mrb[90].mxu0  ;;  %v11438_v45 = vpack.c.bf16 %v11436_v39, %v11437_v2  ;;  %v11440_v14 = vld [vmem:[#allocation36_spill] sm:$0xff] }
 0x363   : > { %v10101_v25 = vpop.f32.mrb[75].mxu1  ;;  %v10103_v33 = vpop.f32.mrb[91].mxu0  ;;  %5076 = vmatprep.mubr.bf16.mxu1 %v11411_v28  ;;  %5149 = vmatprep.mubr.bf16.mxu0 %v11411_v28  ;;  %v11441_v1 = vpack.c.bf16 %v11439_v12, %v11440_v14  ;;  %v11448_v12 = vld [vmem:[#allocation47_spill] sm:$0xff] }
 0x364   : > { %v11449_v14 = vld [vmem:[#allocation43_spill] sm:$0xff] }
 0x365   : > { %5183 = vmatpush1.bf16.msra.mxu1 %v11426_v56  ;;  %5256 = vmatpush1.bf16.msra.mxu0 %v11429_v3  ;;  %v11444_v56 = vpack.c.bf16 %v11442_v29, %v11443_v58  ;;  %v11447_v3 = vpack.c.bf16 %v11445_v61, %v11446_v62  ;;  %v11451_v29 = vld [vmem:[#allocation48_spill] sm:$0xff]  ;;  %v11454_v61 = vld [vmem:[#allocation57_spill] sm:$0xff] }
 0x366   : > { %5184 = vmatprep.subr.bf16.mxu1 %v11432_v11  ;;  %5257 = vmatprep.subr.bf16.mxu0 %v11435_v49  ;;  %v11452_v58 = vld [vmem:[#allocation44_spill] sm:$0xff]  ;;  %v11455_v62 = vld [vmem:[#allocation53_spill] sm:$0xff]  ;;  %v11458_v11 = vld [vmem:[#allocation54_spill] sm:$0xff] }
 0x367   : > { %v11459_v39 = vpack.c.bf16 %v11457_v35, %v11458_v11  ;;  %v11460_v11 = vld [vmem:[#allocation55_spill] sm:$0xff] }
 0x368   : > { %8442 = vmatmul.mubr.msk.bf16.gmra.mrb[132].mxu1 %vm5021_vm1, %v10111_v55  ;;  %8446 = vmatmul.mubr.msk.bf16.gmra.mrb[148].mxu0 %vm5021_vm1, %v10111_v55  ;;  %v10129_v19 = vpop.f32.mrb[76].mxu1  ;;  %v10131_v50 = vpop.f32.mrb[92].mxu0  ;;  %v11461_v35 = vld [vmem:[#allocation51_spill] sm:$0xff] }
 0x369   : > { %5185 = vmatpush1.bf16.msra.mxu1 %v11438_v45  ;;  %5258 = vmatpush1.bf16.msra.mxu0 %v11441_v1  ;;  %v10139_v31 = vpop.f32.mrb[77].mxu1  ;;  %v10141_v32 = vpop.f32.mrb[93].mxu0  ;;  %v10167_v45 = vld [vmem:[#allocation7 + $0x10] sm:$0xff]   ;;  %v11450_v1 = vpack.c.bf16 %v11448_v12, %v11449_v14  ;;  %v10187_v12 = vld [vmem:[#allocation7 + $0x18] sm:$0xff]  }
 0x36a   : > { %5186 = vmatprep.subr.bf16.mxu1 %v11444_v56  ;;  %5259 = vmatprep.subr.bf16.mxu0 %v11447_v3  ;;  %v10149_v6 = vpop.f32.mrb[78].mxu1  ;;  %v10151_v10 = vpop.f32.mrb[94].mxu0  ;;  %v11453_v56 = vpack.c.bf16 %v11451_v29, %v11452_v58  ;;  %v11456_v3 = vpack.c.bf16 %v11454_v61, %v11455_v62  ;;  %v11463_v14 = vld [vmem:[#allocation56_spill] sm:$0xff]  ;;  %v11466_v58 = vld [vmem:[#allocation65_spill] sm:$0xff]  ;;  %v11469_v62 = vld [vmem:[#allocation66_spill] sm:$0xff] }
 0x36b   : > { %v10157_v27 = vpop.f32.mrb[79].mxu1  ;;  %v10159_v49 = vpop.f32.mrb[95].mxu0  ;;  %5086 = vmatprep.mubr.bf16.mxu1 %v11411_v28  ;;  %5159 = vmatprep.mubr.bf16.mxu0 %v11411_v28 }
 0x36d   : > { %5187 = vmatpush1.bf16.msra.mxu1 %v11450_v1  ;;  %5260 = vmatpush1.bf16.msra.mxu0 %v11453_v56  ;;  %v11464_v1 = vld [vmem:[#allocation52_spill] sm:$0xff]  ;;  %v11467_v56 = vld [vmem:[#allocation61_spill] sm:$0xff] }
 0x36e   : > { %5326 = vmatprep.subr.bf16.mxu1 %v11456_v3  ;;  %5399 = vmatprep.subr.bf16.mxu0 %v11459_v39  ;;  %v11462_v39 = vpack.c.bf16 %v11460_v11, %v11461_v35  ;;  %v11465_v29 = vpack.c.bf16 %v11463_v14, %v11464_v1  ;;  %v11468_v61 = vpack.c.bf16 %v11466_v58, %v11467_v56  ;;  %v11470_v3 = vld [vmem:[#allocation62_spill] sm:$0xff]  ;;  %v11475_v35 = vld [vmem:[#allocation64_spill] sm:$0xff]  ;;  %v11478_v1 = vld [vmem:[#allocation73_spill] sm:$0xff] }
 0x36f   : > { %v11471_v2 = vpack.c.bf16 %v11469_v62, %v11470_v3  ;;  %v11474_v11 = vpack.c.bf16 %v11472_v24, %v11473_v30  ;;  %v11481_v56 = vld [vmem:[#allocation74_spill] sm:$0xff]  ;;  %v11484_v30 = vld [vmem:[#allocation71_spill] sm:$0xff]  ;;  %v11487_v3 = vld [vmem:[#allocation72_spill] sm:$0xff] }
 0x370   : > { %8443 = vmatmul.mubr.msk.bf16.gmra.mrb[136].mxu1 %vm5021_vm1, %v10167_v45  ;;  %8447 = vmatmul.mubr.msk.bf16.gmra.mrb[152].mxu0 %vm5021_vm1, %v10167_v45  ;;  %v11485_v24 = vld [vmem:[#allocation67_spill] sm:$0xff] }
 0x371   : > { %5096 = vmatprep.mubr.bf16.mxu1 %v11411_v28  ;;  %5169 = vmatprep.mubr.bf16.mxu0 %v11411_v28 }
 0x378   : > { %8444 = vmatmul.mubr.msk.bf16.gmra.mrb[140].mxu1 %vm5021_vm1, %v10187_v12  ;;  %8448 = vmatmul.mubr.msk.bf16.gmra.mrb[156].mxu0 %vm5021_vm1, %v10187_v12 }
 0x379   : > { %5212 = vmatprep.mubr.bf16.mxu1 %v11411_v28  ;;  %5285 = vmatprep.mubr.bf16.mxu0 %v11411_v28 }
 0x380   : > { %8449 = vmatmul.mubr.msk.bf16.vlgmr.msra.gmra.mrb[144].mxu1 %vm5021_vm1, %v10067_v42  ;;  %8453 = vmatmul.mubr.msk.bf16.vlgmr.msra.gmra.mrb[160].mxu0 %vm5021_vm1, %v10067_v42 }
 0x381   : > { %5327 = vmatpush1.bf16.msra.mxu1 %v11462_v39  ;;  %5400 = vmatpush1.bf16.msra.mxu0 %v11465_v29  ;;  %v11476_v39 = vld [vmem:[#allocation60_spill] sm:$0xff]  ;;  %v11479_v29 = vld [vmem:[#allocation69_spill] sm:$0xff] }
 0x382   : > { %5328 = vmatprep.subr.bf16.mxu1 %v11468_v61  ;;  %5401 = vmatprep.subr.bf16.mxu0 %v11471_v2  ;;  %v11477_v14 = vpack.c.bf16 %v11475_v35, %v11476_v39  ;;  %v11480_v58 = vpack.c.bf16 %v11478_v1, %v11479_v29  ;;  %v11482_v61 = vld [vmem:[#allocation70_spill] sm:$0xff]  ;;  %v11486_v2 = vpack.c.bf16 %v11484_v30, %v11485_v24  ;;  %v11490_v39 = vld [vmem:[#allocation77_spill] sm:$0xff]  ;;  %v11498_v30 = vld [vmem:[#allocation80_spill] sm:$0xff] }
 0x383   : > { %5222 = vmatprep.mubr.bf16.mxu1 %v11411_v28  ;;  %5295 = vmatprep.mubr.bf16.mxu0 %v11411_v28  ;;  %v11483_v62 = vpack.c.bf16 %v11481_v56, %v11482_v61  ;;  %v11492_v1 = vld [vmem:[#allocation81_spill] sm:$0xff]  ;;  %v11493_v29 = vld [vmem:[#allocation78_spill] sm:$0xff]  ;;  %v11495_v56 = vld [vmem:[#allocation79_spill] sm:$0xff] }
 0x384   : > { %v11496_v61 = vld [vmem:[#allocation75_spill] sm:$0xff]  ;;  %v11499_v24 = vld [vmem:[#allocation76_spill] sm:$0xff] }
 0x385   : > { %5329 = vmatpush1.bf16.msra.mxu1 %v11474_v11  ;;  %5402 = vmatpush1.bf16.msra.mxu0 %v11477_v14  ;;  %v11488_v11 = vld [vmem:[#allocation68_spill] sm:$0xff]  ;;  %v11491_v14 = vpack.c.bf16 %v9829_v20, %v11490_v39  ;;  %v11505_v39 = vld [vmem:[#allocation85_spill] sm:$0xff] }
 0x386   : > { %5330 = vmatprep.subr.bf16.mxu1 %v11480_v58  ;;  %5403 = vmatprep.subr.bf16.mxu0 %v11483_v62  ;;  %v11489_v35 = vpack.c.bf16 %v11487_v3, %v11488_v11  ;;  %v11494_v58 = vpack.c.bf16 %v11492_v1, %v11493_v29  ;;  %v11497_v62 = vpack.c.bf16 %v11495_v56, %v11496_v61  ;;  %v11501_v3 = vld [vmem:[#allocation88_spill] sm:$0xff] }
 0x387   : > { %v11502_v11 = vld [vmem:[#allocation84_spill] sm:$0xff] }
 0x388   : > { %8450 = vmatmul.mubr.msk.bf16.gmra.mrb[148].mxu1 %vm5021_vm1, %v10111_v55  ;;  %8454 = vmatmul.mubr.msk.bf16.gmra.mrb[164].mxu0 %vm5021_vm1, %v10111_v55  ;;  %v11503_v20 = vpack.c.bf16 %v11501_v3, %v11502_v11  ;;  %v11516_v11 = vld [vmem:[#allocation86_spill] sm:$0xff] }
 0x389   : > { %5331 = vmatpush1.bf16.msra.mxu1 %v11486_v2  ;;  %5404 = vmatpush1.bf16.msra.mxu0 %v11489_v35  ;;  %v11500_v2 = vpack.c.bf16 %v11498_v30, %v11499_v24  ;;  %v11504_v35 = vld [vmem:[#allocation89_spill] sm:$0xff]  ;;  %v11518_v57 = vpack.c.bf16 %v11516_v11, %v11517_v46  ;;  %v11534_v11 = vld [vmem:[#allocation90_spill] sm:$0xff] }
 0x38a   : > { %5332 = vmatprep.subr.bf16.mxu1 %v11491_v14  ;;  %5405 = vmatprep.subr.bf16.mxu0 %v11494_v58  ;;  %v11506_v14 = vpack.c.bf16 %v11504_v35, %v11505_v39 }
 0x38b   : > { %5232 = vmatprep.mubr.bf16.mxu1 %v11411_v28  ;;  %5305 = vmatprep.mubr.bf16.mxu0 %v11411_v28 }
 0x38d   : > { %5333 = vmatpush1.bf16.msra.mxu1 %v11497_v62  ;;  %5406 = vmatpush1.bf16.msra.mxu0 %v11500_v2 }
 0x38e   : > { %5472 = vmatprep.subr.bf16.mxu1 %v11503_v20  ;;  %5545 = vmatprep.subr.bf16.mxu0 %v11506_v14 }
 0x390   : > { %8451 = vmatmul.mubr.msk.bf16.gmra.mrb[152].mxu1 %vm5021_vm1, %v10167_v45  ;;  %8455 = vmatmul.mubr.msk.bf16.gmra.mrb[168].mxu0 %vm5021_vm1, %v10167_v45 }
 0x391   : > { %v10259_v1 = vpop.f32.mrb[80].mxu1  ;;  %v10261_v29 = vpop.f32.mrb[96].mxu0  ;;  %5242 = vmatprep.mubr.bf16.mxu1 %v11411_v28  ;;  %5315 = vmatprep.mubr.bf16.mxu0 %v11411_v28 }
 0x392   : > { %11507 = vst [vmem:[#allocation18_spill] sm:$0xff] %v10261_v29  ;;  %v10265_v58 = vpop.f32.mrb[81].mxu1  ;;  %v10267_v56 = vpop.f32.mrb[97].mxu0 }
 0x393   : > { %v10269_v61 = vpop.f32.mrb[82].mxu1  ;;  %v10271_v62 = vpop.f32.mrb[98].mxu0 }
 0x394   : > { %v10277_v2 = vpop.f32.mrb[83].mxu1  ;;  %v10279_v3 = vpop.f32.mrb[99].mxu0 }
 0x398   : > { %8452 = vmatmul.mubr.msk.bf16.gmra.mrb[156].mxu1 %vm5021_vm1, %v10187_v12  ;;  %8456 = vmatmul.mubr.msk.bf16.gmra.mrb[172].mxu0 %vm5021_vm1, %v10187_v12 }
 0x399   : > { %v10289_v35 = vpop.f32.mrb[84].mxu1  ;;  %v10291_v39 = vpop.f32.mrb[100].mxu0  ;;  %5358 = vmatprep.mubr.bf16.mxu1 %v11411_v28  ;;  %5431 = vmatprep.mubr.bf16.mxu0 %v11411_v28 }
 0x39a   : > { %11508 = vst [vmem:[#allocation17_spill] sm:$0xff] %v10289_v35  ;;  %11509 = vst [vmem:[#allocation25_spill] sm:$0xff] %v10291_v39  ;;  %v10295_v14 = vpop.f32.mrb[85].mxu1  ;;  %v10297_v24 = vpop.f32.mrb[101].mxu0  ;;  %v11524_v39 = vld [vmem:[#allocation96_spill] sm:$0xff]  ;;  %v11527_v35 = vld [vmem:[#allocation97_spill] sm:$0xff] }
 0x39b   : > { %11510 = vst [vmem:[#allocation21_spill] sm:$0xff] %v10295_v14  ;;  %11511 = vst [vmem:[#allocation26_spill] sm:$0xff] %v10297_v24  ;;  %v10299_v30 = vpop.f32.mrb[86].mxu1  ;;  %v10301_v20 = vpop.f32.mrb[102].mxu0 }
 0x39c   : > { %11512 = vst [vmem:[#allocation22_spill] sm:$0xff] %v10299_v30  ;;  %11513 = vst [vmem:[#allocation23_spill] sm:$0xff] %v10301_v20  ;;  %v10307_v34 = vpop.f32.mrb[87].mxu1  ;;  %v10309_v22 = vpop.f32.mrb[103].mxu0  ;;  %v11526_v20 = vpack.c.bf16 %v11524_v39, %v11525_v8  ;;  %v11528_v30 = vld [vmem:[#allocation93_spill] sm:$0xff]  ;;  %v11537_v39 = vld [vmem:[#allocation91_spill] sm:$0xff] }
 0x39d   : > { %11514 = vst [vmem:[#allocation19_spill] sm:$0xff] %v10307_v34  ;;  %11515 = vst [vmem:[#allocation24_spill] sm:$0xff] %v10309_v22  ;;  %v11529_v24 = vpack.c.bf16 %v11527_v35, %v11528_v30  ;;  %v11536_v35 = vld [vmem:[#allocation95_spill] sm:$0xff]  ;;  %v11540_v8 = vld [vmem:[#allocation100_spill] sm:$0xff] }
 0x39e   : > { %v11538_v14 = vpack.c.bf16 %v11536_v35, %v11537_v39  ;;  %v11549_v35 = vld [vmem:[#allocation99_spill] sm:$0xff] }
 0x3a0   : > { %8457 = vmatmul.mubr.msk.bf16.vlgmr.msra.gmra.mrb[160].mxu1 %vm5021_vm1, %v10067_v42  ;;  %8461 = vmatmul.mubr.msk.bf16.vlgmr.msra.gmra.mrb[176].mxu0 %vm5021_vm1, %v10067_v42 }
 0x3a1   : > { %5473 = vmatpush1.bf16.msra.mxu1 %v11518_v57  ;;  %5546 = vmatpush1.bf16.msra.mxu0 %v11521_v21  ;;  %v10325_v26 = vpop.f32.mrb[88].mxu1  ;;  %v10327_v15 = vpop.f32.mrb[104].mxu0 }
 0x3a2   : > { %11522 = vst [vmem:[#allocation20_spill] sm:$0xff] %v10325_v26  ;;  %11523 = vst [vmem:[#allocation33_spill] sm:$0xff] %v10327_v15  ;;  %5474 = vmatprep.subr.bf16.mxu1 %v11526_v20  ;;  %5547 = vmatprep.subr.bf16.mxu0 %v11529_v24  ;;  %v10335_v22 = vpop.f32.mrb[89].mxu1  ;;  %v10337_v46 = vpop.f32.mrb[105].mxu0  ;;  %v11533_v24 = vld [vmem:[#allocation94_spill] sm:$0xff]  ;;  %v11539_v26 = vld [vmem:[#allocation104_spill] sm:$0xff] }
 0x3a3   : > { %11530 = vst [vmem:[#allocation29_spill] sm:$0xff] %v10337_v46  ;;  %v10339_v57 = vpop.f32.mrb[90].mxu1  ;;  %v10341_v54 = vpop.f32.mrb[106].mxu0  ;;  %5368 = vmatprep.mubr.bf16.mxu1 %v11411_v28  ;;  %5441 = vmatprep.mubr.bf16.mxu0 %v11411_v28  ;;  %v11535_v20 = vpack.c.bf16 %v11533_v24, %v11534_v11  ;;  %v11541_v15 = vpack.c.bf16 %v11539_v26, %v11540_v8  ;;  %v11546_v24 = vld [vmem:[#allocation98_spill] sm:$0xff] }
 0x3a4   : > { %11531 = vst [vmem:[#allocation34_spill] sm:$0xff] %v10339_v57  ;;  %11532 = vst [vmem:[#allocation30_spill] sm:$0xff] %v10341_v54  ;;  %v10349_v41 = vpop.f32.mrb[91].mxu1  ;;  %v10351_v30 = vpop.f32.mrb[107].mxu0  ;;  %v11542_v54 = vld [vmem:[#allocation105_spill] sm:$0xff] }
 0x3a5   : > { %5475 = vmatpush1.bf16.msra.mxu1 %v11535_v20  ;;  %5548 = vmatpush1.bf16.msra.mxu0 %v11538_v14  ;;  %v11543_v57 = vld [vmem:[#allocation101_spill] sm:$0xff]  ;;  %v11545_v14 = vld [vmem:[#allocation102_spill] sm:$0xff]  ;;  %v11548_v20 = vld [vmem:[#allocation103_spill] sm:$0xff] }
 0x3a6   : > { %5476 = vmatprep.subr.bf16.mxu1 %v11541_v15  ;;  %v11544_v29 = vpack.c.bf16 %v11542_v54, %v11543_v57  ;;  %v11547_v11 = vpack.c.bf16 %v11545_v14, %v11546_v24  ;;  %v11550_v39 = vpack.c.bf16 %v11548_v20, %v11549_v35  ;;  %v11554_v54 = vld [vmem:[#allocation109_spill] sm:$0xff]  ;;  %v11562_v20 = vpack.c.bf16 %v10031_v59, %v10019_v44 }
 0x3a7   : > { %v11555_v8 = vpack.c.bf16 %v9943_v0, %v11554_v54  ;;  %v11559_v54 = vld [vmem:[#allocation111_spill] sm:$0xff]  ;;  %v11564_v44 = vpack.c.bf16 %v10023_v48, %v10013_v36  ;;  %v11566_v59 = vpack.c.bf16 %v10059_v5, %v10045_v63  ;;  %v11568_v36 = vpack.c.bf16 %v10051_v18, %v10041_v23 }
 0x3a8   : > { %5549 = vmatprep.subr.bf16.mxu0 %v11544_v29  ;;  %8458 = vmatmul.mubr.msk.bf16.gmra.mrb[164].mxu1 %vm5021_vm1, %v10111_v55  ;;  %v11552_v29 = vld [vmem:[#allocation108_spill] sm:$0xff]  ;;  %v11570_v48 = vpack.c.bf16 %v10101_v25, %v10083_v16  ;;  %v11572_v23 = vpack.c.bf16 %v10093_v40, %v10073_v38  ;;  %v11574_v63 = vpack.c.bf16 %v10157_v27, %v10139_v31 }
 0x3a9   : > { %8462 = vmatmul.mubr.msk.bf16.gmra.mrb[180].mxu0 %vm5021_vm1, %v10111_v55  ;;  %5477 = vmatpush1.bf16.msra.mxu1 %v11547_v11  ;;  %v10379_v26 = vpop.f32.mrb[92].mxu1  ;;  %v10381_v15 = vpop.f32.mrb[108].mxu0  ;;  %v11553_v57 = vpack.c.bf16 %v9941_v17, %v11552_v29  ;;  %v11557_v29 = vld [vmem:[#allocation106_spill] sm:$0xff]  ;;  %v11576_v18 = vpack.c.bf16 %v10149_v6, %v10129_v19  ;;  %v11578_v5 = vpack.c.bf16 %v10277_v2, %v10265_v58 }
 0x3aa   : > { %5550 = vmatpush1.bf16.msra.mxu0 %v11550_v39  ;;  %11551 = vst [vmem:[#allocation31_spill] sm:$0xff] %v10381_v15  ;;  %v10389_v21 = vpop.f32.mrb[93].mxu1  ;;  %v10391_v14 = vpop.f32.mrb[109].mxu0  ;;  %5378 = vmatprep.mubr.bf16.mxu1 %v11411_v28  ;;  %v11556_v39 = vld [vmem:[#allocation110_spill] sm:$0xff]  ;;  %v11563_v15 = vpack.c.bf16 %v10033_v37, %v10021_v47  ;;  %v11565_v47 = vpack.c.bf16 %v10025_v53, %v10015_v43 }
 0x3ab   : > { %5478 = vmatprep.subr.bf16.mxu1 %v11553_v57  ;;  %5551 = vmatprep.subr.bf16.mxu0 %v11555_v8  ;;  %v10393_v24 = vpop.f32.mrb[94].mxu1  ;;  %v10395_v11 = vpop.f32.mrb[110].mxu0  ;;  %v11558_v57 = vpack.c.bf16 %v11556_v39, %v11557_v29  ;;  %v11560_v8 = vld [vmem:[#allocation107_spill] sm:$0xff]  ;;  %v11567_v37 = vpack.c.bf16 %v10061_v13, %v10047_v52  ;;  %v11569_v43 = vpack.c.bf16 %v10053_v51, %v10043_v60 }
 0x3ac   : > { %5451 = vmatprep.mubr.bf16.mxu0 %v11411_v28  ;;  %v10403_v0 = vpop.f32.mrb[95].mxu1  ;;  %v10405_v35 = vpop.f32.mrb[111].mxu0  ;;  %v11561_v34 = vpack.c.bf16 %v11559_v54, %v11560_v8  ;;  %v11571_v53 = vpack.c.bf16 %v10103_v33, %v10085_v9  ;;  %v11573_v60 = vpack.c.bf16 %v10095_v4, %v10075_v7  ;;  %v11575_v52 = vpack.c.bf16 %v10159_v49, %v10141_v32  ;;  %v11583_v8 = vld [vmem:[#allocation19_spill] sm:$0xff] }
 0x3ad   : > { %5479 = vmatpush1.bf16.msra.mxu1 %v11558_v57  ;;  %v4942_v46 = vpack.c.bf16 %v10403_v0, %v10389_v21  ;;  %v4944_v17 = vpack.c.bf16 %v10405_v35, %v10391_v14  ;;  %v11577_v51 = vpack.c.bf16 %v10151_v10, %v10131_v50  ;;  %v11579_v13 = vpack.c.bf16 %v10279_v3, %v10267_v56  ;;  %v11581_v57 = vld [vmem:[#allocation18_spill] sm:$0xff] }
 0x3ae   : > { %5552 = vmatpush1.bf16.msra.mxu0 %v11561_v34  ;;  %5618 = vmatprep.subr.bf16.mxu1 %v11562_v20  ;;  %v11580_v29 = vpack.c.bf16 %v10269_v61, %v10259_v1  ;;  %v11582_v54 = vpack.c.bf16 %v10271_v62, %v11581_v57  ;;  %v11589_v62 = vld [vmem:[#allocation22_spill] sm:$0xff] }
 0x3af   : > { %5691 = vmatprep.subr.bf16.mxu0 %v11563_v15 }
 0x3b0   : > { %8459 = vmatmul.mubr.msk.bf16.gmra.mrb[168].mxu1 %vm5021_vm1, %v10167_v45 }
 0x3b1   : > { %8463 = vmatmul.mubr.msk.bf16.gmra.mrb[184].mxu0 %vm5021_vm1, %v10167_v45  ;;  %5388 = vmatprep.mubr.bf16.mxu1 %v11411_v28 }
 0x3b2   : > { %5461 = vmatprep.mubr.bf16.mxu0 %v11411_v28 }
 0x3b8   : > { %8460 = vmatmul.mubr.msk.bf16.gmra.mrb[172].mxu1 %vm5021_vm1, %v10187_v12 }
 0x3b9   : > { %8464 = vmatmul.mubr.msk.bf16.gmra.mrb[188].mxu0 %vm5021_vm1, %v10187_v12  ;;  %5504 = vmatprep.mubr.bf16.mxu1 %v11411_v28 }
 0x3ba   : > { %5577 = vmatprep.mubr.bf16.mxu0 %v11411_v28 }
 0x3c0   : > { %8465 = vmatmul.mubr.msk.bf16.vlgmr.msra.gmra.mrb[176].mxu1 %vm5021_vm1, %v10067_v42 }
 0x3c1   : > { %8469 = vmatmul.mubr.msk.bf16.vlgmr.msra.gmra.mrb[192].mxu0 %vm5021_vm1, %v10067_v42  ;;  %5619 = vmatpush1.bf16.msra.mxu1 %v11564_v44  ;;  %v11584_v44 = vld [vmem:[#allocation21_spill] sm:$0xff] }
 0x3c2   : > { %5692 = vmatpush1.bf16.msra.mxu0 %v11565_v47  ;;  %5620 = vmatprep.subr.bf16.mxu1 %v11566_v59  ;;  %v11585_v47 = vpack.c.bf16 %v11583_v8, %v11584_v44  ;;  %v11586_v59 = vld [vmem:[#allocation24_spill] sm:$0xff]  ;;  %v11602_v8 = vld [vmem:[#allocation33_spill] sm:$0xff] }
 0x3c3   : > { %5693 = vmatprep.subr.bf16.mxu0 %v11567_v37  ;;  %5514 = vmatprep.mubr.bf16.mxu1 %v11411_v28  ;;  %v11587_v37 = vld [vmem:[#allocation26_spill] sm:$0xff] }
 0x3c4   : > { %5587 = vmatprep.mubr.bf16.mxu0 %v11411_v28 }
 0x3c5   : > { %5621 = vmatpush1.bf16.msra.mxu1 %v11568_v36  ;;  %v11588_v36 = vpack.c.bf16 %v11586_v59, %v11587_v37 }
 0x3c6   : > { %5694 = vmatpush1.bf16.msra.mxu0 %v11569_v43  ;;  %5622 = vmatprep.subr.bf16.mxu1 %v11570_v48 }
 0x3c7   : > { %5695 = vmatprep.subr.bf16.mxu0 %v11571_v53 }
 0x3c8   : > { %8466 = vmatmul.mubr.msk.bf16.gmra.mrb[180].mxu1 %vm5021_vm1, %v10111_v55 }
 0x3c9   : > { %8470 = vmatmul.mubr.msk.bf16.gmra.mrb[196].mxu0 %vm5021_vm1, %v10111_v55  ;;  %5623 = vmatpush1.bf16.msra.mxu1 %v11572_v23 }
 0x3ca   : > { %5696 = vmatpush1.bf16.msra.mxu0 %v11573_v60  ;;  %5624 = vmatprep.subr.bf16.mxu1 %v11574_v63  ;;  %v11590_v60 = vld [vmem:[#allocation17_spill] sm:$0xff] }
 0x3cb   : > { %5697 = vmatprep.subr.bf16.mxu0 %v11575_v52  ;;  %5524 = vmatprep.mubr.bf16.mxu1 %v11411_v28  ;;  %v11591_v63 = vpack.c.bf16 %v11589_v62, %v11590_v60  ;;  %v11592_v52 = vld [vmem:[#allocation23_spill] sm:$0xff] }
 0x3cc   : > { %5597 = vmatprep.mubr.bf16.mxu0 %v11411_v28 }
 0x3cd   : > { %5625 = vmatpush1.bf16.msra.mxu1 %v11576_v18  ;;  %v11593_v18 = vld [vmem:[#allocation25_spill] sm:$0xff] }
 0x3ce   : > { %5698 = vmatpush1.bf16.msra.mxu0 %v11577_v51  ;;  %5764 = vmatprep.subr.bf16.mxu1 %v11578_v5  ;;  %v11594_v51 = vpack.c.bf16 %v11592_v52, %v11593_v18 }
 0x3cf   : > { %5837 = vmatprep.subr.bf16.mxu0 %v11579_v13 }
 0x3d0   : > { %8467 = vmatmul.mubr.msk.bf16.gmra.mrb[184].mxu1 %vm5021_vm1, %v10167_v45 }
 0x3d1   : > { %8471 = vmatmul.mubr.msk.bf16.gmra.mrb[200].mxu0 %vm5021_vm1, %v10167_v45  ;;  %5534 = vmatprep.mubr.bf16.mxu1 %v11411_v28 }
 0x3d2   : > { %5607 = vmatprep.mubr.bf16.mxu0 %v11411_v28  ;;  %v10501_v38 = vpop.f32.mrb[96].mxu1  ;;  %v10503_v7 = vpop.f32.mrb[112].mxu0 }
 0x3d3   : > { %v10505_v16 = vpop.f32.mrb[97].mxu1  ;;  %v10507_v9 = vpop.f32.mrb[113].mxu0 }
 0x3d4   : > { %v10509_v40 = vpop.f32.mrb[98].mxu1  ;;  %v10511_v4 = vpop.f32.mrb[114].mxu0 }
 0x3d5   : > { %v4849_v25 = vpack.c.bf16 %v10509_v40, %v10501_v38  ;;  %v4851_v33 = vpack.c.bf16 %v10511_v4, %v10503_v7  ;;  %v10517_v34 = vpop.f32.mrb[99].mxu1  ;;  %v10519_v19 = vpop.f32.mrb[115].mxu0 }
 0x3d6   : > { %v4850_v50 = vpack.c.bf16 %v10517_v34, %v10505_v16  ;;  %v4852_v31 = vpack.c.bf16 %v10519_v19, %v10507_v9  ;;  %v11595_v34 = vpack.c.bf16 %v10349_v41, %v10335_v22  ;;  %v11596_v19 = vld [vmem:[#allocation29_spill] sm:$0xff] }
 0x3d8   : > { %8468 = vmatmul.mubr.msk.bf16.gmra.mrb[188].mxu1 %vm5021_vm1, %v10187_v12 }
 0x3d9   : > { %8472 = vmatmul.mubr.msk.bf16.gmra.mrb[204].mxu0 %vm5021_vm1, %v10187_v12  ;;  %5650 = vmatprep.mubr.bf16.mxu1 %v11411_v28 }
 0x3da   : > { %5723 = vmatprep.mubr.bf16.mxu0 %v11411_v28  ;;  %v10531_v32 = vpop.f32.mrb[100].mxu1  ;;  %v10533_v6 = vpop.f32.mrb[116].mxu0 }
 0x3db   : > { %v10535_v10 = vpop.f32.mrb[101].mxu1  ;;  %v10537_v27 = vpop.f32.mrb[117].mxu0 }
 0x3dc   : > { %v10539_v49 = vpop.f32.mrb[102].mxu1  ;;  %v10541_v58 = vpop.f32.mrb[118].mxu0 }
 0x3dd   : > { %v4881_v56 = vpack.c.bf16 %v10539_v49, %v10531_v32  ;;  %v4883_v2 = vpack.c.bf16 %v10541_v58, %v10533_v6  ;;  %v10547_v3 = vpop.f32.mrb[103].mxu1  ;;  %v10549_v15 = vpop.f32.mrb[119].mxu0 }
 0x3de   : > { %v4882_v20 = vpack.c.bf16 %v10547_v3, %v10535_v10  ;;  %v4884_v39 = vpack.c.bf16 %v10549_v15, %v10537_v27  ;;  %v11597_v10 = vpack.c.bf16 %v10351_v30, %v11596_v19  ;;  %v11598_v15 = vld [vmem:[#allocation34_spill] sm:$0xff] }
 0x3e0   : > { %8473 = vmatmul.mubr.msk.bf16.vlgmr.msra.gmra.mrb[192].mxu1 %vm5021_vm1, %v10067_v42 }
 0x3e1   : > { %8477 = vmatmul.mubr.msk.bf16.vlgmr.msra.gmra.mrb[208].mxu0 %vm5021_vm1, %v10067_v42  ;;  %5765 = vmatpush1.bf16.msra.mxu1 %v11580_v29  ;;  %v11599_v29 = vld [vmem:[#allocation20_spill] sm:$0xff] }
 0x3e2   : > { %5838 = vmatpush1.bf16.msra.mxu0 %v11582_v54  ;;  %5766 = vmatprep.subr.bf16.mxu1 %v11585_v47  ;;  %v10571_v43 = vpop.f32.mrb[104].mxu1  ;;  %v10573_v48 = vpop.f32.mrb[120].mxu0  ;;  %v11600_v57 = vpack.c.bf16 %v11598_v15, %v11599_v29  ;;  %v11601_v54 = vld [vmem:[#allocation30_spill] sm:$0xff] }
 0x3e3   : > { %5839 = vmatprep.subr.bf16.mxu0 %v11588_v36  ;;  %v4581_v53 = vpop.f32.mrb[105].mxu1  ;;  %v4654_v23 = vpop.f32.mrb[121].mxu0  ;;  %5660 = vmatprep.mubr.bf16.mxu1 %v11411_v28  ;;  %v11603_v22 = vpack.c.bf16 %v11601_v54, %v11602_v8  ;;  %v11604_v36 = vpack.c.bf16 %v10393_v24, %v10379_v26 }
 0x3e4   : > { %5733 = vmatprep.mubr.bf16.mxu0 %v11411_v28  ;;  %v4583_v1 = vpop.f32.mrb[106].mxu1  ;;  %v4656_v61 = vpop.f32.mrb[122].mxu0 }
 0x3e5   : > { %5767 = vmatpush1.bf16.msra.mxu1 %v11591_v63  ;;  %v4913_v5 = vpack.c.bf16 %v4583_v1, %v10571_v43  ;;  %v4915_v13 = vpack.c.bf16 %v4656_v61, %v10573_v48  ;;  %v4585_v16 = vpop.f32.mrb[107].mxu1  ;;  %v4658_v9 = vpop.f32.mrb[123].mxu0 }
 0x3e6   : > { %5840 = vmatpush1.bf16.msra.mxu0 %v11594_v51  ;;  %5768 = vmatprep.subr.bf16.mxu1 %v11595_v34  ;;  %v4914_v27 = vpack.c.bf16 %v4585_v16, %v4581_v53  ;;  %v4916_v3 = vpack.c.bf16 %v4658_v9, %v4654_v23 }
 0x3e7   : > { %5841 = vmatprep.subr.bf16.mxu0 %v11597_v10 }
 0x3e8   : > { %8474 = vmatmul.mubr.msk.bf16.gmra.mrb[196].mxu1 %vm5021_vm1, %v10111_v55 }
 0x3e9   : > { %8478 = vmatmul.mubr.msk.bf16.gmra.mrb[212].mxu0 %vm5021_vm1, %v10111_v55  ;;  %5769 = vmatpush1.bf16.msra.mxu1 %v11600_v57 }
 0x3ea   : > { %5842 = vmatpush1.bf16.msra.mxu0 %v11603_v22  ;;  %5770 = vmatprep.subr.bf16.mxu1 %v4942_v46  ;;  %v4589_v41 = vpop.f32.mrb[108].mxu1  ;;  %v4662_v30 = vpop.f32.mrb[124].mxu0  ;;  %v11605_v46 = vld [vmem:[#allocation31_spill] sm:$0xff] }
 0x3eb   : > { %5843 = vmatprep.subr.bf16.mxu0 %v4944_v17  ;;  %v4591_v44 = vpop.f32.mrb[109].mxu1  ;;  %v4664_v47 = vpop.f32.mrb[125].mxu0  ;;  %5670 = vmatprep.mubr.bf16.mxu1 %v11411_v28  ;;  %v11606_v21 = vpack.c.bf16 %v10395_v11, %v11605_v46 }
 0x3ec   : > { %5743 = vmatprep.mubr.bf16.mxu0 %v11411_v28  ;;  %v4593_v59 = vpop.f32.mrb[110].mxu1  ;;  %v4666_v37 = vpop.f32.mrb[126].mxu0 }
 0x3ed   : > { %5771 = vmatpush1.bf16.msra.mxu1 %v11604_v36  ;;  %v4945_v14 = vpack.c.bf16 %v4593_v59, %v4589_v41  ;;  %v4947_v17 = vpack.c.bf16 %v4666_v37, %v4662_v30  ;;  %v4595_v0 = vpop.f32.mrb[111].mxu1  ;;  %v4668_v35 = vpop.f32.mrb[127].mxu0 }
 0x3ee   : > { %5844 = vmatpush1.bf16.msra.mxu0 %v11606_v21  ;;  %5910 = vmatprep.subr.bf16.mxu1 %v4850_v50  ;;  %v4946_v43 = vpack.c.bf16 %v4595_v0, %v4591_v44  ;;  %v4948_v48 = vpack.c.bf16 %v4668_v35, %v4664_v47  ;;  %v10679_v59 = vpop.permute.xlu0 %4963  ;;  %v10681_v37 = vpop.permute.xlu1 %4968 }
 0x3ef   : > { %5983 = vmatprep.subr.bf16.mxu0 %v4852_v31 }
 0x3f0   : > { %8475 = vmatmul.mubr.msk.bf16.gmra.mrb[200].mxu1 %vm5021_vm1, %v10167_v45 }
 0x3f1   : > { %8479 = vmatmul.mubr.msk.bf16.gmra.mrb[216].mxu0 %vm5021_vm1, %v10167_v45  ;;  %5680 = vmatprep.mubr.bf16.mxu1 %v11411_v28 }
 0x3f2   : > { %5753 = vmatprep.mubr.bf16.mxu0 %v11411_v28 }
 0x3f8   : > { %8476 = vmatmul.mubr.msk.bf16.gmra.mrb[204].mxu1 %vm5021_vm1, %v10187_v12 }
 0x3f9   : > { %8480 = vmatmul.mubr.msk.bf16.gmra.mrb[220].mxu0 %vm5021_vm1, %v10187_v12  ;;  %5796 = vmatprep.mubr.bf16.mxu1 %v11411_v28 }
 0x3fa   : > { %5869 = vmatprep.mubr.bf16.mxu0 %v11411_v28 }
 0x400   : > { %8481 = vmatmul.mubr.msk.bf16.vlgmr.msra.gmra.mrb[208].mxu1 %vm5021_vm1, %v10067_v42 }
 0x401   : > { %8485 = vmatmul.mubr.msk.bf16.vlgmr.msra.gmra.mrb[224].mxu0 %vm5021_vm1, %v10067_v42  ;;  %5911 = vmatpush1.bf16.msra.mxu1 %v4849_v25 }
 0x402   : > { %5984 = vmatpush1.bf16.msra.mxu0 %v4851_v33  ;;  %5912 = vmatprep.subr.bf16.mxu1 %v4882_v20 }
 0x403   : > { %5985 = vmatprep.subr.bf16.mxu0 %v4884_v39  ;;  %5806 = vmatprep.mubr.bf16.mxu1 %v11411_v28 }
 0x404   : > { %5879 = vmatprep.mubr.bf16.mxu0 %v11411_v28 }
 0x405   : > { %5913 = vmatpush1.bf16.msra.mxu1 %v4881_v56 }
 0x406   : > { %5986 = vmatpush1.bf16.msra.mxu0 %v4883_v2  ;;  %5914 = vmatprep.subr.bf16.mxu1 %v4914_v27 }
 0x407   : > { %5987 = vmatprep.subr.bf16.mxu0 %v4916_v3 }
 0x408   : > { %8482 = vmatmul.mubr.msk.bf16.gmra.mrb[212].mxu1 %vm5021_vm1, %v10111_v55 }
 0x409   : > { %8486 = vmatmul.mubr.msk.bf16.gmra.mrb[228].mxu0 %vm5021_vm1, %v10111_v55  ;;  %5915 = vmatpush1.bf16.msra.mxu1 %v4913_v5 }
 0x40a   : > { %5988 = vmatpush1.bf16.msra.mxu0 %v4915_v13  ;;  %5916 = vmatprep.subr.bf16.mxu1 %v4946_v43 }
 0x40b   : > { %5989 = vmatprep.subr.bf16.mxu0 %v4948_v48  ;;  %5816 = vmatprep.mubr.bf16.mxu1 %v11411_v28 }
 0x40c   : > { %5889 = vmatprep.mubr.bf16.mxu0 %v11411_v28 }
 0x40d   : > { %5917 = vmatpush1.bf16.msra.mxu1 %v4945_v14 }
 0x40e   : > { %5990 = vmatpush1.bf16.msra.mxu0 %v4947_v17 }
 0x410   : > { %8483 = vmatmul.mubr.msk.bf16.gmra.mrb[216].mxu1 %vm5021_vm1, %v10167_v45 }
 0x411   : > { %8487 = vmatmul.mubr.msk.bf16.gmra.mrb[232].mxu0 %vm5021_vm1, %v10167_v45  ;;  %5826 = vmatprep.mubr.bf16.mxu1 %v11411_v28 }
 0x412   : > { %5899 = vmatprep.mubr.bf16.mxu0 %v11411_v28 }
 0x413   : > { %v4705_v26 = vpop.f32.mrb[112].mxu1  ;;  %v4778_v24 = vpop.f32.mrb[128].mxu0 }
 0x414   : > { %v4707_v11 = vpop.f32.mrb[113].mxu1  ;;  %v4780_v38 = vpop.f32.mrb[129].mxu0 }
 0x415   : > { %v4709_v7 = vpop.f32.mrb[114].mxu1  ;;  %v4782_v40 = vpop.f32.mrb[130].mxu0 }
 0x416   : > { %v4853_v4 = vpack.c.bf16 %v4709_v7, %v4705_v26  ;;  %v4855_v25 = vpack.c.bf16 %v4782_v40, %v4778_v24  ;;  %v4711_v33 = vpop.f32.mrb[115].mxu1  ;;  %v4784_v50 = vpop.f32.mrb[131].mxu0 }
 0x417   : > { %v4854_v31 = vpack.c.bf16 %v4711_v33, %v4707_v11  ;;  %v4856_v32 = vpack.c.bf16 %v4784_v50, %v4780_v38 }
 0x418   : > { %8484 = vmatmul.mubr.msk.bf16.gmra.mrb[220].mxu1 %vm5021_vm1, %v10187_v12 }
 0x419   : > { %8488 = vmatmul.mubr.msk.bf16.gmra.mrb[236].mxu0 %vm5021_vm1, %v10187_v12  ;;  %6056 = vmatprep.subr.bf16.mxu1 %v4854_v31 }
 0x41a   : > { %6129 = vmatprep.subr.bf16.mxu0 %v4856_v32  ;;  %5942 = vmatprep.mubr.bf16.mxu1 %v11411_v28 }
 0x41b   : > { %6015 = vmatprep.mubr.bf16.mxu0 %v11411_v28  ;;  %v4715_v6 = vpop.f32.mrb[116].mxu1  ;;  %v4788_v49 = vpop.f32.mrb[132].mxu0 }
 0x41c   : > { %v4717_v58 = vpop.f32.mrb[117].mxu1  ;;  %v4790_v56 = vpop.f32.mrb[133].mxu0 }
 0x41d   : > { %v4719_v2 = vpop.f32.mrb[118].mxu1  ;;  %v4792_v20 = vpop.f32.mrb[134].mxu0 }
 0x41e   : > { %v4885_v39 = vpack.c.bf16 %v4719_v2, %v4715_v6  ;;  %v4887_v53 = vpack.c.bf16 %v4792_v20, %v4788_v49  ;;  %v4721_v23 = vpop.f32.mrb[119].mxu1  ;;  %v4794_v1 = vpop.f32.mrb[135].mxu0 }
 0x41f   : > { %v4886_v61 = vpack.c.bf16 %v4721_v23, %v4717_v58  ;;  %v4888_v62 = vpack.c.bf16 %v4794_v1, %v4790_v56  ;;  %v10699_v56 = vpop.permute.xlu0 %4973  ;;  %v10701_v2 = vpop.permute.xlu1 %4978 }
 0x420   : > { %8489 = vmatmul.mubr.msk.bf16.vlgmr.msra.gmra.mrb[224].mxu1 %vm5021_vm1, %v10067_v42 }
 0x421   : > { %8493 = vmatmul.mubr.msk.bf16.vlgmr.msra.gmra.mrb[240].mxu0 %vm5021_vm1, %v10067_v42  ;;  %6057 = vmatpush1.bf16.msra.mxu1 %v4853_v4 }
 0x422   : > { %6130 = vmatpush1.bf16.msra.mxu0 %v4855_v25  ;;  %6058 = vmatprep.subr.bf16.mxu1 %v4886_v61 }
 0x423   : > { %6131 = vmatprep.subr.bf16.mxu0 %v4888_v62  ;;  %v4725_v60 = vpop.f32.mrb[120].mxu1  ;;  %v4798_v63 = vpop.f32.mrb[136].mxu0  ;;  %5952 = vmatprep.mubr.bf16.mxu1 %v11411_v28 }
 0x424   : > { %6025 = vmatprep.mubr.bf16.mxu0 %v11411_v28  ;;  %v4727_v52 = vpop.f32.mrb[121].mxu1  ;;  %v4800_v18 = vpop.f32.mrb[137].mxu0 }
 0x425   : > { %6059 = vmatpush1.bf16.msra.mxu1 %v4885_v39  ;;  %v4729_v51 = vpop.f32.mrb[122].mxu1  ;;  %v4802_v5 = vpop.f32.mrb[138].mxu0 }
 0x426   : > { %6132 = vmatpush1.bf16.msra.mxu0 %v4887_v53  ;;  %v4917_v13 = vpack.c.bf16 %v4729_v51, %v4725_v60  ;;  %v4919_v16 = vpack.c.bf16 %v4802_v5, %v4798_v63  ;;  %v4731_v9 = vpop.f32.mrb[123].mxu1  ;;  %v4804_v34 = vpop.f32.mrb[139].mxu0 }
 0x427   : > { %v4918_v19 = vpack.c.bf16 %v4731_v9, %v4727_v52  ;;  %v4920_v10 = vpack.c.bf16 %v4804_v34, %v4800_v18 }
 0x428   : > { %8490 = vmatmul.mubr.msk.bf16.gmra.mrb[228].mxu1 %vm5021_vm1, %v10111_v55 }
 0x429   : > { %8494 = vmatmul.mubr.msk.bf16.gmra.mrb[244].mxu0 %vm5021_vm1, %v10111_v55  ;;  %6060 = vmatprep.subr.bf16.mxu1 %v4918_v19 }
 0x42a   : > { %6133 = vmatprep.subr.bf16.mxu0 %v4920_v10  ;;  %6061 = vmatpush1.bf16.msra.mxu1 %v4917_v13 }
 0x42b   : > { %6134 = vmatpush1.bf16.msra.mxu0 %v4919_v16  ;;  %v4735_v27 = vpop.f32.mrb[124].mxu1  ;;  %v4808_v3 = vpop.f32.mrb[140].mxu0  ;;  %5962 = vmatprep.mubr.bf16.mxu1 %v11411_v28 }
 0x42c   : > { %6035 = vmatprep.mubr.bf16.mxu0 %v11411_v28  ;;  %v4737_v15 = vpop.f32.mrb[125].mxu1  ;;  %v4810_v29 = vpop.f32.mrb[141].mxu0 }
 0x42d   : > { %v4739_v57 = vpop.f32.mrb[126].mxu1  ;;  %v4812_v54 = vpop.f32.mrb[142].mxu0 }
 0x42e   : > { %v4949_v8 = vpack.c.bf16 %v4739_v57, %v4735_v27  ;;  %v4951_v22 = vpack.c.bf16 %v4812_v54, %v4808_v3  ;;  %v4741_v41 = vpop.f32.mrb[127].mxu1  ;;  %v4814_v30 = vpop.f32.mrb[143].mxu0 }
 0x42f   : > { %v4950_v44 = vpack.c.bf16 %v4741_v41, %v4737_v15  ;;  %v4952_v47 = vpack.c.bf16 %v4814_v30, %v4810_v29  ;;  %v10715_v30 = vpop.permute.xlu0 %4983 }
 0x430   : > { %8491 = vmatmul.mubr.msk.bf16.gmra.mrb[232].mxu1 %vm5021_vm1, %v10167_v45 }
 0x431   : > { %8495 = vmatmul.mubr.msk.bf16.gmra.mrb[248].mxu0 %vm5021_vm1, %v10167_v45  ;;  %6062 = vmatprep.subr.bf16.mxu1 %v4950_v44  ;;  %v10717_v44 = vpop.permute.xlu1 %4988 }
 0x432   : > { %6135 = vmatprep.subr.bf16.mxu0 %v4952_v47  ;;  %6063 = vmatpush1.bf16.msra.mxu1 %v4949_v8 }
 0x433   : > { %6136 = vmatpush1.bf16.msra.mxu0 %v4951_v22  ;;  %v5068_v36 = vpop.f32.mrb[128].mxu1  ;;  %v5141_v46 = vpop.f32.mrb[144].mxu0  ;;  %5972 = vmatprep.mubr.bf16.mxu1 %v11411_v28 }
 0x434   : > { %6045 = vmatprep.mubr.bf16.mxu0 %v11411_v28  ;;  %v5069_v21 = vadd.f32 %v5068_v36, %v10679_v59  ;;  %v5142_v14 = vadd.f32 %v5141_v46, %v10679_v59  ;;  %v5070_v17 = vpop.f32.mrb[129].mxu1  ;;  %v5143_v0 = vpop.f32.mrb[145].mxu0 }
 0x435   : > { %v5071_v35 = vadd.f32 %v5070_v17, %v10679_v59  ;;  %v5144_v43 = vadd.f32 %v5143_v0, %v10679_v59  ;;  %v5072_v48 = vpop.f32.mrb[130].mxu1  ;;  %v5145_v26 = vpop.f32.mrb[146].mxu0 }
 0x436   : > { %v5073_v24 = vadd.f32 %v5072_v48, %v10681_v37  ;;  %v5146_v11 = vadd.f32 %v5145_v26, %v10681_v37  ;;  %v5074_v38 = vpop.f32.mrb[131].mxu1  ;;  %v5147_v7 = vpop.f32.mrb[147].mxu0  ;;  %v6202_v25 = vmax.f32 %v5069_v21, 0.0  ;;  %v6204_v33 = vmax.f32 %v5142_v14, 0.0 }
 0x437   : > { %v5075_v40 = vadd.f32 %v5074_v38, %v10681_v37  ;;  %v5148_v4 = vadd.f32 %v5147_v7, %v10681_v37  ;;  %v6203_v32 = vmax.f32 %v5071_v35, 0.0  ;;  %v6205_v6 = vmax.f32 %v5144_v43, 0.0 }
 0x438   : > { %v6234_v50 = vmax.f32 %v5073_v24, 0.0  ;;  %v6236_v31 = vmax.f32 %v5146_v11, 0.0  ;;  %8492 = vmatmul.mubr.msk.bf16.gmra.mrb[236].mxu1 %vm5021_vm1, %v10187_v12 }
 0x439   : > { %8496 = vmatmul.mubr.msk.bf16.gmra.mrb[252].mxu0 %vm5021_vm1, %v10187_v12  ;;  %v6235_v49 = vmax.f32 %v5075_v40, 0.0  ;;  %v6237_v58 = vmax.f32 %v5148_v4, 0.0  ;;  %6088 = vmatprep.mubr.bf16.mxu1 %v11411_v28 }
 0x43a   : > { %6161 = vmatprep.mubr.bf16.mxu0 %v11411_v28  ;;  %v8538_v20 = vpack.c.bf16 %v6234_v50, %v6202_v25  ;;  %v8554_v39 = vpack.c.bf16 %v6236_v31, %v6204_v33 }
 0x43b   : > { %v8536_v53 = vpack.c.bf16 %v6235_v49, %v6203_v32  ;;  %v8552_v23 = vpack.c.bf16 %v6237_v58, %v6205_v6  ;;  %v5078_v1 = vpop.f32.mrb[132].mxu1  ;;  %v5151_v61 = vpop.f32.mrb[148].mxu0 }
 0x43c   : > { %v5079_v62 = vadd.f32 %v5078_v1, %v10699_v56  ;;  %v5152_v60 = vadd.f32 %v5151_v61, %v10699_v56  ;;  %v5080_v63 = vpop.f32.mrb[133].mxu1  ;;  %v5153_v52 = vpop.f32.mrb[149].mxu0 }
 0x43d   : > { %v5081_v18 = vadd.f32 %v5080_v63, %v10699_v56  ;;  %v5154_v51 = vadd.f32 %v5153_v52, %v10699_v56  ;;  %v5082_v5 = vpop.f32.mrb[134].mxu1  ;;  %v5155_v13 = vpop.f32.mrb[150].mxu0  ;;  %8537 = vmatprep.subr.bf16.mxu1 %v8536_v53  ;;  %8553 = vmatprep.subr.bf16.mxu0 %v8552_v23 }
 0x43e   : > { %v5083_v16 = vadd.f32 %v5082_v5, %v10701_v2  ;;  %v5156_v9 = vadd.f32 %v5155_v13, %v10701_v2  ;;  %v5084_v34 = vpop.f32.mrb[135].mxu1  ;;  %v5157_v19 = vpop.f32.mrb[151].mxu0  ;;  %v6266_v3 = vmax.f32 %v5079_v62, 0.0  ;;  %v6268_v15 = vmax.f32 %v5152_v60, 0.0 }
 0x43f   : > { %v5085_v10 = vadd.f32 %v5084_v34, %v10701_v2  ;;  %v5158_v27 = vadd.f32 %v5157_v19, %v10701_v2  ;;  %v6267_v54 = vmax.f32 %v5081_v18, 0.0  ;;  %v6269_v8 = vmax.f32 %v5154_v51, 0.0  ;;  %v10735_v53 = vpop.permute.xlu0 %4993  ;;  %v10737_v23 = vpop.permute.xlu1 %4998 }
 0x440   : > { %v6298_v29 = vmax.f32 %v5083_v16, 0.0  ;;  %v6300_v57 = vmax.f32 %v5156_v9, 0.0  ;;  %8497 = vmatmul.mubr.msk.bf16.vlgmr.msra.gmra.mrb[240].mxu1 %vm5021_vm1, %v10067_v42 }
 0x441   : > { %8501 = vmatmul.mubr.msk.bf16.vlgmr.msra.gmra.mrb[0].mxu0 %vm5021_vm1, %v10067_v42  ;;  %v6299_v22 = vmax.f32 %v5085_v10, 0.0  ;;  %v6301_v41 = vmax.f32 %v5158_v27, 0.0  ;;  %8539 = vmatpush1.bf16.msra.mxu1 %v8538_v20 }
 0x442   : > { %8555 = vmatpush1.bf16.msra.mxu0 %v8554_v39  ;;  %v8542_v47 = vpack.c.bf16 %v6298_v29, %v6266_v3  ;;  %v8558_v36 = vpack.c.bf16 %v6300_v57, %v6268_v15  ;;  %6098 = vmatprep.mubr.bf16.mxu1 %v11411_v28 }
 0x443   : > { %6171 = vmatprep.mubr.bf16.mxu0 %v11411_v28  ;;  %v8540_v46 = vpack.c.bf16 %v6299_v22, %v6267_v54  ;;  %v8556_v21 = vpack.c.bf16 %v6301_v41, %v6269_v8  ;;  %v5088_v14 = vpop.f32.mrb[136].mxu1  ;;  %v5161_v42 = vpop.f32.mrb[152].mxu0 }
 0x444   : > { %v5089_v17 = vadd.f32 %v5088_v14, %v10715_v30  ;;  %v5162_v0 = vadd.f32 %v5161_v42, %v10715_v30  ;;  %v5090_v35 = vpop.f32.mrb[137].mxu1  ;;  %v5163_v43 = vpop.f32.mrb[153].mxu0 }
 0x445   : > { %v5091_v48 = vadd.f32 %v5090_v35, %v10715_v30  ;;  %v5164_v26 = vadd.f32 %v5163_v43, %v10715_v30  ;;  %v5092_v24 = vpop.f32.mrb[138].mxu1  ;;  %v5165_v11 = vpop.f32.mrb[154].mxu0  ;;  %8541 = vmatprep.subr.bf16.mxu1 %v8540_v46  ;;  %8557 = vmatprep.subr.bf16.mxu0 %v8556_v21 }
 0x446   : > { %v5093_v38 = vadd.f32 %v5092_v24, %v10717_v44  ;;  %v5166_v7 = vadd.f32 %v5165_v11, %v10717_v44  ;;  %v5094_v40 = vpop.f32.mrb[139].mxu1  ;;  %v5167_v4 = vpop.f32.mrb[155].mxu0  ;;  %8543 = vmatpush1.bf16.msra.mxu1 %v8542_v47  ;;  %8559 = vmatpush1.bf16.msra.mxu0 %v8558_v36  ;;  %v6330_v50 = vmax.f32 %v5089_v17, 0.0  ;;  %v6332_v31 = vmax.f32 %v5162_v0, 0.0 }
 0x447   : > { %v5095_v25 = vadd.f32 %v5094_v40, %v10717_v44  ;;  %v5168_v33 = vadd.f32 %v5167_v4, %v10717_v44  ;;  %v6331_v49 = vmax.f32 %v5091_v48, 0.0  ;;  %v6333_v58 = vmax.f32 %v5164_v26, 0.0 }
 0x448   : > { %v6362_v32 = vmax.f32 %v5093_v38, 0.0  ;;  %v6364_v6 = vmax.f32 %v5166_v7, 0.0  ;;  %8498 = vmatmul.mubr.msk.bf16.gmra.mrb[244].mxu1 %vm5021_vm1, %v10111_v55 }
 0x449   : > { %8502 = vmatmul.mubr.msk.bf16.gmra.mrb[4].mxu0 %vm5021_vm1, %v10111_v55  ;;  %v6363_v20 = vmax.f32 %v5095_v25, 0.0  ;;  %v6365_v39 = vmax.f32 %v5168_v33, 0.0  ;;  %6108 = vmatprep.mubr.bf16.mxu1 %v11411_v28 }
 0x44a   : > { %6181 = vmatprep.mubr.bf16.mxu0 %v11411_v28  ;;  %v8546_v1 = vpack.c.bf16 %v6362_v32, %v6330_v50  ;;  %v8562_v61 = vpack.c.bf16 %v6364_v6, %v6332_v31 }
 0x44b   : > { %v8544_v62 = vpack.c.bf16 %v6363_v20, %v6331_v49  ;;  %v8560_v60 = vpack.c.bf16 %v6365_v39, %v6333_v58  ;;  %v5098_v63 = vpop.f32.mrb[140].mxu1  ;;  %v5171_v52 = vpop.f32.mrb[156].mxu0 }
 0x44c   : > { %v5099_v55 = vadd.f32 %v5098_v63, %v10735_v53  ;;  %v5172_v18 = vadd.f32 %v5171_v52, %v10735_v53  ;;  %v5100_v51 = vpop.f32.mrb[141].mxu1  ;;  %v5173_v5 = vpop.f32.mrb[157].mxu0 }
 0x44d   : > { %v5101_v13 = vadd.f32 %v5100_v51, %v10735_v53  ;;  %v5174_v16 = vadd.f32 %v5173_v5, %v10735_v53  ;;  %v5102_v9 = vpop.f32.mrb[142].mxu1  ;;  %v5175_v34 = vpop.f32.mrb[158].mxu0  ;;  %8545 = vmatprep.subr.bf16.mxu1 %v8544_v62  ;;  %8561 = vmatprep.subr.bf16.mxu0 %v8560_v60 }
 0x44e   : > { %v5103_v19 = vadd.f32 %v5102_v9, %v10737_v23  ;;  %v5176_v10 = vadd.f32 %v5175_v34, %v10737_v23  ;;  %v5104_v27 = vpop.f32.mrb[143].mxu1  ;;  %v5177_v3 = vpop.f32.mrb[159].mxu0  ;;  %8547 = vmatpush1.bf16.msra.mxu1 %v8546_v1  ;;  %8563 = vmatpush1.bf16.msra.mxu0 %v8562_v61  ;;  %v6394_v57 = vmax.f32 %v5099_v55, 0.0  ;;  %v6396_v54 = vmax.f32 %v5172_v18, 0.0 }
 0x44f   : > { %v5105_v15 = vadd.f32 %v5104_v27, %v10737_v23  ;;  %v5178_v29 = vadd.f32 %v5177_v3, %v10737_v23  ;;  %v6395_v41 = vmax.f32 %v5101_v13, 0.0  ;;  %v6397_v47 = vmax.f32 %v5174_v16, 0.0 }
 0x450   : > { %v6426_v8 = vmax.f32 %v5103_v19, 0.0  ;;  %v6428_v22 = vmax.f32 %v5176_v10, 0.0  ;;  %8499 = vmatmul.mubr.msk.bf16.gmra.mrb[248].mxu1 %vm5021_vm1, %v10167_v45  ;;  %v11607_v61 = vmov 0.0   ;;  %v10771_v10 = vld [vmem:[#allocation8] sm:$0x3] }
 0x451   : > { %8503 = vmatmul.mubr.msk.bf16.gmra.mrb[8].mxu0 %vm5021_vm1, %v10167_v45  ;;  %v6427_v36 = vmax.f32 %v5105_v15, 0.0  ;;  %v6429_v46 = vmax.f32 %v5178_v29, 0.0  ;;  %6118 = vmatprep.mubr.bf16.mxu1 %v11411_v28 }
 0x452   : > { %6191 = vmatprep.mubr.bf16.mxu0 %v11411_v28  ;;  %v8550_v21 = vpack.c.bf16 %v6426_v8, %v6394_v57  ;;  %v8566_v14 = vpack.c.bf16 %v6428_v22, %v6396_v54 }
 0x453   : > { %v8548_v42 = vpack.c.bf16 %v6427_v36, %v6395_v41  ;;  %v8564_v17 = vpack.c.bf16 %v6429_v46, %v6397_v47  ;;  %v5214_v0 = vpop.f32.mrb[144].mxu1  ;;  %v5287_v35 = vpop.f32.mrb[160].mxu0 }
 0x454   : > { %v5215_v43 = vadd.f32 %v5214_v0, %v10679_v59  ;;  %v5288_v48 = vadd.f32 %v5287_v35, %v10679_v59  ;;  %v5216_v26 = vpop.f32.mrb[145].mxu1  ;;  %v5289_v45 = vpop.f32.mrb[161].mxu0 }
 0x455   : > { %v5217_v24 = vadd.f32 %v5216_v26, %v10679_v59  ;;  %v5290_v11 = vadd.f32 %v5289_v45, %v10679_v59  ;;  %v5218_v38 = vpop.f32.mrb[146].mxu1  ;;  %v5291_v7 = vpop.f32.mrb[162].mxu0  ;;  %8549 = vmatprep.subr.bf16.mxu1 %v8548_v42  ;;  %8565 = vmatprep.subr.bf16.mxu0 %v8564_v17 }
 0x456   : > { %v5219_v28 = vadd.f32 %v5218_v38, %v10681_v37  ;;  %v5292_v40 = vadd.f32 %v5291_v7, %v10681_v37  ;;  %v5220_v4 = vpop.f32.mrb[147].mxu1  ;;  %v5293_v25 = vpop.f32.mrb[163].mxu0  ;;  %8551 = vmatpush1.bf16.msra.mxu1 %v8550_v21  ;;  %8567 = vmatpush1.bf16.msra.mxu0 %v8566_v14  ;;  %v6206_v31 = vmax.f32 %v5215_v43, 0.0  ;;  %v6208_v32 = vmax.f32 %v5288_v48, 0.0 }
 0x457   : > { %v5221_v33 = vadd.f32 %v5220_v4, %v10681_v37  ;;  %v5294_v50 = vadd.f32 %v5293_v25, %v10681_v37  ;;  %v6207_v58 = vmax.f32 %v5217_v24, 0.0  ;;  %v6209_v20 = vmax.f32 %v5290_v11, 0.0 }
 0x458   : > { %v6238_v6 = vmax.f32 %v5219_v28, 0.0  ;;  %v6240_v49 = vmax.f32 %v5292_v40, 0.0  ;;  %8500 = vmatmul.mubr.msk.bf16.gmra.mrb[252].mxu1 %vm5021_vm1, %v10187_v12 }
 0x459   : > { %8504 = vmatmul.mubr.msk.bf16.gmra.mrb[12].mxu0 %vm5021_vm1, %v10187_v12  ;;  %v6239_v39 = vmax.f32 %v5221_v33, 0.0  ;;  %v6241_v1 = vmax.f32 %v5294_v50, 0.0  ;;  %6532 = vmatprep.mubr.f32.mxu1 %v11607_v61 }
 0x45a   : > { %6603 = vmatprep.mubr.f32.mxu0 %v11607_v61  ;;  %v8570_v62 = vpack.c.bf16 %v6238_v6, %v6206_v31  ;;  %v8586_v60 = vpack.c.bf16 %v6240_v49, %v6208_v32 }
 0x45b   : > { %v8568_v63 = vpack.c.bf16 %v6239_v39, %v6207_v58  ;;  %v8584_v52 = vpack.c.bf16 %v6241_v1, %v6209_v20  ;;  %v5224_v55 = vpop.f32.mrb[148].mxu1  ;;  %v5297_v18 = vpop.f32.mrb[164].mxu0 }
 0x45c   : > { %v5225_v51 = vadd.f32 %v5224_v55, %v10699_v56  ;;  %v5298_v5 = vadd.f32 %v5297_v18, %v10699_v56  ;;  %v5226_v13 = vpop.f32.mrb[149].mxu1  ;;  %v5299_v12 = vpop.f32.mrb[165].mxu0 }
 0x45d   : > { %v5227_v16 = vadd.f32 %v5226_v13, %v10699_v56  ;;  %v5300_v9 = vadd.f32 %v5299_v12, %v10699_v56  ;;  %v5228_v34 = vpop.f32.mrb[150].mxu1  ;;  %v5301_v19 = vpop.f32.mrb[166].mxu0  ;;  %8569 = vmatprep.subr.bf16.mxu1 %v8568_v63  ;;  %8585 = vmatprep.subr.bf16.mxu0 %v8584_v52 }
 0x45e   : > { %v5229_v27 = vadd.f32 %v5228_v34, %v10701_v2  ;;  %v5302_v3 = vadd.f32 %v5301_v19, %v10701_v2  ;;  %v5230_v15 = vpop.f32.mrb[151].mxu1  ;;  %v5303_v29 = vpop.f32.mrb[167].mxu0  ;;  %v6270_v8 = vmax.f32 %v5225_v51, 0.0  ;;  %v6272_v22 = vmax.f32 %v5298_v5, 0.0 }
 0x45f   : > { %v5231_v57 = vadd.f32 %v5230_v15, %v10701_v2  ;;  %v5304_v54 = vadd.f32 %v5303_v29, %v10701_v2  ;;  %v6271_v36 = vmax.f32 %v5227_v16, 0.0  ;;  %v6273_v46 = vmax.f32 %v5300_v9, 0.0 }
 0x460   : > { %v6302_v41 = vmax.f32 %v5229_v27, 0.0  ;;  %v6304_v47 = vmax.f32 %v5302_v3, 0.0  ;;  %8505 = vmatmul.mubr.msk.f32.vlgmr.msra.gmra.mrb[0].mxu1 %vm5021_vm1, %v10771_v10 }
 0x461   : > { %8506 = vmatmul.mubr.msk.f32.vlgmr.msra.gmra.mrb[16].mxu0 %vm5021_vm1, %v10771_v10  ;;  %v6303_v21 = vmax.f32 %v5231_v57, 0.0  ;;  %v6305_v14 = vmax.f32 %v5304_v54, 0.0  ;;  %8571 = vmatpush1.bf16.msra.mxu1 %v8570_v62 }
 0x462   : > { %8587 = vmatpush1.bf16.msra.mxu0 %v8586_v60  ;;  %v8574_v42 = vpack.c.bf16 %v6302_v41, %v6270_v8  ;;  %v8590_v17 = vpack.c.bf16 %v6304_v47, %v6272_v22  ;;  %6674 = vmatprep.mubr.f32.mxu1 %v11607_v61 }
 0x463   : > { %6745 = vmatprep.mubr.f32.mxu0 %v11607_v61  ;;  %v8572_v0 = vpack.c.bf16 %v6303_v21, %v6271_v36  ;;  %v8588_v35 = vpack.c.bf16 %v6305_v14, %v6273_v46  ;;  %v5234_v43 = vpop.f32.mrb[152].mxu1  ;;  %v5307_v48 = vpop.f32.mrb[168].mxu0 }
 0x464   : > { %v5235_v26 = vadd.f32 %v5234_v43, %v10715_v30  ;;  %v5308_v45 = vadd.f32 %v5307_v48, %v10715_v30  ;;  %v5236_v24 = vpop.f32.mrb[153].mxu1  ;;  %v5309_v11 = vpop.f32.mrb[169].mxu0 }
 0x465   : > { %v5237_v38 = vadd.f32 %v5236_v24, %v10715_v30  ;;  %v5310_v7 = vadd.f32 %v5309_v11, %v10715_v30  ;;  %v5238_v28 = vpop.f32.mrb[154].mxu1  ;;  %v5311_v40 = vpop.f32.mrb[170].mxu0  ;;  %8573 = vmatprep.subr.bf16.mxu1 %v8572_v0  ;;  %8589 = vmatprep.subr.bf16.mxu0 %v8588_v35 }
 0x466   : > { %v5239_v4 = vadd.f32 %v5238_v28, %v10717_v44  ;;  %v5312_v25 = vadd.f32 %v5311_v40, %v10717_v44  ;;  %v5240_v33 = vpop.f32.mrb[155].mxu1  ;;  %v5313_v50 = vpop.f32.mrb[171].mxu0  ;;  %8575 = vmatpush1.bf16.msra.mxu1 %v8574_v42  ;;  %8591 = vmatpush1.bf16.msra.mxu0 %v8590_v17  ;;  %v6334_v6 = vmax.f32 %v5235_v26, 0.0  ;;  %v6336_v49 = vmax.f32 %v5308_v45, 0.0 }
 0x467   : > { %v5241_v31 = vadd.f32 %v5240_v33, %v10717_v44  ;;  %v5314_v32 = vadd.f32 %v5313_v50, %v10717_v44  ;;  %v6335_v39 = vmax.f32 %v5237_v38, 0.0  ;;  %v6337_v1 = vmax.f32 %v5310_v7, 0.0 }
 0x468   : > { %v6366_v58 = vmax.f32 %v5239_v4, 0.0  ;;  %v6368_v20 = vmax.f32 %v5312_v25, 0.0 }
 0x469   : > { %v6367_v62 = vmax.f32 %v5241_v31, 0.0  ;;  %v6369_v60 = vmax.f32 %v5314_v32, 0.0 }
 0x46a   : > { %v8578_v63 = vpack.c.bf16 %v6366_v58, %v6334_v6  ;;  %v8594_v52 = vpack.c.bf16 %v6368_v20, %v6336_v49 }
 0x46b   : > { %v8576_v55 = vpack.c.bf16 %v6367_v62, %v6335_v39  ;;  %v8592_v18 = vpack.c.bf16 %v6369_v60, %v6337_v1  ;;  %v5244_v51 = vpop.f32.mrb[156].mxu1  ;;  %v5317_v5 = vpop.f32.mrb[172].mxu0 }
 0x46c   : > { %v5245_v13 = vadd.f32 %v5244_v51, %v10735_v53  ;;  %v5318_v12 = vadd.f32 %v5317_v5, %v10735_v53  ;;  %v5246_v16 = vpop.f32.mrb[157].mxu1  ;;  %v5319_v9 = vpop.f32.mrb[173].mxu0 }
 0x46d   : > { %v5247_v34 = vadd.f32 %v5246_v16, %v10735_v53  ;;  %v5320_v19 = vadd.f32 %v5319_v9, %v10735_v53  ;;  %v5248_v27 = vpop.f32.mrb[158].mxu1  ;;  %v5321_v3 = vpop.f32.mrb[174].mxu0  ;;  %8577 = vmatprep.subr.bf16.mxu1 %v8576_v55  ;;  %8593 = vmatprep.subr.bf16.mxu0 %v8592_v18 }
 0x46e   : > { %v5249_v15 = vadd.f32 %v5248_v27, %v10737_v23  ;;  %v5322_v29 = vadd.f32 %v5321_v3, %v10737_v23  ;;  %v5250_v57 = vpop.f32.mrb[159].mxu1  ;;  %v5323_v54 = vpop.f32.mrb[175].mxu0  ;;  %8579 = vmatpush1.bf16.msra.mxu1 %v8578_v63  ;;  %8595 = vmatpush1.bf16.msra.mxu0 %v8594_v52  ;;  %v6398_v41 = vmax.f32 %v5245_v13, 0.0  ;;  %v6400_v47 = vmax.f32 %v5318_v12, 0.0 }
 0x46f   : > { %v5251_v8 = vadd.f32 %v5250_v57, %v10737_v23  ;;  %v5324_v22 = vadd.f32 %v5323_v54, %v10737_v23  ;;  %v6399_v21 = vmax.f32 %v5247_v34, 0.0  ;;  %v6401_v14 = vmax.f32 %v5320_v19, 0.0 }
 0x470   : > { %v6430_v36 = vmax.f32 %v5249_v15, 0.0  ;;  %v6432_v46 = vmax.f32 %v5322_v29, 0.0 }
 0x471   : > { %v6431_v42 = vmax.f32 %v5251_v8, 0.0  ;;  %v6433_v17 = vmax.f32 %v5324_v22, 0.0 }
 0x472   : > { %v8582_v0 = vpack.c.bf16 %v6430_v36, %v6398_v41  ;;  %v8598_v35 = vpack.c.bf16 %v6432_v46, %v6400_v47 }
 0x473   : > { %v8580_v43 = vpack.c.bf16 %v6431_v42, %v6399_v21  ;;  %v8596_v48 = vpack.c.bf16 %v6433_v17, %v6401_v14  ;;  %v5360_v26 = vpop.f32.mrb[160].mxu1  ;;  %v5433_v45 = vpop.f32.mrb[176].mxu0 }
 0x474   : > { %v5361_v24 = vadd.f32 %v5360_v26, %v10679_v59  ;;  %v5434_v11 = vadd.f32 %v5433_v45, %v10679_v59  ;;  %v5362_v38 = vpop.f32.mrb[161].mxu1  ;;  %v5435_v7 = vpop.f32.mrb[177].mxu0 }
 0x475   : > { %v5363_v28 = vadd.f32 %v5362_v38, %v10679_v59  ;;  %v5436_v40 = vadd.f32 %v5435_v7, %v10679_v59  ;;  %v5364_v4 = vpop.f32.mrb[162].mxu1  ;;  %v5437_v25 = vpop.f32.mrb[178].mxu0  ;;  %8581 = vmatprep.subr.bf16.mxu1 %v8580_v43  ;;  %8597 = vmatprep.subr.bf16.mxu0 %v8596_v48 }
 0x476   : > { %v5365_v33 = vadd.f32 %v5364_v4, %v10681_v37  ;;  %v5438_v50 = vadd.f32 %v5437_v25, %v10681_v37  ;;  %v5366_v31 = vpop.f32.mrb[163].mxu1  ;;  %v5439_v32 = vpop.f32.mrb[179].mxu0  ;;  %8583 = vmatpush1.bf16.msra.mxu1 %v8582_v0  ;;  %8599 = vmatpush1.bf16.msra.mxu0 %v8598_v35  ;;  %v6210_v58 = vmax.f32 %v5361_v24, 0.0  ;;  %v6212_v20 = vmax.f32 %v5434_v11, 0.0 }
 0x477   : > { %v5367_v6 = vadd.f32 %v5366_v31, %v10681_v37  ;;  %v5440_v49 = vadd.f32 %v5439_v32, %v10681_v37  ;;  %v6211_v62 = vmax.f32 %v5363_v28, 0.0  ;;  %v6213_v60 = vmax.f32 %v5436_v40, 0.0 }
 0x478   : > { %v6242_v39 = vmax.f32 %v5365_v33, 0.0  ;;  %v6244_v1 = vmax.f32 %v5438_v50, 0.0 }
 0x479   : > { %v6243_v63 = vmax.f32 %v5367_v6, 0.0  ;;  %v6245_v52 = vmax.f32 %v5440_v49, 0.0  ;;  %8507 = vmatmul.mubr.msk.f32.vlgmr.msra.gmra.mrb[2].mxu1 %vm5021_vm1, %v10771_v10  ;;  %8508 = vmatmul.mubr.msk.f32.vlgmr.msra.gmra.mrb[18].mxu0 %vm5021_vm1, %v10771_v10 }
 0x47a   : > { %v8602_v55 = vpack.c.bf16 %v6242_v39, %v6210_v58  ;;  %v8618_v18 = vpack.c.bf16 %v6244_v1, %v6212_v20  ;;  %6816 = vmatprep.mubr.f32.mxu1 %v11607_v61  ;;  %6887 = vmatprep.mubr.f32.mxu0 %v11607_v61 }
 0x47b   : > { %v8600_v51 = vpack.c.bf16 %v6243_v63, %v6211_v62  ;;  %v8616_v5 = vpack.c.bf16 %v6245_v52, %v6213_v60  ;;  %v5370_v13 = vpop.f32.mrb[164].mxu1 }
 0x47c   : > { %v5443_v12 = vpop.f32.mrb[180].mxu0  ;;  %v5371_v16 = vadd.f32 %v5370_v13, %v10699_v56  ;;  %v5372_v34 = vpop.f32.mrb[165].mxu1 }
 0x47d   : > { %v5444_v9 = vadd.f32 %v5443_v12, %v10699_v56  ;;  %v5445_v19 = vpop.f32.mrb[181].mxu0  ;;  %v5373_v27 = vadd.f32 %v5372_v34, %v10699_v56  ;;  %v5374_v15 = vpop.f32.mrb[166].mxu1  ;;  %8601 = vmatprep.subr.bf16.mxu1 %v8600_v51  ;;  %8617 = vmatprep.subr.bf16.mxu0 %v8616_v5 }
 0x47e   : > { %v5446_v3 = vadd.f32 %v5445_v19, %v10699_v56  ;;  %v5447_v29 = vpop.f32.mrb[182].mxu0  ;;  %v5375_v57 = vadd.f32 %v5374_v15, %v10701_v2  ;;  %v5376_v8 = vpop.f32.mrb[167].mxu1  ;;  %8603 = vmatpush1.bf16.msra.mxu1 %v8602_v55  ;;  %8619 = vmatpush1.bf16.msra.mxu0 %v8618_v18  ;;  %v6274_v36 = vmax.f32 %v5371_v16, 0.0 }
 0x47f   : > { %v5448_v54 = vadd.f32 %v5447_v29, %v10701_v2  ;;  %v5449_v22 = vpop.f32.mrb[183].mxu0  ;;  %v5377_v41 = vadd.f32 %v5376_v8, %v10701_v2  ;;  %v6276_v46 = vmax.f32 %v5444_v9, 0.0  ;;  %v6275_v42 = vmax.f32 %v5373_v27, 0.0 }
 0x480   : > { %v5450_v47 = vadd.f32 %v5449_v22, %v10701_v2  ;;  %v6306_v21 = vmax.f32 %v5375_v57, 0.0  ;;  %v6277_v17 = vmax.f32 %v5446_v3, 0.0 }
 0x481   : > { %v6308_v14 = vmax.f32 %v5448_v54, 0.0  ;;  %v6307_v0 = vmax.f32 %v5377_v41, 0.0 }
 0x482   : > { %v6309_v35 = vmax.f32 %v5450_v47, 0.0  ;;  %v8606_v43 = vpack.c.bf16 %v6306_v21, %v6274_v36 }
 0x483   : > { %v8622_v48 = vpack.c.bf16 %v6308_v14, %v6276_v46  ;;  %v8604_v26 = vpack.c.bf16 %v6307_v0, %v6275_v42  ;;  %v5380_v24 = vpop.f32.mrb[168].mxu1 }
 0x484   : > { %v8620_v45 = vpack.c.bf16 %v6309_v35, %v6277_v17  ;;  %v5453_v11 = vpop.f32.mrb[184].mxu0  ;;  %v5381_v38 = vadd.f32 %v5380_v24, %v10715_v30  ;;  %v5382_v28 = vpop.f32.mrb[169].mxu1 }
 0x485   : > { %v5454_v7 = vadd.f32 %v5453_v11, %v10715_v30  ;;  %v5455_v40 = vpop.f32.mrb[185].mxu0  ;;  %v5383_v4 = vadd.f32 %v5382_v28, %v10715_v30  ;;  %v5384_v33 = vpop.f32.mrb[170].mxu1  ;;  %8605 = vmatprep.subr.bf16.mxu1 %v8604_v26 }
 0x486   : > { %v5456_v25 = vadd.f32 %v5455_v40, %v10715_v30  ;;  %v5457_v50 = vpop.f32.mrb[186].mxu0  ;;  %8621 = vmatprep.subr.bf16.mxu0 %v8620_v45  ;;  %v5385_v31 = vadd.f32 %v5384_v33, %v10717_v44  ;;  %v5386_v6 = vpop.f32.mrb[171].mxu1  ;;  %8607 = vmatpush1.bf16.msra.mxu1 %v8606_v43  ;;  %v6338_v39 = vmax.f32 %v5381_v38, 0.0 }
 0x487   : > { %v5458_v32 = vadd.f32 %v5457_v50, %v10717_v44  ;;  %v5459_v49 = vpop.f32.mrb[187].mxu0  ;;  %8623 = vmatpush1.bf16.msra.mxu0 %v8622_v48  ;;  %v5387_v58 = vadd.f32 %v5386_v6, %v10717_v44  ;;  %v6340_v1 = vmax.f32 %v5454_v7, 0.0  ;;  %v6339_v63 = vmax.f32 %v5383_v4, 0.0 }
 0x488   : > { %v5460_v20 = vadd.f32 %v5459_v49, %v10717_v44  ;;  %v6370_v62 = vmax.f32 %v5385_v31, 0.0  ;;  %v6341_v52 = vmax.f32 %v5456_v25, 0.0 }
 0x489   : > { %v6372_v60 = vmax.f32 %v5458_v32, 0.0  ;;  %v6371_v55 = vmax.f32 %v5387_v58, 0.0 }
 0x48a   : > { %v6373_v18 = vmax.f32 %v5460_v20, 0.0  ;;  %v8610_v51 = vpack.c.bf16 %v6370_v62, %v6338_v39 }
 0x48b   : > { %v8626_v5 = vpack.c.bf16 %v6372_v60, %v6340_v1  ;;  %v8608_v13 = vpack.c.bf16 %v6371_v55, %v6339_v63  ;;  %v5390_v16 = vpop.f32.mrb[172].mxu1 }
 0x48c   : > { %v8624_v12 = vpack.c.bf16 %v6373_v18, %v6341_v52  ;;  %v5463_v9 = vpop.f32.mrb[188].mxu0  ;;  %v5391_v34 = vadd.f32 %v5390_v16, %v10735_v53  ;;  %v5392_v27 = vpop.f32.mrb[173].mxu1 }
 0x48d   : > { %v5464_v19 = vadd.f32 %v5463_v9, %v10735_v53  ;;  %v5465_v3 = vpop.f32.mrb[189].mxu0  ;;  %v5393_v15 = vadd.f32 %v5392_v27, %v10735_v53  ;;  %v5394_v57 = vpop.f32.mrb[174].mxu1  ;;  %8609 = vmatprep.subr.bf16.mxu1 %v8608_v13 }
 0x48e   : > { %v5466_v29 = vadd.f32 %v5465_v3, %v10735_v53  ;;  %v5467_v54 = vpop.f32.mrb[190].mxu0  ;;  %8625 = vmatprep.subr.bf16.mxu0 %v8624_v12  ;;  %v5395_v8 = vadd.f32 %v5394_v57, %v10737_v23  ;;  %v5396_v41 = vpop.f32.mrb[175].mxu1  ;;  %8611 = vmatpush1.bf16.msra.mxu1 %v8610_v51  ;;  %v6402_v21 = vmax.f32 %v5391_v34, 0.0 }
 0x48f   : > { %v5468_v22 = vadd.f32 %v5467_v54, %v10737_v23  ;;  %v5469_v47 = vpop.f32.mrb[191].mxu0  ;;  %8627 = vmatpush1.bf16.msra.mxu0 %v8626_v5  ;;  %v5397_v36 = vadd.f32 %v5396_v41, %v10737_v23  ;;  %v6404_v14 = vmax.f32 %v5464_v19, 0.0  ;;  %v6403_v0 = vmax.f32 %v5393_v15, 0.0 }
 0x490   : > { %v5470_v46 = vadd.f32 %v5469_v47, %v10737_v23  ;;  %v6434_v42 = vmax.f32 %v5395_v8, 0.0  ;;  %v6405_v35 = vmax.f32 %v5466_v29, 0.0 }
 0x491   : > { %v6436_v17 = vmax.f32 %v5468_v22, 0.0  ;;  %v6435_v43 = vmax.f32 %v5397_v36, 0.0 }
 0x492   : > { %v6437_v48 = vmax.f32 %v5470_v46, 0.0  ;;  %v8614_v26 = vpack.c.bf16 %v6434_v42, %v6402_v21 }
 0x493   : > { %v8630_v45 = vpack.c.bf16 %v6436_v17, %v6404_v14  ;;  %v8612_v24 = vpack.c.bf16 %v6435_v43, %v6403_v0  ;;  %v5506_v38 = vpop.f32.mrb[176].mxu1 }
 0x494   : > { %v8628_v11 = vpack.c.bf16 %v6437_v48, %v6405_v35  ;;  %v5579_v7 = vpop.f32.mrb[192].mxu0  ;;  %v5507_v28 = vadd.f32 %v5506_v38, %v10679_v59  ;;  %v5508_v4 = vpop.f32.mrb[177].mxu1 }
 0x495   : > { %v5580_v40 = vadd.f32 %v5579_v7, %v10679_v59  ;;  %v5581_v25 = vpop.f32.mrb[193].mxu0  ;;  %v5509_v33 = vadd.f32 %v5508_v4, %v10679_v59  ;;  %v5510_v31 = vpop.f32.mrb[178].mxu1  ;;  %8613 = vmatprep.subr.bf16.mxu1 %v8612_v24 }
 0x496   : > { %v5582_v50 = vadd.f32 %v5581_v25, %v10679_v59  ;;  %v5583_v32 = vpop.f32.mrb[194].mxu0  ;;  %8629 = vmatprep.subr.bf16.mxu0 %v8628_v11  ;;  %v5511_v6 = vadd.f32 %v5510_v31, %v10681_v37  ;;  %v5512_v58 = vpop.f32.mrb[179].mxu1  ;;  %8615 = vmatpush1.bf16.msra.mxu1 %v8614_v26  ;;  %v6214_v62 = vmax.f32 %v5507_v28, 0.0 }
 0x497   : > { %v5584_v49 = vadd.f32 %v5583_v32, %v10681_v37  ;;  %v5585_v20 = vpop.f32.mrb[195].mxu0  ;;  %8631 = vmatpush1.bf16.msra.mxu0 %v8630_v45  ;;  %v5513_v39 = vadd.f32 %v5512_v58, %v10681_v37  ;;  %v6216_v60 = vmax.f32 %v5580_v40, 0.0  ;;  %v6215_v55 = vmax.f32 %v5509_v33, 0.0 }
 0x498   : > { %v5586_v1 = vadd.f32 %v5585_v20, %v10681_v37  ;;  %v6246_v63 = vmax.f32 %v5511_v6, 0.0  ;;  %v6217_v18 = vmax.f32 %v5582_v50, 0.0 }
 0x499   : > { %v6248_v52 = vmax.f32 %v5584_v49, 0.0  ;;  %v6247_v51 = vmax.f32 %v5513_v39, 0.0  ;;  %8509 = vmatmul.mubr.msk.f32.vlgmr.msra.gmra.mrb[4].mxu1 %vm5021_vm1, %v10771_v10 }
 0x49a   : > { %v6249_v5 = vmax.f32 %v5586_v1, 0.0  ;;  %8510 = vmatmul.mubr.msk.f32.vlgmr.msra.gmra.mrb[20].mxu0 %vm5021_vm1, %v10771_v10  ;;  %v8634_v13 = vpack.c.bf16 %v6246_v63, %v6214_v62  ;;  %6958 = vmatprep.mubr.f32.mxu1 %v11607_v61 }
 0x49b   : > { %v8650_v12 = vpack.c.bf16 %v6248_v52, %v6216_v60  ;;  %7029 = vmatprep.mubr.f32.mxu0 %v11607_v61  ;;  %v8632_v16 = vpack.c.bf16 %v6247_v51, %v6215_v55  ;;  %v5516_v34 = vpop.f32.mrb[180].mxu1 }
 0x49c   : > { %v8648_v9 = vpack.c.bf16 %v6249_v5, %v6217_v18  ;;  %v5589_v19 = vpop.f32.mrb[196].mxu0  ;;  %v5517_v27 = vadd.f32 %v5516_v34, %v10699_v56  ;;  %v5518_v15 = vpop.f32.mrb[181].mxu1 }
 0x49d   : > { %v5590_v3 = vadd.f32 %v5589_v19, %v10699_v56  ;;  %v5591_v29 = vpop.f32.mrb[197].mxu0  ;;  %v5519_v57 = vadd.f32 %v5518_v15, %v10699_v56  ;;  %v5520_v8 = vpop.f32.mrb[182].mxu1  ;;  %8633 = vmatprep.subr.bf16.mxu1 %v8632_v16 }
 0x49e   : > { %v5592_v54 = vadd.f32 %v5591_v29, %v10699_v56  ;;  %v5593_v22 = vpop.f32.mrb[198].mxu0  ;;  %8649 = vmatprep.subr.bf16.mxu0 %v8648_v9  ;;  %v5521_v41 = vadd.f32 %v5520_v8, %v10701_v2  ;;  %v5522_v36 = vpop.f32.mrb[183].mxu1  ;;  %8635 = vmatpush1.bf16.msra.mxu1 %v8634_v13  ;;  %v6278_v42 = vmax.f32 %v5517_v27, 0.0 }
 0x49f   : > { %v5594_v47 = vadd.f32 %v5593_v22, %v10701_v2  ;;  %v5595_v46 = vpop.f32.mrb[199].mxu0  ;;  %8651 = vmatpush1.bf16.msra.mxu0 %v8650_v12  ;;  %v5523_v21 = vadd.f32 %v5522_v36, %v10701_v2  ;;  %v6280_v17 = vmax.f32 %v5590_v3, 0.0  ;;  %v6279_v43 = vmax.f32 %v5519_v57, 0.0 }
 0x4a0   : > { %v5596_v14 = vadd.f32 %v5595_v46, %v10701_v2  ;;  %v6310_v0 = vmax.f32 %v5521_v41, 0.0  ;;  %v6281_v48 = vmax.f32 %v5592_v54, 0.0 }
 0x4a1   : > { %v6312_v35 = vmax.f32 %v5594_v47, 0.0  ;;  %v6311_v26 = vmax.f32 %v5523_v21, 0.0 }
 0x4a2   : > { %v6313_v45 = vmax.f32 %v5596_v14, 0.0  ;;  %v8638_v24 = vpack.c.bf16 %v6310_v0, %v6278_v42 }
 0x4a3   : > { %v8654_v11 = vpack.c.bf16 %v6312_v35, %v6280_v17  ;;  %v8636_v38 = vpack.c.bf16 %v6311_v26, %v6279_v43  ;;  %v5526_v28 = vpop.f32.mrb[184].mxu1 }
 0x4a4   : > { %v8652_v7 = vpack.c.bf16 %v6313_v45, %v6281_v48  ;;  %v5599_v40 = vpop.f32.mrb[200].mxu0  ;;  %v5527_v4 = vadd.f32 %v5526_v28, %v10715_v30  ;;  %v5528_v33 = vpop.f32.mrb[185].mxu1 }
 0x4a5   : > { %v5600_v25 = vadd.f32 %v5599_v40, %v10715_v30  ;;  %v5601_v50 = vpop.f32.mrb[201].mxu0  ;;  %v5529_v31 = vadd.f32 %v5528_v33, %v10715_v30  ;;  %v5530_v6 = vpop.f32.mrb[186].mxu1  ;;  %8637 = vmatprep.subr.bf16.mxu1 %v8636_v38 }
 0x4a6   : > { %v5602_v32 = vadd.f32 %v5601_v50, %v10715_v30  ;;  %v5603_v49 = vpop.f32.mrb[202].mxu0  ;;  %8653 = vmatprep.subr.bf16.mxu0 %v8652_v7  ;;  %v5531_v58 = vadd.f32 %v5530_v6, %v10717_v44  ;;  %v5532_v39 = vpop.f32.mrb[187].mxu1  ;;  %8639 = vmatpush1.bf16.msra.mxu1 %v8638_v24  ;;  %v6342_v63 = vmax.f32 %v5527_v4, 0.0 }
 0x4a7   : > { %v5604_v20 = vadd.f32 %v5603_v49, %v10717_v44  ;;  %v5605_v1 = vpop.f32.mrb[203].mxu0  ;;  %8655 = vmatpush1.bf16.msra.mxu0 %v8654_v11  ;;  %v5533_v62 = vadd.f32 %v5532_v39, %v10717_v44  ;;  %v6344_v52 = vmax.f32 %v5600_v25, 0.0  ;;  %v6343_v51 = vmax.f32 %v5529_v31, 0.0 }
 0x4a8   : > { %v5606_v60 = vadd.f32 %v5605_v1, %v10717_v44  ;;  %v6374_v55 = vmax.f32 %v5531_v58, 0.0  ;;  %v6345_v5 = vmax.f32 %v5602_v32, 0.0 }
 0x4a9   : > { %v6376_v18 = vmax.f32 %v5604_v20, 0.0  ;;  %v6375_v13 = vmax.f32 %v5533_v62, 0.0 }
 0x4aa   : > { %v6377_v12 = vmax.f32 %v5606_v60, 0.0  ;;  %v8642_v16 = vpack.c.bf16 %v6374_v55, %v6342_v63 }
 0x4ab   : > { %v8658_v9 = vpack.c.bf16 %v6376_v18, %v6344_v52  ;;  %v8640_v34 = vpack.c.bf16 %v6375_v13, %v6343_v51  ;;  %v5536_v27 = vpop.f32.mrb[188].mxu1 }
 0x4ac   : > { %v8656_v19 = vpack.c.bf16 %v6377_v12, %v6345_v5  ;;  %v5609_v3 = vpop.f32.mrb[204].mxu0  ;;  %v5537_v15 = vadd.f32 %v5536_v27, %v10735_v53  ;;  %v5538_v57 = vpop.f32.mrb[189].mxu1 }
 0x4ad   : > { %v5610_v29 = vadd.f32 %v5609_v3, %v10735_v53  ;;  %v5611_v54 = vpop.f32.mrb[205].mxu0  ;;  %v5539_v8 = vadd.f32 %v5538_v57, %v10735_v53  ;;  %v5540_v41 = vpop.f32.mrb[190].mxu1  ;;  %8641 = vmatprep.subr.bf16.mxu1 %v8640_v34 }
 0x4ae   : > { %v5612_v22 = vadd.f32 %v5611_v54, %v10735_v53  ;;  %v5613_v47 = vpop.f32.mrb[206].mxu0  ;;  %8657 = vmatprep.subr.bf16.mxu0 %v8656_v19  ;;  %v5541_v36 = vadd.f32 %v5540_v41, %v10737_v23  ;;  %v5542_v21 = vpop.f32.mrb[191].mxu1  ;;  %8643 = vmatpush1.bf16.msra.mxu1 %v8642_v16  ;;  %v6406_v0 = vmax.f32 %v5537_v15, 0.0 }
 0x4af   : > { %v5614_v46 = vadd.f32 %v5613_v47, %v10737_v23  ;;  %v5615_v14 = vpop.f32.mrb[207].mxu0  ;;  %8659 = vmatpush1.bf16.msra.mxu0 %v8658_v9  ;;  %v5543_v42 = vadd.f32 %v5542_v21, %v10737_v23  ;;  %v6408_v35 = vmax.f32 %v5610_v29, 0.0  ;;  %v6407_v26 = vmax.f32 %v5539_v8, 0.0 }
 0x4b0   : > { %v5616_v17 = vadd.f32 %v5615_v14, %v10737_v23  ;;  %v6438_v43 = vmax.f32 %v5541_v36, 0.0  ;;  %v6409_v45 = vmax.f32 %v5612_v22, 0.0 }
 0x4b1   : > { %v6440_v48 = vmax.f32 %v5614_v46, 0.0  ;;  %v6439_v24 = vmax.f32 %v5543_v42, 0.0 }
 0x4b2   : > { %v6441_v11 = vmax.f32 %v5616_v17, 0.0  ;;  %v8646_v38 = vpack.c.bf16 %v6438_v43, %v6406_v0 }
 0x4b3   : > { %v8662_v7 = vpack.c.bf16 %v6440_v48, %v6408_v35  ;;  %v8644_v28 = vpack.c.bf16 %v6439_v24, %v6407_v26  ;;  %v5652_v4 = vpop.f32.mrb[192].mxu1 }
 0x4b4   : > { %v8660_v40 = vpack.c.bf16 %v6441_v11, %v6409_v45  ;;  %v5725_v25 = vpop.f32.mrb[208].mxu0  ;;  %v5653_v33 = vadd.f32 %v5652_v4, %v10679_v59  ;;  %v5654_v31 = vpop.f32.mrb[193].mxu1 }
 0x4b5   : > { %v5726_v50 = vadd.f32 %v5725_v25, %v10679_v59  ;;  %v5727_v32 = vpop.f32.mrb[209].mxu0  ;;  %v5655_v6 = vadd.f32 %v5654_v31, %v10679_v59  ;;  %v5656_v58 = vpop.f32.mrb[194].mxu1  ;;  %8645 = vmatprep.subr.bf16.mxu1 %v8644_v28 }
 0x4b6   : > { %v5728_v49 = vadd.f32 %v5727_v32, %v10679_v59  ;;  %v5729_v20 = vpop.f32.mrb[210].mxu0  ;;  %8661 = vmatprep.subr.bf16.mxu0 %v8660_v40  ;;  %v5657_v39 = vadd.f32 %v5656_v58, %v10681_v37  ;;  %v5658_v62 = vpop.f32.mrb[195].mxu1  ;;  %8647 = vmatpush1.bf16.msra.mxu1 %v8646_v38  ;;  %v6218_v55 = vmax.f32 %v5653_v33, 0.0 }
 0x4b7   : > { %v5730_v1 = vadd.f32 %v5729_v20, %v10681_v37  ;;  %v5731_v60 = vpop.f32.mrb[211].mxu0  ;;  %8663 = vmatpush1.bf16.msra.mxu0 %v8662_v7  ;;  %v5659_v63 = vadd.f32 %v5658_v62, %v10681_v37  ;;  %v6220_v18 = vmax.f32 %v5726_v50, 0.0  ;;  %v6219_v13 = vmax.f32 %v5655_v6, 0.0 }
 0x4b8   : > { %v5732_v52 = vadd.f32 %v5731_v60, %v10681_v37  ;;  %v6250_v51 = vmax.f32 %v5657_v39, 0.0  ;;  %v6221_v12 = vmax.f32 %v5728_v49, 0.0 }
 0x4b9   : > { %v6252_v5 = vmax.f32 %v5730_v1, 0.0  ;;  %v6251_v16 = vmax.f32 %v5659_v63, 0.0  ;;  %8511 = vmatmul.mubr.msk.f32.vlgmr.msra.gmra.mrb[6].mxu1 %vm5021_vm1, %v10771_v10 }
 0x4ba   : > { %v6253_v9 = vmax.f32 %v5732_v52, 0.0  ;;  %8512 = vmatmul.mubr.msk.f32.vlgmr.msra.gmra.mrb[22].mxu0 %vm5021_vm1, %v10771_v10  ;;  %v8666_v34 = vpack.c.bf16 %v6250_v51, %v6218_v55  ;;  %7100 = vmatprep.mubr.f32.mxu1 %v11607_v61 }
 0x4bb   : > { %v8682_v19 = vpack.c.bf16 %v6252_v5, %v6220_v18  ;;  %7171 = vmatprep.mubr.f32.mxu0 %v11607_v61  ;;  %v8664_v27 = vpack.c.bf16 %v6251_v16, %v6219_v13  ;;  %v5662_v15 = vpop.f32.mrb[196].mxu1 }
 0x4bc   : > { %v8680_v3 = vpack.c.bf16 %v6253_v9, %v6221_v12  ;;  %v5735_v29 = vpop.f32.mrb[212].mxu0  ;;  %v5663_v57 = vadd.f32 %v5662_v15, %v10699_v56  ;;  %v5664_v8 = vpop.f32.mrb[197].mxu1 }
 0x4bd   : > { %v5736_v54 = vadd.f32 %v5735_v29, %v10699_v56  ;;  %v5737_v22 = vpop.f32.mrb[213].mxu0  ;;  %v5665_v41 = vadd.f32 %v5664_v8, %v10699_v56  ;;  %v5666_v47 = vpop.f32.mrb[198].mxu1  ;;  %8665 = vmatprep.subr.bf16.mxu1 %v8664_v27 }
 0x4be   : > { %v5738_v10 = vadd.f32 %v5737_v22, %v10699_v56  ;;  %v5739_v36 = vpop.f32.mrb[214].mxu0  ;;  %8681 = vmatprep.subr.bf16.mxu0 %v8680_v3  ;;  %v5667_v46 = vadd.f32 %v5666_v47, %v10701_v2  ;;  %v5668_v14 = vpop.f32.mrb[199].mxu1  ;;  %8667 = vmatpush1.bf16.msra.mxu1 %v8666_v34  ;;  %v6282_v35 = vmax.f32 %v5663_v57, 0.0 }
 0x4bf   : > { %v5740_v21 = vadd.f32 %v5739_v36, %v10701_v2  ;;  %v5741_v42 = vpop.f32.mrb[215].mxu0  ;;  %8683 = vmatpush1.bf16.msra.mxu0 %v8682_v19  ;;  %v5669_v17 = vadd.f32 %v5668_v14, %v10701_v2  ;;  %v6284_v43 = vmax.f32 %v5736_v54, 0.0  ;;  %v6283_v45 = vmax.f32 %v5665_v41, 0.0 }
 0x4c0   : > { %v5742_v0 = vadd.f32 %v5741_v42, %v10701_v2  ;;  %v6314_v48 = vmax.f32 %v5667_v46, 0.0  ;;  %v6285_v24 = vmax.f32 %v5738_v10, 0.0 }
 0x4c1   : > { %v6316_v26 = vmax.f32 %v5740_v21, 0.0  ;;  %v6315_v11 = vmax.f32 %v5669_v17, 0.0 }
 0x4c2   : > { %v6317_v38 = vmax.f32 %v5742_v0, 0.0  ;;  %v8670_v7 = vpack.c.bf16 %v6314_v48, %v6282_v35 }
 0x4c3   : > { %v8686_v28 = vpack.c.bf16 %v6316_v26, %v6284_v43  ;;  %v8668_v40 = vpack.c.bf16 %v6315_v11, %v6283_v45  ;;  %v5672_v25 = vpop.f32.mrb[200].mxu1 }
 0x4c4   : > { %v8684_v4 = vpack.c.bf16 %v6317_v38, %v6285_v24  ;;  %v5745_v33 = vpop.f32.mrb[216].mxu0  ;;  %v5673_v50 = vadd.f32 %v5672_v25, %v10715_v30  ;;  %v5674_v32 = vpop.f32.mrb[201].mxu1 }
 0x4c5   : > { %v5746_v31 = vadd.f32 %v5745_v33, %v10715_v30  ;;  %v5747_v6 = vpop.f32.mrb[217].mxu0  ;;  %v5675_v49 = vadd.f32 %v5674_v32, %v10715_v30  ;;  %v5676_v20 = vpop.f32.mrb[202].mxu1  ;;  %8669 = vmatprep.subr.bf16.mxu1 %v8668_v40 }
 0x4c6   : > { %v5748_v58 = vadd.f32 %v5747_v6, %v10715_v30  ;;  %v5749_v39 = vpop.f32.mrb[218].mxu0  ;;  %8685 = vmatprep.subr.bf16.mxu0 %v8684_v4  ;;  %v5677_v1 = vadd.f32 %v5676_v20, %v10717_v44  ;;  %v5678_v60 = vpop.f32.mrb[203].mxu1  ;;  %8671 = vmatpush1.bf16.msra.mxu1 %v8670_v7  ;;  %v6346_v18 = vmax.f32 %v5673_v50, 0.0 }
 0x4c7   : > { %v5750_v62 = vadd.f32 %v5749_v39, %v10717_v44  ;;  %v5751_v63 = vpop.f32.mrb[219].mxu0  ;;  %8687 = vmatpush1.bf16.msra.mxu0 %v8686_v28  ;;  %v5679_v52 = vadd.f32 %v5678_v60, %v10717_v44  ;;  %v6348_v51 = vmax.f32 %v5746_v31, 0.0  ;;  %v6347_v12 = vmax.f32 %v5675_v49, 0.0 }
 0x4c8   : > { %v5752_v55 = vadd.f32 %v5751_v63, %v10717_v44  ;;  %v6378_v5 = vmax.f32 %v5677_v1, 0.0  ;;  %v6349_v16 = vmax.f32 %v5748_v58, 0.0 }
 0x4c9   : > { %v6380_v13 = vmax.f32 %v5750_v62, 0.0  ;;  %v6379_v9 = vmax.f32 %v5679_v52, 0.0 }
 0x4ca   : > { %v6381_v34 = vmax.f32 %v5752_v55, 0.0  ;;  %v8674_v19 = vpack.c.bf16 %v6378_v5, %v6346_v18 }
 0x4cb   : > { %v8690_v27 = vpack.c.bf16 %v6380_v13, %v6348_v51  ;;  %v8672_v3 = vpack.c.bf16 %v6379_v9, %v6347_v12  ;;  %v5682_v29 = vpop.f32.mrb[204].mxu1 }
 0x4cc   : > { %v8688_v15 = vpack.c.bf16 %v6381_v34, %v6349_v16  ;;  %v5755_v57 = vpop.f32.mrb[220].mxu0  ;;  %v5683_v54 = vadd.f32 %v5682_v29, %v10735_v53  ;;  %v5684_v22 = vpop.f32.mrb[205].mxu1 }
 0x4cd   : > { %v5756_v8 = vadd.f32 %v5755_v57, %v10735_v53  ;;  %v5757_v41 = vpop.f32.mrb[221].mxu0  ;;  %v5685_v10 = vadd.f32 %v5684_v22, %v10735_v53  ;;  %v5686_v36 = vpop.f32.mrb[206].mxu1  ;;  %8673 = vmatprep.subr.bf16.mxu1 %v8672_v3 }
 0x4ce   : > { %v5758_v47 = vadd.f32 %v5757_v41, %v10735_v53  ;;  %v5759_v46 = vpop.f32.mrb[222].mxu0  ;;  %8689 = vmatprep.subr.bf16.mxu0 %v8688_v15  ;;  %v5687_v21 = vadd.f32 %v5686_v36, %v10737_v23  ;;  %v5688_v42 = vpop.f32.mrb[207].mxu1  ;;  %8675 = vmatpush1.bf16.msra.mxu1 %v8674_v19  ;;  %v6410_v43 = vmax.f32 %v5683_v54, 0.0 }
 0x4cf   : > { %v5760_v14 = vadd.f32 %v5759_v46, %v10737_v23  ;;  %v5761_v17 = vpop.f32.mrb[223].mxu0  ;;  %8691 = vmatpush1.bf16.msra.mxu0 %v8690_v27  ;;  %v5689_v0 = vadd.f32 %v5688_v42, %v10737_v23  ;;  %v6412_v48 = vmax.f32 %v5756_v8, 0.0  ;;  %v6411_v24 = vmax.f32 %v5685_v10, 0.0  ;;  %v10921_v27 = vld [vmem:[#allocation8] sm:$0x3] }
 0x4d0   : > { %v5762_v35 = vadd.f32 %v5761_v17, %v10737_v23  ;;  %v6442_v26 = vmax.f32 %v5687_v21, 0.0  ;;  %v6413_v11 = vmax.f32 %v5758_v47, 0.0 }
 0x4d1   : > { %v6444_v45 = vmax.f32 %v5760_v14, 0.0  ;;  %v6443_v38 = vmax.f32 %v5689_v0, 0.0 }
 0x4d2   : > { %v6445_v7 = vmax.f32 %v5762_v35, 0.0  ;;  %v8678_v28 = vpack.c.bf16 %v6442_v26, %v6410_v43 }
 0x4d3   : > { %v8694_v40 = vpack.c.bf16 %v6444_v45, %v6412_v48  ;;  %v8676_v4 = vpack.c.bf16 %v6443_v38, %v6411_v24  ;;  %v5798_v33 = vpop.f32.mrb[208].mxu1 }
 0x4d4   : > { %v8692_v25 = vpack.c.bf16 %v6445_v7, %v6413_v11  ;;  %v5871_v50 = vpop.f32.mrb[224].mxu0  ;;  %v5799_v31 = vadd.f32 %v5798_v33, %v10679_v59  ;;  %v5800_v6 = vpop.f32.mrb[209].mxu1 }
 0x4d5   : > { %v5872_v32 = vadd.f32 %v5871_v50, %v10679_v59  ;;  %v5873_v49 = vpop.f32.mrb[225].mxu0  ;;  %v5801_v58 = vadd.f32 %v5800_v6, %v10679_v59  ;;  %v5802_v39 = vpop.f32.mrb[210].mxu1  ;;  %8677 = vmatprep.subr.bf16.mxu1 %v8676_v4 }
 0x4d6   : > { %v5874_v20 = vadd.f32 %v5873_v49, %v10679_v59  ;;  %v5875_v1 = vpop.f32.mrb[226].mxu0  ;;  %8693 = vmatprep.subr.bf16.mxu0 %v8692_v25  ;;  %v5803_v62 = vadd.f32 %v5802_v39, %v10681_v37  ;;  %v5804_v63 = vpop.f32.mrb[211].mxu1  ;;  %8679 = vmatpush1.bf16.msra.mxu1 %v8678_v28  ;;  %v6222_v51 = vmax.f32 %v5799_v31, 0.0 }
 0x4d7   : > { %v5876_v60 = vadd.f32 %v5875_v1, %v10681_v37  ;;  %v5877_v52 = vpop.f32.mrb[227].mxu0  ;;  %8695 = vmatpush1.bf16.msra.mxu0 %v8694_v40  ;;  %v5805_v55 = vadd.f32 %v5804_v63, %v10681_v37  ;;  %v6224_v5 = vmax.f32 %v5872_v32, 0.0  ;;  %v6223_v16 = vmax.f32 %v5801_v58, 0.0 }
 0x4d8   : > { %v5878_v18 = vadd.f32 %v5877_v52, %v10681_v37  ;;  %v6254_v13 = vmax.f32 %v5803_v62, 0.0  ;;  %v6225_v9 = vmax.f32 %v5874_v20, 0.0 }
 0x4d9   : > { %v6256_v12 = vmax.f32 %v5876_v60, 0.0  ;;  %v6255_v34 = vmax.f32 %v5805_v55, 0.0  ;;  %8513 = vmatmul.mubr.msk.f32.vlgmr.msra.gmra.mrb[8].mxu1 %vm5021_vm1, %v10921_v27 }
 0x4da   : > { %v6257_v19 = vmax.f32 %v5878_v18, 0.0  ;;  %8514 = vmatmul.mubr.msk.f32.vlgmr.msra.gmra.mrb[24].mxu0 %vm5021_vm1, %v10921_v27  ;;  %v8698_v3 = vpack.c.bf16 %v6254_v13, %v6222_v51  ;;  %7242 = vmatprep.mubr.f32.mxu1 %v11607_v61 }
 0x4db   : > { %v8714_v15 = vpack.c.bf16 %v6256_v12, %v6224_v5  ;;  %7313 = vmatprep.mubr.f32.mxu0 %v11607_v61  ;;  %v8696_v29 = vpack.c.bf16 %v6255_v34, %v6223_v16  ;;  %v5808_v54 = vpop.f32.mrb[212].mxu1 }
 0x4dc   : > { %v8712_v57 = vpack.c.bf16 %v6257_v19, %v6225_v9  ;;  %v5881_v8 = vpop.f32.mrb[228].mxu0  ;;  %v5809_v22 = vadd.f32 %v5808_v54, %v10699_v56  ;;  %v5810_v10 = vpop.f32.mrb[213].mxu1 }
 0x4dd   : > { %v5882_v41 = vadd.f32 %v5881_v8, %v10699_v56  ;;  %v5883_v47 = vpop.f32.mrb[229].mxu0  ;;  %v5811_v36 = vadd.f32 %v5810_v10, %v10699_v56  ;;  %v5812_v21 = vpop.f32.mrb[214].mxu1  ;;  %8697 = vmatprep.subr.bf16.mxu1 %v8696_v29 }
 0x4de   : > { %v5884_v46 = vadd.f32 %v5883_v47, %v10699_v56  ;;  %v5885_v14 = vpop.f32.mrb[230].mxu0  ;;  %8713 = vmatprep.subr.bf16.mxu0 %v8712_v57  ;;  %v5813_v42 = vadd.f32 %v5812_v21, %v10701_v2  ;;  %v5814_v0 = vpop.f32.mrb[215].mxu1  ;;  %8699 = vmatpush1.bf16.msra.mxu1 %v8698_v3  ;;  %v6286_v26 = vmax.f32 %v5809_v22, 0.0 }
 0x4df   : > { %v5886_v17 = vadd.f32 %v5885_v14, %v10701_v2  ;;  %v5887_v35 = vpop.f32.mrb[231].mxu0  ;;  %8715 = vmatpush1.bf16.msra.mxu0 %v8714_v15  ;;  %v5815_v43 = vadd.f32 %v5814_v0, %v10701_v2  ;;  %v6288_v45 = vmax.f32 %v5882_v41, 0.0  ;;  %v6287_v38 = vmax.f32 %v5811_v36, 0.0 }
 0x4e0   : > { %v5888_v48 = vadd.f32 %v5887_v35, %v10701_v2  ;;  %v6318_v24 = vmax.f32 %v5813_v42, 0.0  ;;  %v6289_v7 = vmax.f32 %v5884_v46, 0.0 }
 0x4e1   : > { %v6320_v11 = vmax.f32 %v5886_v17, 0.0  ;;  %v6319_v28 = vmax.f32 %v5815_v43, 0.0 }
 0x4e2   : > { %v6321_v40 = vmax.f32 %v5888_v48, 0.0  ;;  %v8702_v4 = vpack.c.bf16 %v6318_v24, %v6286_v26 }
 0x4e3   : > { %v8718_v25 = vpack.c.bf16 %v6320_v11, %v6288_v45  ;;  %v8700_v33 = vpack.c.bf16 %v6319_v28, %v6287_v38  ;;  %v5818_v31 = vpop.f32.mrb[216].mxu1 }
 0x4e4   : > { %v8716_v50 = vpack.c.bf16 %v6321_v40, %v6289_v7  ;;  %v5891_v32 = vpop.f32.mrb[232].mxu0  ;;  %v5819_v6 = vadd.f32 %v5818_v31, %v10715_v30  ;;  %v5820_v58 = vpop.f32.mrb[217].mxu1 }
 0x4e5   : > { %v5892_v49 = vadd.f32 %v5891_v32, %v10715_v30  ;;  %v5893_v20 = vpop.f32.mrb[233].mxu0  ;;  %v5821_v39 = vadd.f32 %v5820_v58, %v10715_v30  ;;  %v5822_v62 = vpop.f32.mrb[218].mxu1  ;;  %8701 = vmatprep.subr.bf16.mxu1 %v8700_v33 }
 0x4e6   : > { %v5894_v1 = vadd.f32 %v5893_v20, %v10715_v30  ;;  %v5895_v60 = vpop.f32.mrb[234].mxu0  ;;  %8717 = vmatprep.subr.bf16.mxu0 %v8716_v50  ;;  %v5823_v63 = vadd.f32 %v5822_v62, %v10717_v44  ;;  %v5824_v55 = vpop.f32.mrb[219].mxu1  ;;  %8703 = vmatpush1.bf16.msra.mxu1 %v8702_v4  ;;  %v6350_v13 = vmax.f32 %v5819_v6, 0.0 }
 0x4e7   : > { %v5896_v52 = vadd.f32 %v5895_v60, %v10717_v44  ;;  %v5897_v18 = vpop.f32.mrb[235].mxu0  ;;  %8719 = vmatpush1.bf16.msra.mxu0 %v8718_v25  ;;  %v5825_v51 = vadd.f32 %v5824_v55, %v10717_v44  ;;  %v6352_v12 = vmax.f32 %v5892_v49, 0.0  ;;  %v6351_v34 = vmax.f32 %v5821_v39, 0.0 }
 0x4e8   : > { %v5898_v5 = vadd.f32 %v5897_v18, %v10717_v44  ;;  %v6382_v16 = vmax.f32 %v5823_v63, 0.0  ;;  %v6353_v19 = vmax.f32 %v5894_v1, 0.0 }
 0x4e9   : > { %v6384_v9 = vmax.f32 %v5896_v52, 0.0  ;;  %v6383_v3 = vmax.f32 %v5825_v51, 0.0 }
 0x4ea   : > { %v6385_v15 = vmax.f32 %v5898_v5, 0.0  ;;  %v8706_v29 = vpack.c.bf16 %v6382_v16, %v6350_v13 }
 0x4eb   : > { %v8722_v57 = vpack.c.bf16 %v6384_v9, %v6352_v12  ;;  %v8704_v54 = vpack.c.bf16 %v6383_v3, %v6351_v34  ;;  %v5828_v22 = vpop.f32.mrb[220].mxu1 }
 0x4ec   : > { %v8720_v8 = vpack.c.bf16 %v6385_v15, %v6353_v19  ;;  %v5901_v41 = vpop.f32.mrb[236].mxu0  ;;  %v5829_v10 = vadd.f32 %v5828_v22, %v10735_v53  ;;  %v5830_v36 = vpop.f32.mrb[221].mxu1 }
 0x4ed   : > { %v5902_v47 = vadd.f32 %v5901_v41, %v10735_v53  ;;  %v5903_v46 = vpop.f32.mrb[237].mxu0  ;;  %v5831_v21 = vadd.f32 %v5830_v36, %v10735_v53  ;;  %v5832_v42 = vpop.f32.mrb[222].mxu1  ;;  %8705 = vmatprep.subr.bf16.mxu1 %v8704_v54 }
 0x4ee   : > { %v5904_v14 = vadd.f32 %v5903_v46, %v10735_v53  ;;  %v5905_v17 = vpop.f32.mrb[238].mxu0  ;;  %8721 = vmatprep.subr.bf16.mxu0 %v8720_v8  ;;  %v5833_v0 = vadd.f32 %v5832_v42, %v10737_v23  ;;  %v5834_v43 = vpop.f32.mrb[223].mxu1  ;;  %8707 = vmatpush1.bf16.msra.mxu1 %v8706_v29  ;;  %v6414_v24 = vmax.f32 %v5829_v10, 0.0 }
 0x4ef   : > { %v5906_v35 = vadd.f32 %v5905_v17, %v10737_v23  ;;  %v5907_v48 = vpop.f32.mrb[239].mxu0  ;;  %8723 = vmatpush1.bf16.msra.mxu0 %v8722_v57  ;;  %v5835_v26 = vadd.f32 %v5834_v43, %v10737_v23  ;;  %v6416_v11 = vmax.f32 %v5902_v47, 0.0  ;;  %v6415_v28 = vmax.f32 %v5831_v21, 0.0 }
 0x4f0   : > { %v5908_v45 = vadd.f32 %v5907_v48, %v10737_v23  ;;  %v6446_v38 = vmax.f32 %v5833_v0, 0.0  ;;  %v6417_v40 = vmax.f32 %v5904_v14, 0.0 }
 0x4f1   : > { %v6448_v7 = vmax.f32 %v5906_v35, 0.0  ;;  %v6447_v4 = vmax.f32 %v5835_v26, 0.0 }
 0x4f2   : > { %v6449_v25 = vmax.f32 %v5908_v45, 0.0  ;;  %v8710_v33 = vpack.c.bf16 %v6446_v38, %v6414_v24 }
 0x4f3   : > { %v8726_v50 = vpack.c.bf16 %v6448_v7, %v6416_v11  ;;  %v8708_v31 = vpack.c.bf16 %v6447_v4, %v6415_v28  ;;  %v5944_v6 = vpop.f32.mrb[224].mxu1 }
 0x4f4   : > { %v8724_v32 = vpack.c.bf16 %v6449_v25, %v6417_v40  ;;  %v6017_v49 = vpop.f32.mrb[240].mxu0  ;;  %v5945_v58 = vadd.f32 %v5944_v6, %v10679_v59  ;;  %v5946_v39 = vpop.f32.mrb[225].mxu1 }
 0x4f5   : > { %v6018_v20 = vadd.f32 %v6017_v49, %v10679_v59  ;;  %v6019_v1 = vpop.f32.mrb[241].mxu0  ;;  %v5947_v62 = vadd.f32 %v5946_v39, %v10679_v59  ;;  %v5948_v63 = vpop.f32.mrb[226].mxu1  ;;  %8709 = vmatprep.subr.bf16.mxu1 %v8708_v31 }
 0x4f6   : > { %v6020_v60 = vadd.f32 %v6019_v1, %v10679_v59  ;;  %v6021_v52 = vpop.f32.mrb[242].mxu0  ;;  %8725 = vmatprep.subr.bf16.mxu0 %v8724_v32  ;;  %v5949_v55 = vadd.f32 %v5948_v63, %v10681_v37  ;;  %v5950_v51 = vpop.f32.mrb[227].mxu1  ;;  %8711 = vmatpush1.bf16.msra.mxu1 %v8710_v33  ;;  %v6226_v16 = vmax.f32 %v5945_v58, 0.0 }
 0x4f7   : > { %v6022_v18 = vadd.f32 %v6021_v52, %v10681_v37  ;;  %v6023_v5 = vpop.f32.mrb[243].mxu0  ;;  %8727 = vmatpush1.bf16.msra.mxu0 %v8726_v50  ;;  %v5951_v13 = vadd.f32 %v5950_v51, %v10681_v37  ;;  %v6228_v9 = vmax.f32 %v6018_v20, 0.0  ;;  %v6227_v3 = vmax.f32 %v5947_v62, 0.0 }
 0x4f8   : > { %v6024_v12 = vadd.f32 %v6023_v5, %v10681_v37  ;;  %v6258_v34 = vmax.f32 %v5949_v55, 0.0  ;;  %v6229_v15 = vmax.f32 %v6020_v60, 0.0 }
 0x4f9   : > { %v6260_v19 = vmax.f32 %v6022_v18, 0.0  ;;  %v6259_v29 = vmax.f32 %v5951_v13, 0.0  ;;  %8515 = vmatmul.mubr.msk.f32.vlgmr.msra.gmra.mrb[10].mxu1 %vm5021_vm1, %v10921_v27 }
 0x4fa   : > { %v6261_v57 = vmax.f32 %v6024_v12, 0.0  ;;  %8516 = vmatmul.mubr.msk.f32.vlgmr.msra.gmra.mrb[26].mxu0 %vm5021_vm1, %v10921_v27  ;;  %v8730_v54 = vpack.c.bf16 %v6258_v34, %v6226_v16  ;;  %7384 = vmatprep.mubr.f32.mxu1 %v11607_v61 }
 0x4fb   : > { %v8746_v8 = vpack.c.bf16 %v6260_v19, %v6228_v9  ;;  %7455 = vmatprep.mubr.f32.mxu0 %v11607_v61  ;;  %v8728_v22 = vpack.c.bf16 %v6259_v29, %v6227_v3  ;;  %v5954_v10 = vpop.f32.mrb[228].mxu1 }
 0x4fc   : > { %v8744_v41 = vpack.c.bf16 %v6261_v57, %v6229_v15  ;;  %v6027_v47 = vpop.f32.mrb[244].mxu0  ;;  %v5955_v36 = vadd.f32 %v5954_v10, %v10699_v56  ;;  %v5956_v21 = vpop.f32.mrb[229].mxu1 }
 0x4fd   : > { %v6028_v46 = vadd.f32 %v6027_v47, %v10699_v56  ;;  %v6029_v14 = vpop.f32.mrb[245].mxu0  ;;  %v5957_v42 = vadd.f32 %v5956_v21, %v10699_v56  ;;  %v5958_v0 = vpop.f32.mrb[230].mxu1  ;;  %8729 = vmatprep.subr.bf16.mxu1 %v8728_v22 }
 0x4fe   : > { %v6030_v17 = vadd.f32 %v6029_v14, %v10699_v56  ;;  %v6031_v35 = vpop.f32.mrb[246].mxu0  ;;  %8745 = vmatprep.subr.bf16.mxu0 %v8744_v41  ;;  %v5959_v43 = vadd.f32 %v5958_v0, %v10701_v2  ;;  %v5960_v26 = vpop.f32.mrb[231].mxu1  ;;  %8731 = vmatpush1.bf16.msra.mxu1 %v8730_v54  ;;  %v6290_v38 = vmax.f32 %v5955_v36, 0.0 }
 0x4ff   : > { %v6032_v48 = vadd.f32 %v6031_v35, %v10701_v2  ;;  %v6033_v45 = vpop.f32.mrb[247].mxu0  ;;  %8747 = vmatpush1.bf16.msra.mxu0 %v8746_v8  ;;  %v5961_v24 = vadd.f32 %v5960_v26, %v10701_v2  ;;  %v6292_v7 = vmax.f32 %v6028_v46, 0.0  ;;  %v6291_v4 = vmax.f32 %v5957_v42, 0.0 }
 0x500   : > { %v6034_v11 = vadd.f32 %v6033_v45, %v10701_v2  ;;  %v6322_v28 = vmax.f32 %v5959_v43, 0.0  ;;  %v6293_v25 = vmax.f32 %v6030_v17, 0.0 }
 0x501   : > { %v6324_v40 = vmax.f32 %v6032_v48, 0.0  ;;  %v6323_v33 = vmax.f32 %v5961_v24, 0.0 }
 0x502   : > { %v6325_v50 = vmax.f32 %v6034_v11, 0.0  ;;  %v8734_v31 = vpack.c.bf16 %v6322_v28, %v6290_v38 }
 0x503   : > { %v8750_v32 = vpack.c.bf16 %v6324_v40, %v6292_v7  ;;  %v8732_v6 = vpack.c.bf16 %v6323_v33, %v6291_v4  ;;  %v5964_v58 = vpop.f32.mrb[232].mxu1 }
 0x504   : > { %v8748_v49 = vpack.c.bf16 %v6325_v50, %v6293_v25  ;;  %v6037_v20 = vpop.f32.mrb[248].mxu0  ;;  %v5965_v39 = vadd.f32 %v5964_v58, %v10715_v30  ;;  %v5966_v62 = vpop.f32.mrb[233].mxu1 }
 0x505   : > { %v6038_v1 = vadd.f32 %v6037_v20, %v10715_v30  ;;  %v6039_v60 = vpop.f32.mrb[249].mxu0  ;;  %v5967_v63 = vadd.f32 %v5966_v62, %v10715_v30  ;;  %v5968_v55 = vpop.f32.mrb[234].mxu1  ;;  %8733 = vmatprep.subr.bf16.mxu1 %v8732_v6 }
 0x506   : > { %v6040_v52 = vadd.f32 %v6039_v60, %v10715_v30  ;;  %v6041_v18 = vpop.f32.mrb[250].mxu0  ;;  %8749 = vmatprep.subr.bf16.mxu0 %v8748_v49  ;;  %v5969_v51 = vadd.f32 %v5968_v55, %v10717_v44  ;;  %v5970_v13 = vpop.f32.mrb[235].mxu1  ;;  %8735 = vmatpush1.bf16.msra.mxu1 %v8734_v31  ;;  %v6354_v34 = vmax.f32 %v5965_v39, 0.0 }
 0x507   : > { %v6042_v5 = vadd.f32 %v6041_v18, %v10717_v44  ;;  %v6043_v12 = vpop.f32.mrb[251].mxu0  ;;  %8751 = vmatpush1.bf16.msra.mxu0 %v8750_v32  ;;  %v5971_v16 = vadd.f32 %v5970_v13, %v10717_v44  ;;  %v6356_v19 = vmax.f32 %v6038_v1, 0.0  ;;  %v6355_v29 = vmax.f32 %v5967_v63, 0.0 }
 0x508   : > { %v6044_v9 = vadd.f32 %v6043_v12, %v10717_v44  ;;  %v6386_v3 = vmax.f32 %v5969_v51, 0.0  ;;  %v6357_v57 = vmax.f32 %v6040_v52, 0.0 }
 0x509   : > { %v6388_v15 = vmax.f32 %v6042_v5, 0.0  ;;  %v6387_v54 = vmax.f32 %v5971_v16, 0.0 }
 0x50a   : > { %v6389_v8 = vmax.f32 %v6044_v9, 0.0  ;;  %v8738_v22 = vpack.c.bf16 %v6386_v3, %v6354_v34 }
 0x50b   : > { %v8754_v41 = vpack.c.bf16 %v6388_v15, %v6356_v19  ;;  %v8736_v10 = vpack.c.bf16 %v6387_v54, %v6355_v29  ;;  %v5974_v36 = vpop.f32.mrb[236].mxu1 }
 0x50c   : > { %v8752_v47 = vpack.c.bf16 %v6389_v8, %v6357_v57  ;;  %v6047_v46 = vpop.f32.mrb[252].mxu0  ;;  %v5975_v21 = vadd.f32 %v5974_v36, %v10735_v53  ;;  %v5976_v42 = vpop.f32.mrb[237].mxu1 }
 0x50d   : > { %v6048_v14 = vadd.f32 %v6047_v46, %v10735_v53  ;;  %v6049_v17 = vpop.f32.mrb[253].mxu0  ;;  %v5977_v0 = vadd.f32 %v5976_v42, %v10735_v53  ;;  %v5978_v43 = vpop.f32.mrb[238].mxu1  ;;  %8737 = vmatprep.subr.bf16.mxu1 %v8736_v10 }
 0x50e   : > { %v6050_v35 = vadd.f32 %v6049_v17, %v10735_v53  ;;  %v6051_v48 = vpop.f32.mrb[254].mxu0  ;;  %8753 = vmatprep.subr.bf16.mxu0 %v8752_v47  ;;  %v5979_v26 = vadd.f32 %v5978_v43, %v10737_v23  ;;  %v5980_v24 = vpop.f32.mrb[239].mxu1  ;;  %8739 = vmatpush1.bf16.msra.mxu1 %v8738_v22  ;;  %v6418_v28 = vmax.f32 %v5975_v21, 0.0 }
 0x50f   : > { %v6052_v45 = vadd.f32 %v6051_v48, %v10737_v23  ;;  %v6053_v11 = vpop.f32.mrb[255].mxu0  ;;  %8755 = vmatpush1.bf16.msra.mxu0 %v8754_v41  ;;  %v5981_v38 = vadd.f32 %v5980_v24, %v10737_v23  ;;  %v6420_v40 = vmax.f32 %v6048_v14, 0.0  ;;  %v6419_v33 = vmax.f32 %v5977_v0, 0.0 }
 0x510   : > { %v6054_v7 = vadd.f32 %v6053_v11, %v10737_v23  ;;  %v6450_v4 = vmax.f32 %v5979_v26, 0.0  ;;  %v6421_v50 = vmax.f32 %v6050_v35, 0.0 }
 0x511   : > { %v6452_v25 = vmax.f32 %v6052_v45, 0.0  ;;  %v6451_v31 = vmax.f32 %v5981_v38, 0.0 }
 0x512   : > { %v6453_v32 = vmax.f32 %v6054_v7, 0.0  ;;  %v8742_v6 = vpack.c.bf16 %v6450_v4, %v6418_v28 }
 0x513   : > { %v8758_v49 = vpack.c.bf16 %v6452_v25, %v6420_v40  ;;  %v8740_v58 = vpack.c.bf16 %v6451_v31, %v6419_v33  ;;  %v6090_v39 = vpop.f32.mrb[240].mxu1 }
 0x514   : > { %v8756_v20 = vpack.c.bf16 %v6453_v32, %v6421_v50  ;;  %v6163_v1 = vpop.f32.mrb[0].mxu0  ;;  %v6091_v62 = vadd.f32 %v6090_v39, %v10679_v59  ;;  %v6092_v63 = vpop.f32.mrb[241].mxu1 }
 0x515   : > { %v6164_v60 = vadd.f32 %v6163_v1, %v10679_v59  ;;  %v6165_v52 = vpop.f32.mrb[1].mxu0  ;;  %v6093_v55 = vadd.f32 %v6092_v63, %v10679_v59  ;;  %v6094_v51 = vpop.f32.mrb[242].mxu1  ;;  %8741 = vmatprep.subr.bf16.mxu1 %v8740_v58 }
 0x516   : > { %v6166_v18 = vadd.f32 %v6165_v52, %v10679_v59  ;;  %v6167_v5 = vpop.f32.mrb[2].mxu0  ;;  %8757 = vmatprep.subr.bf16.mxu0 %v8756_v20  ;;  %v6095_v13 = vadd.f32 %v6094_v51, %v10681_v37  ;;  %v6096_v16 = vpop.f32.mrb[243].mxu1  ;;  %8743 = vmatpush1.bf16.msra.mxu1 %v8742_v6  ;;  %v6230_v3 = vmax.f32 %v6091_v62, 0.0 }
 0x517   : > { %v6168_v12 = vadd.f32 %v6167_v5, %v10681_v37  ;;  %v6169_v9 = vpop.f32.mrb[3].mxu0  ;;  %8759 = vmatpush1.bf16.msra.mxu0 %v8758_v49  ;;  %v6097_v34 = vadd.f32 %v6096_v16, %v10681_v37  ;;  %v6232_v15 = vmax.f32 %v6164_v60, 0.0  ;;  %v6231_v57 = vmax.f32 %v6093_v55, 0.0 }
 0x518   : > { %v6170_v19 = vadd.f32 %v6169_v9, %v10681_v37  ;;  %v6262_v29 = vmax.f32 %v6095_v13, 0.0  ;;  %v6233_v54 = vmax.f32 %v6166_v18, 0.0 }
 0x519   : > { %v6264_v59 = vmax.f32 %v6168_v12, 0.0  ;;  %v6263_v8 = vmax.f32 %v6097_v34, 0.0  ;;  %8517 = vmatmul.mubr.msk.f32.vlgmr.msra.gmra.mrb[12].mxu1 %vm5021_vm1, %v10921_v27 }
 0x51a   : > { %v6265_v22 = vmax.f32 %v6170_v19, 0.0  ;;  %8518 = vmatmul.mubr.msk.f32.vlgmr.msra.gmra.mrb[28].mxu0 %vm5021_vm1, %v10921_v27  ;;  %v8762_v41 = vpack.c.bf16 %v6262_v29, %v6230_v3  ;;  %7526 = vmatprep.mubr.f32.mxu1 %v11607_v61 }
 0x51b   : > { %v8778_v10 = vpack.c.bf16 %v6264_v59, %v6232_v15  ;;  %7597 = vmatprep.mubr.f32.mxu0 %v11607_v61  ;;  %v8760_v37 = vpack.c.bf16 %v6263_v8, %v6231_v57  ;;  %v6100_v36 = vpop.f32.mrb[244].mxu1 }
 0x51c   : > { %v8776_v47 = vpack.c.bf16 %v6265_v22, %v6233_v54  ;;  %v6173_v46 = vpop.f32.mrb[4].mxu0  ;;  %v6101_v21 = vadd.f32 %v6100_v36, %v10699_v56  ;;  %v6102_v42 = vpop.f32.mrb[245].mxu1  ;;  %v7641_v36 = vlaneseq }
 0x51d   : > { %v6174_v14 = vadd.f32 %v6173_v46, %v10699_v56  ;;  %v6175_v17 = vpop.f32.mrb[5].mxu0  ;;  %v6103_v0 = vadd.f32 %v6102_v42, %v10699_v56  ;;  %v6104_v43 = vpop.f32.mrb[246].mxu1  ;;  %8761 = vmatprep.subr.bf16.mxu1 %v8760_v37  ;;  %v9087_v37 = vmov 1983009808  }
 0x51e   : > { %v6176_v35 = vadd.f32 %v6175_v17, %v10699_v56  ;;  %v6177_v48 = vpop.f32.mrb[6].mxu0  ;;  %8777 = vmatprep.subr.bf16.mxu0 %v8776_v47  ;;  %v6105_v61 = vadd.f32 %v6104_v43, %v10701_v2  ;;  %v6106_v45 = vpop.f32.mrb[247].mxu1  ;;  %8763 = vmatpush1.bf16.msra.mxu1 %v8762_v41  ;;  %v6294_v7 = vmax.f32 %v6101_v21, 0.0  ;;  %v7639_v47 = vunpack.c.l.s4 %v9087_v37 }
 0x51f   : > { %v6178_v26 = vadd.f32 %v6177_v48, %v10701_v2  ;;  %v6179_v24 = vpop.f32.mrb[7].mxu0  ;;  %8779 = vmatpush1.bf16.msra.mxu0 %v8778_v10  ;;  %v6107_v11 = vadd.f32 %v6106_v45, %v10701_v2  ;;  %v6296_v28 = vmax.f32 %v6174_v14, 0.0  ;;  %v6295_v4 = vmax.f32 %v6103_v0, 0.0 }
 0x520   : > { %v6180_v38 = vadd.f32 %v6179_v24, %v10701_v2  ;;  %v6326_v40 = vmax.f32 %v6105_v61, 0.0  ;;  %v6297_v25 = vmax.f32 %v6176_v35, 0.0 }
 0x521   : > { %v6328_v56 = vmax.f32 %v6178_v26, 0.0  ;;  %v6327_v33 = vmax.f32 %v6107_v11, 0.0  ;;  %v7640_v11 = vunpack.c.0.s8 %v7639_v47 }
 0x522   : > { %v6329_v50 = vmax.f32 %v6180_v38, 0.0  ;;  %v8766_v31 = vpack.c.bf16 %v6326_v40, %v6294_v7  ;;  %v7642_v38 = vshrl.u32 %v7641_v36, 7 }
 0x523   : > { %v8782_v32 = vpack.c.bf16 %v6328_v56, %v6296_v28  ;;  %v8764_v6 = vpack.c.bf16 %v6327_v33, %v6295_v4  ;;  %v6110_v58 = vpop.f32.mrb[248].mxu1 }
 0x524   : > { %v8780_v49 = vpack.c.bf16 %v6329_v50, %v6297_v25  ;;  %v6183_v20 = vpop.f32.mrb[8].mxu0  ;;  %v6111_v39 = vadd.f32 %v6110_v58, %v10715_v30  ;;  %v6112_v62 = vpop.f32.mrb[249].mxu1 }
 0x525   : > { %v6184_v1 = vadd.f32 %v6183_v20, %v10715_v30  ;;  %v6185_v2 = vpop.f32.mrb[9].mxu0  ;;  %v6113_v60 = vadd.f32 %v6112_v62, %v10715_v30  ;;  %v6114_v52 = vpop.f32.mrb[250].mxu1  ;;  %8765 = vmatprep.subr.bf16.mxu1 %v8764_v6 }
 0x526   : > { %v6186_v63 = vadd.f32 %v6185_v2, %v10715_v30  ;;  %v6187_v55 = vpop.f32.mrb[10].mxu0  ;;  %8781 = vmatprep.subr.bf16.mxu0 %v8780_v49  ;;  %v6115_v18 = vadd.f32 %v6114_v52, %v10717_v44  ;;  %v6116_v5 = vpop.f32.mrb[251].mxu1  ;;  %8767 = vmatpush1.bf16.msra.mxu1 %v8766_v31  ;;  %v6358_v9 = vmax.f32 %v6111_v39, 0.0 }
 0x527   : > { %v6188_v51 = vadd.f32 %v6187_v55, %v10717_v44  ;;  %v6189_v13 = vpop.f32.mrb[11].mxu0  ;;  %8783 = vmatpush1.bf16.msra.mxu0 %v8782_v32  ;;  %v6117_v12 = vadd.f32 %v6116_v5, %v10717_v44  ;;  %v6360_v34 = vmax.f32 %v6184_v1, 0.0  ;;  %v6359_v3 = vmax.f32 %v6113_v60, 0.0  ;;  %v11029_v50 = vpop.permute.xlu0 %6462 }
 0x528   : > { %v6190_v16 = vadd.f32 %v6189_v13, %v10717_v44  ;;  %v6390_v19 = vmax.f32 %v6115_v18, 0.0  ;;  %v6361_v15 = vmax.f32 %v6186_v63, 0.0  ;;  %v11034_v60 = vsub.s32 %v7640_v11, %v7642_v38 }
 0x529   : > { %v6392_v30 = vmax.f32 %v6188_v51, 0.0  ;;  %v6391_v29 = vmax.f32 %v6117_v12, 0.0 }
 0x52a   : > { %v6393_v59 = vmax.f32 %v6190_v16, 0.0  ;;  %v8770_v57 = vpack.c.bf16 %v6390_v19, %v6358_v9 }
 0x52b   : > { %v8786_v54 = vpack.c.bf16 %v6392_v30, %v6360_v34  ;;  %v8768_v8 = vpack.c.bf16 %v6391_v29, %v6359_v3  ;;  %v6120_v41 = vpop.f32.mrb[252].mxu1 }
 0x52c   : > { %v8784_v22 = vpack.c.bf16 %v6393_v59, %v6361_v15  ;;  %v6193_v10 = vpop.f32.mrb[12].mxu0  ;;  %v6121_v46 = vadd.f32 %v6120_v41, %v10735_v53  ;;  %v6122_v21 = vpop.f32.mrb[253].mxu1 }
 0x52d   : > { %v6194_v44 = vadd.f32 %v6193_v10, %v10735_v53  ;;  %v6195_v14 = vpop.f32.mrb[13].mxu0  ;;  %v6123_v42 = vadd.f32 %v6122_v21, %v10735_v53  ;;  %v6124_v0 = vpop.f32.mrb[254].mxu1  ;;  %8769 = vmatprep.subr.bf16.mxu1 %v8768_v8 }
 0x52e   : > { %v6196_v17 = vadd.f32 %v6195_v14, %v10735_v53  ;;  %v6197_v35 = vpop.f32.mrb[14].mxu0  ;;  %8785 = vmatprep.subr.bf16.mxu0 %v8784_v22  ;;  %v6125_v43 = vadd.f32 %v6124_v0, %v10737_v23  ;;  %v6126_v61 = vpop.f32.mrb[255].mxu1  ;;  %8771 = vmatpush1.bf16.msra.mxu1 %v8770_v57  ;;  %v6422_v7 = vmax.f32 %v6121_v46, 0.0 }
 0x52f   : > { %v6198_v48 = vadd.f32 %v6197_v35, %v10737_v23  ;;  %v6199_v26 = vpop.f32.mrb[15].mxu0  ;;  %8787 = vmatpush1.bf16.msra.mxu0 %v8786_v54  ;;  %v6127_v45 = vadd.f32 %v6126_v61, %v10737_v23  ;;  %v6424_v53 = vmax.f32 %v6194_v44, 0.0  ;;  %v6423_v56 = vmax.f32 %v6123_v42, 0.0 }
 0x530   : > { %v6200_v24 = vadd.f32 %v6199_v26, %v10737_v23  ;;  %v6454_v28 = vmax.f32 %v6125_v43, 0.0  ;;  %v6425_v4 = vmax.f32 %v6196_v17, 0.0 }
 0x531   : > { %v6456_v40 = vmax.f32 %v6198_v48, 0.0  ;;  %v6455_v25 = vmax.f32 %v6127_v45, 0.0 }
 0x532   : > { %v6457_v33 = vmax.f32 %v6200_v24, 0.0  ;;  %v8774_v31 = vpack.c.bf16 %v6454_v28, %v6422_v7 }
 0x533   : > { %v8790_v32 = vpack.c.bf16 %v6456_v40, %v6424_v53  ;;  %v8772_v6 = vpack.c.bf16 %v6455_v25, %v6423_v56  ;;  %v6534_v58 = vpop.f32.mrb[0].mxu1 }
 0x534   : > { %v8788_v49 = vpack.c.bf16 %v6457_v33, %v6425_v4  ;;  %v6605_v20 = vpop.f32.mrb[16].mxu0  ;;  %v6535_v23 = vadd.f32 %v6534_v58, %v11029_v50  ;;  %v6536_v1 = vpop.f32.mrb[1].mxu1 }
 0x535   : > { %v6606_v39 = vadd.f32 %v6605_v20, %v11029_v50  ;;  %v6607_v62 = vpop.f32.mrb[17].mxu0  ;;  %v6537_v2 = vadd.f32 %v6536_v1, %v11029_v50  ;;  %8773 = vmatprep.subr.bf16.mxu1 %v8772_v6 }
 0x536   : > { %v6608_v63 = vadd.f32 %v6607_v62, %v11029_v50  ;;  %8789 = vmatprep.subr.bf16.mxu0 %v8788_v49  ;;  %8775 = vmatpush1.bf16.msra.mxu1 %v8774_v31 }
 0x537   : > { %8791 = vmatpush1.bf16.msra.mxu0 %v8790_v32  ;;  %v7636_v52 = vcombine.low %v6535_v23, %v6537_v2 }
 0x538   : > { %v7637_v55 = vcombine.low %v6606_v39, %v6608_v63 }
 0x539   : > { %v7644_v18 = vrot.slane %v7636_v52, %v11034_v60  ;;  %8519 = vmatmul.mubr.msk.f32.vlgmr.msra.gmra.mrb[14].mxu1 %vm5021_vm1, %v10921_v27 }
 0x53a   : > { %v7651_v51 = vrot.slane %v7637_v55, %v11034_v60  ;;  %8520 = vmatmul.mubr.msk.f32.vlgmr.msra.gmra.mrb[30].mxu0 %vm5021_vm1, %v10921_v27 }
 0x53c   : > { %v7652_v5 = vcombine.low %v7644_v18, %v7651_v51 }
 0x53e   : > { %7780 = vst [vmem:[%s11045_s25] sm:$0xff] %v7652_v5 }
 0x54c   : > { %v6676_v13 = vpop.f32.mrb[2].mxu1  ;;  %v6747_v12 = vpop.f32.mrb[18].mxu0 }
 0x54d   : > { %v6677_v16 = vadd.f32 %v6676_v13, %v11029_v50  ;;  %v6748_v9 = vadd.f32 %v6747_v12, %v11029_v50  ;;  %v6678_v34 = vpop.f32.mrb[3].mxu1  ;;  %v6749_v19 = vpop.f32.mrb[19].mxu0 }
 0x54e   : > { %v6679_v30 = vadd.f32 %v6678_v34, %v11029_v50  ;;  %v6750_v3 = vadd.f32 %v6749_v19, %v11029_v50 }
 0x550   : > { %v7653_v27 = vcombine.low %v6677_v16, %v6679_v30  ;;  %v7654_v15 = vcombine.low %v6748_v9, %v6750_v3 }
 0x552   : > { %v7661_v29 = vrot.slane %v7653_v27, %v11034_v60  ;;  %v7668_v59 = vrot.slane %v7654_v15, %v11034_v60 }
 0x554   : > { %v7669_v57 = vcombine.low %v7661_v29, %v7668_v59 }
 0x556   : > { %7781 = vst [vmem:[%s11045_s25 + $0x8] sm:$0xff] %v7669_v57 }
 0x56c   : > { %v6818_v54 = vpop.f32.mrb[4].mxu1 }
 0x56d   : > { %v6889_v8 = vpop.f32.mrb[20].mxu0  ;;  %v6819_v22 = vadd.f32 %v6818_v54, %v11029_v50  ;;  %v6820_v10 = vpop.f32.mrb[5].mxu1 }
 0x56e   : > { %v6890_v41 = vadd.f32 %v6889_v8, %v11029_v50  ;;  %v6891_v37 = vpop.f32.mrb[21].mxu0  ;;  %v6821_v47 = vadd.f32 %v6820_v10, %v11029_v50 }
 0x56f   : > { %v6892_v36 = vadd.f32 %v6891_v37, %v11029_v50 }
 0x570   : > { %v7670_v46 = vcombine.low %v6819_v22, %v6821_v47 }
 0x571   : > { %v7671_v44 = vcombine.low %v6890_v41, %v6892_v36 }
 0x572   : > { %v7678_v21 = vrot.slane %v7670_v46, %v11034_v60 }
 0x573   : > { %v7685_v14 = vrot.slane %v7671_v44, %v11034_v60 }
 0x575   : > { %v7686_v42 = vcombine.low %v7678_v21, %v7685_v14 }
 0x577   : > { %7782 = vst [vmem:[%s11045_s25 + $0x10] sm:$0xff] %v7686_v42 }
 0x58c   : > { %v6960_v17 = vpop.f32.mrb[6].mxu1 }
 0x58d   : > { %v7031_v0 = vpop.f32.mrb[22].mxu0  ;;  %v6961_v35 = vadd.f32 %v6960_v17, %v11029_v50  ;;  %v6962_v48 = vpop.f32.mrb[7].mxu1 }
 0x58e   : > { %v7032_v43 = vadd.f32 %v7031_v0, %v11029_v50  ;;  %v7033_v61 = vpop.f32.mrb[23].mxu0  ;;  %v6963_v26 = vadd.f32 %v6962_v48, %v11029_v50 }
 0x58f   : > { %v7034_v45 = vadd.f32 %v7033_v61, %v11029_v50 }
 0x590   : > { %v7687_v24 = vcombine.low %v6961_v35, %v6963_v26 }
 0x591   : > { %v7688_v11 = vcombine.low %v7032_v43, %v7034_v45 }
 0x592   : > { %v7695_v38 = vrot.slane %v7687_v24, %v11034_v60 }
 0x593   : > { %v7702_v7 = vrot.slane %v7688_v11, %v11034_v60 }
 0x595   : > { %v7703_v53 = vcombine.low %v7695_v38, %v7702_v7 }
 0x597   : > { %7783 = vst [vmem:[%s11045_s25 + $0x18] sm:$0xff] %v7703_v53 }
 0x5ac   : > { %v7102_v28 = vpop.f32.mrb[8].mxu1 }
 0x5ad   : > { %v7173_v40 = vpop.f32.mrb[24].mxu0  ;;  %v7103_v56 = vadd.f32 %v7102_v28, %v11029_v50  ;;  %v7104_v25 = vpop.f32.mrb[9].mxu1 }
 0x5ae   : > { %v7174_v4 = vadd.f32 %v7173_v40, %v11029_v50  ;;  %v7175_v33 = vpop.f32.mrb[25].mxu0  ;;  %v7105_v31 = vadd.f32 %v7104_v25, %v11029_v50 }
 0x5af   : > { %v7176_v32 = vadd.f32 %v7175_v33, %v11029_v50 }
 0x5b0   : > { %v7704_v6 = vcombine.low %v7103_v56, %v7105_v31 }
 0x5b1   : > { %v7705_v49 = vcombine.low %v7174_v4, %v7176_v32 }
 0x5b2   : > { %v7712_v58 = vrot.slane %v7704_v6, %v11034_v60 }
 0x5b3   : > { %v7719_v20 = vrot.slane %v7705_v49, %v11034_v60 }
 0x5b5   : > { %v7720_v23 = vcombine.low %v7712_v58, %v7719_v20 }
 0x5b7   : > { %7784 = vst [vmem:[%s11045_s25 + $0x20] sm:$0xff] %v7720_v23 }
 0x5cc   : > { %v7244_v39 = vpop.f32.mrb[10].mxu1 }
 0x5cd   : > { %v7315_v1 = vpop.f32.mrb[26].mxu0  ;;  %v7245_v62 = vadd.f32 %v7244_v39, %v11029_v50  ;;  %v7246_v63 = vpop.f32.mrb[11].mxu1 }
 0x5ce   : > { %v7316_v2 = vadd.f32 %v7315_v1, %v11029_v50  ;;  %v7317_v52 = vpop.f32.mrb[27].mxu0  ;;  %v7247_v55 = vadd.f32 %v7246_v63, %v11029_v50 }
 0x5cf   : > { %v7318_v18 = vadd.f32 %v7317_v52, %v11029_v50 }
 0x5d0   : > { %v7721_v51 = vcombine.low %v7245_v62, %v7247_v55 }
 0x5d1   : > { %v7722_v5 = vcombine.low %v7316_v2, %v7318_v18 }
 0x5d2   : > { %v7729_v13 = vrot.slane %v7721_v51, %v11034_v60 }
 0x5d3   : > { %v7736_v12 = vrot.slane %v7722_v5, %v11034_v60 }
 0x5d5   : > { %v7737_v16 = vcombine.low %v7729_v13, %v7736_v12 }
 0x5d7   : > { %7785 = vst [vmem:[%s11045_s25 + $0x28] sm:$0xff] %v7737_v16 }
 0x5ec   : > { %v7386_v9 = vpop.f32.mrb[12].mxu1 }
 0x5ed   : > { %v7457_v34 = vpop.f32.mrb[28].mxu0  ;;  %v7387_v19 = vadd.f32 %v7386_v9, %v11029_v50  ;;  %v7388_v3 = vpop.f32.mrb[13].mxu1 }
 0x5ee   : > { %v7458_v30 = vadd.f32 %v7457_v34, %v11029_v50  ;;  %v7459_v27 = vpop.f32.mrb[29].mxu0  ;;  %v7389_v15 = vadd.f32 %v7388_v3, %v11029_v50 }
 0x5ef   : > { %v7460_v29 = vadd.f32 %v7459_v27, %v11029_v50 }
 0x5f0   : > { %v7738_v59 = vcombine.low %v7387_v19, %v7389_v15 }
 0x5f1   : > { %v7739_v57 = vcombine.low %v7458_v30, %v7460_v29 }
 0x5f2   : > { %v7746_v54 = vrot.slane %v7738_v59, %v11034_v60 }
 0x5f3   : > { %v7753_v8 = vrot.slane %v7739_v57, %v11034_v60 }
 0x5f5   : > { %v7754_v22 = vcombine.low %v7746_v54, %v7753_v8 }
 0x5f7   : > { %7786 = vst [vmem:[%s11045_s25 + $0x30] sm:$0xff] %v7754_v22 }
 0x60c   : > { %v7528_v41 = vpop.f32.mrb[14].mxu1 }
 0x60d   : > { %v7599_v10 = vpop.f32.mrb[30].mxu0  ;;  %v7529_v37 = vadd.f32 %v7528_v41, %v11029_v50  ;;  %v7530_v36 = vpop.f32.mrb[15].mxu1 }
 0x60e   : > { %v7600_v47 = vadd.f32 %v7599_v10, %v11029_v50  ;;  %v7601_v46 = vpop.f32.mrb[31].mxu0  ;;  %v7531_v44 = vadd.f32 %v7530_v36, %v11029_v50 }
 0x60f   : > { %v7602_v21 = vadd.f32 %v7601_v46, %v11029_v50 }
 0x610   : > { %v7755_v14 = vcombine.low %v7529_v37, %v7531_v44 }
 0x611   : > { %v7756_v42 = vcombine.low %v7600_v47, %v7602_v21 }
 0x612   : > { %v7763_v17 = vrot.slane %v7755_v14, %v11034_v60 }
 0x613   : > { %v7770_v0 = vrot.slane %v7756_v42, %v11034_v60 }
 0x615   : > { %v7771_v35 = vcombine.low %v7763_v17, %v7770_v0 }
 0x617   : > { %7787 = vst [vmem:[%s11045_s25 + $0x38] sm:$0xff] %v7771_v35 }
 0x618   : > { %9012 = shalt.err (!%p9009_p4)
}
 0x619   : > { %s9013_s3 = scalar_lea.hbm %s11101_s19, 1024  ;;  %s9017_s18 = scalar_lea.hbm %s11154_s8, 2048 }
 0x61a   : > { %p9014_p9 = scmp.ne.s32.totalorder %s11101_s19, %s9013_s3  ;;  %p9018_p8 = scmp.lt.u32.totalorder %s11101_s19, %s11154_s8 }
 0x61b   : > { %p9019_p13 = scmp.lt.u32.totalorder %s9017_s18, %s9013_s3  ;;  %p9021_p10 = scmp.lt.u32.totalorder %s9013_s3, %s11101_s19 }
 0x61c   : > { %p9015_p0 = pnand %p9014_p9, %p9276_p5 }
 0x61d   : > { %p9020_p6 = por %p9019_p13, %p9018_p8 }
 0x61e   : > { %p9016_p11 = pneg %p9015_p0 }
 0x61f   : > { %p9022_p3 = por %p9021_p10, %p9020_p6 }
 0x621   : > { %p9023_p7 = pnand %p9022_p3, %p9016_p11 }
 0x623   : > { %9026 = shalt.err (!%p9023_p7)
}
 0x624   : > { %8806 = dma.vmem_to_hbm [thread:$0]  (%p9276_p5), %s11103_s26, 1024, %s11101_s19, %s7789_s20  }
 0x625 PF: > { %s11608_s25 = sld [smem:[#allocation15_spill]]  ;;  %s11609_s27 = sld [smem:[#allocation16_spill]] }
 0x626   : > { %p11611_p2 = scmp.ge.s32.totalorder %s9073_s30, 2 }
 0x62b   : > { %s7815_s14 = sand.u32 1, %s11608_s25   ;;  %p11610_p12 = scmp.ne.s32.totalorder %s11609_s27, 0 }
 0x62c   : > { %s7816_s12 = scalar_lea.sflag [#allocation4], %s7815_s14 }
 0x62d   : > { %p8823_p1 = pnand %p11611_p2, %p11610_p12 }
 0x62f   : > { %9056 = dma.done.wait (!%p8823_p1), %s7816_s12, 1024  }
 0x630   : > { %9058 = vsyncadd (!%p8823_p1), %s7816_s12, 4294966272  ;;  %p23_p4 = scmp.ge.s32.totalorder %s9244_s22, 4   ;;  %s11612_s27 = smov %s9065_s28 }
 0x631   : > { %s11613_s28 = smov %s9069_s29  ;;  %s11614_s29 = smov %s9272_s16 }
 0x632   : > { %s11615_s30 = smov %s9244_s22  ;;  %25 = sbr.rel (!%p23_p4) target bundleno = 9 (0x9), region = 109 }
 0x639   :  { %7821 = vsyncpa [#allocation3], 1 }
 0x63a   :  { %7823 = vsyncpa [#allocation3 + $0x1], 1 }
 0x63b   :  { %7824 = vsyncpa [#allocation6], 1 }
 0x63c   :  { %7825 = vsyncpa [#allocation9], 1 }
 0x63d   :  { %7826 = vsyncpa [#allocation4], 1 }
 0x63e   :  { %7828 = vsyncpa [#allocation4 + $0x1], 1 }

</bundles_post_ra>
